<compile_context>
chip_gen: v7x
topology: tpu7x:2x2x1
jax: 0.10.0
libtpu: 0.0.40
codegen_flags: <defaults>
</compile_context>

<pallas_src>
import functools
from typing import NamedTuple, Optional

import jax
import jax.numpy as jnp
import numpy as np
from jax.experimental import pallas as pl
from jax.experimental.pallas import tpu as pltpu


class Act(NamedTuple):
    """Canvas activation: data (N, C, H*Wc); valid height H, valid width Wv,
    canvas row stride Wc.  Margin columns (Wv..Wc-1) are always zero."""
    data: jax.Array
    H: int
    Wv: int
    Wc: int


class LayerSpec(NamedTuple):
    kh: int
    kw: int
    dil: int
    cin: int
    cout: int
    groups: Optional[int]   # None => plain conv (no GroupNorm / SiLU)


def _round_up(x, m):
    return ((x + m - 1) // m) * m


# ------------------------------ Pallas kernel --------------------------------

def _chain_kernel(*refs, specs, wc, h0, wv0):
    """Fused chain of stride-1 VALID conv layers for one sample.

    refs = (x_ref, col_ref, w_0, aux_0, ..., w_{L-1}, aux_{L-1}, o_ref)
      x_ref  : (C0, H0*Wc)        bf16 canvas
      col_ref: (1, H0*Wc)         int32 flat-index % Wc (validity-mask source)
      w_l    : (Cout_l, K_l)      bf16, K_l = kh*kw*Cin_l  (wide-K MXU operand)
      aux_l  : (Cout_l, 1 or 3)   f32  [bias] or [bias | gamma | beta]
      o_ref  : (Cout_last, oh_last*Wc)
    The activation stays in VMEM/vregs across all layers of the chain.
    """
    x_ref, col_ref = refs[0], refs[1]
    o_ref = refs[-1]
    layer_refs = refs[2:-1]

    x = x_ref[...]
    col = col_ref[...]
    # One trailing zero canvas row keeps every shifted tap slice in bounds.
    x = jnp.concatenate([x, jnp.zeros((x.shape[0], wc), x.dtype)], axis=1)

    h, wv = h0, wv0
    y = None
    n_layers = len(specs)
    for li, sp in enumerate(specs):
        w = layer_refs[2 * li][...]
        aux = layer_refs[2 * li + 1][...]
        oh = h - (sp.kh - 1) * sp.dil
        owv = wv - (sp.kw - 1) * sp.dil
        m = oh * wc

        # im2col in VMEM: stack the kh*kw shifted (Cin, M) lane slices along the
        # sublane axis -> ONE wide-K MXU dot per layer.
        taps = []
        for i in range(sp.kh):
            for j in range(sp.kw):
                off = (i * wc + j) * sp.dil
                taps.append(x[:, off:off + m])
        xk = taps[0] if len(taps) == 1 else jnp.concatenate(taps, axis=0)
        y = jnp.dot(w, xk, preferred_element_type=jnp.float32) + aux[:, 0:1]

        valid = col[:, :m] < owv                     # (1, M) valid-column mask

        if sp.groups is not None:
            # GroupNorm (per sample, per group) + affine + SiLU, all in f32.
            cg = sp.cout // sp.groups
            inv_cnt = 1.0 / float(oh * owv * cg)
            ym = jnp.where(valid, y, 0.0)
            s1 = jnp.sum(ym, axis=1, keepdims=True)            # (Cout, 1)
            s2 = jnp.sum(ym * ym, axis=1, keepdims=True)       # (Cout, 1)
            stats = jnp.concatenate([s1, s2], axis=1)          # (Cout, 2)
            # Group reduction via sublane-slice sums (no group-indicator matmul,
            # no extra DMAs); groups is tiny so this unrolls to a few VPU ops.
            parts = []
            for g in range(sp.groups):
                gs = jnp.sum(stats[g * cg:(g + 1) * cg, :], axis=0,
                             keepdims=True)                    # (1, 2)
                parts.append(jnp.broadcast_to(gs, (cg, 2)))
            gstats = parts[0] if sp.groups == 1 else jnp.concatenate(parts, axis=0)
            mean = gstats[:, 0:1] * inv_cnt
            ex2 = gstats[:, 1:2] * inv_cnt
            # TODO(synk): one-pass E[x^2]-E[x]^2 variance; switch to a
            # mean-shifted two-pass form if activation magnitudes grow.
            var = jnp.maximum(ex2 - mean * mean, 0.0)
            y = (y - mean) * jax.lax.rsqrt(var + 1e-5)
            y = y * aux[:, 1:2] + aux[:, 2:3]
            y = y * jax.nn.sigmoid(y)                          # SiLU

        # Keep the canvas invariant explicit: margin columns are always zero.
        y = jnp.where(valid, y, 0.0)

        if li + 1 < n_layers:
            x = jnp.concatenate(
                [y.astype(jnp.bfloat16),
                 jnp.zeros((sp.cout, wc), jnp.bfloat16)], axis=1)
        h, wv = oh, owv

    o_ref[...] = y.astype(o_ref.dtype)


# ------------------------------ chain wrapper ---------------------------------

def conv_chain(act, layers, out_dtype=jnp.bfloat16):
    """Run a chain of stride-1 VALID conv layers as ONE fused pallas_call.

    `layers` is a list of tuples (w, b, gamma, beta, groups, dilation) with w in
    (KH, KW, Cin, Cout) layout.  GroupNorm + SiLU are applied iff groups is not
    None.  The activation never leaves VMEM between layers of the chain.
    """
    data, h0, wv0, wc = act
    n, c0, L0 = data.shape
    assert L0 == h0 * wc

    col_idx = jnp.asarray((np.arange(L0) % wc).astype(np.int32).reshape(1, L0))

    specs = []
    inputs = [data, col_idx]
    in_specs = [
        pl.BlockSpec((None, c0, L0), lambda i: (i, 0, 0)),
        pl.BlockSpec((1, L0), lambda i: (0, 0)),
    ]

    h, wv, cin = h0, wv0, c0
    flops = 0
    transcendentals = 0
    bytes_acc = n * c0 * L0 * data.dtype.itemsize + col_idx.size * 4
    for (w, b, gamma, beta, groups, dil) in layers:
        kh, kw, wcin, cout = w.shape
        assert wcin == cin, (wcin, cin)
        oh = h - (kh - 1) * dil
        owv = wv - (kw - 1) * dil
        assert oh >= 1 and owv >= 1, "spatial dims exhausted inside chain"
        m = oh * wc
        k = kh * kw * cin

        specs.append(LayerSpec(kh, kw, dil, cin, cout, groups))
        # (Cout, KH*KW*Cin): column order matches the in-kernel tap stacking.
        w2 = jnp.transpose(w, (3, 0, 1, 2)).reshape(cout, k).astype(jnp.bfloat16)
        if groups is None:
            aux = b.reshape(cout, 1).astype(jnp.float32)
        else:
            aux = jnp.stack([b, gamma, beta], axis=1).astype(jnp.float32)
        inputs += [w2, aux]
        in_specs += [
            pl.BlockSpec((cout, k), lambda i: (0, 0)),
            pl.BlockSpec((cout, aux.shape[1]), lambda i: (0, 0)),
        ]

        flops += 2 * n * k * cout * m
        if groups is not None:
            transcendentals += n * cout * m          # sigmoid in SiLU
        bytes_acc += w2.size * 2 + aux.size * 4
        h, wv, cin = oh, owv, cout

    m_last = h * wc
    bytes_acc += n * cin * m_last * np.dtype(out_dtype).itemsize

    kernel = functools.partial(_chain_kernel, specs=tuple(specs),
                               wc=wc, h0=h0, wv0=wv0)
    out = pl.pallas_call(
        kernel,
        out_shape=jax.ShapeDtypeStruct((n, cin, m_last), out_dtype),
        grid=(n,),
        in_specs=in_specs,
        out_specs=pl.BlockSpec((None, cin, m_last), lambda i: (i, 0, 0)),
        compiler_params=pltpu.CompilerParams(
            # grid=(N,) "parallel": shards samples across the 2 TensorCores on
            # v7x; on single-TC v5e/v6e it is a short serial loop (N is tiny).
            dimension_semantics=("parallel",),
            # Tiny working set; 32 MiB leaves headroom on every generation
            # (v5e default scoped limit is 16 MiB, v7x physical is 64 MiB/TC).
            vmem_limit_bytes=32 * 1024 * 1024,
        ),
        cost_estimate=pl.CostEstimate(
            flops=int(flops),
            transcendentals=int(transcendentals),
            bytes_accessed=int(bytes_acc)),
    )(*inputs)
    return Act(out, h, wv, wc)


# ---------------------------- canvas <-> dense --------------------------------

def to_canvas(x_dense):
    """(N, C, H, W) dense NCHW -> canvas Act (Wv == Wc == W)."""
    n, c, h, w = x_dense.shape
    return Act(x_dense.reshape(n, c, h * w), h, w, w)


def from_canvas(act):
    """Canvas Act -> dense NCHW (N, C, H, Wv)."""
    data, h, wv, wc = act
    n, c, _ = data.shape
    x = data.reshape(n, c, h, wc)
    if wv != wc:
        x = x[:, :, :, :wv]
    return x


# --------------------- strided conv / conv-transpose ---------------------------

def strided_conv_as_layer(act, w, b, stride):
    """Rewrite Conv2d(k, stride, pad=0) as ONE stride-1 VALID conv layer over a
    phase-stacked input (sub-pixel phases folded into channels), so it fuses
    into the following conv_chain call instead of stride^2 extra launches."""
    x = from_canvas(act)                       # (N, C, H, W)
    n, c, hh, ww = x.shape
    kh, kw, wcin, cout = w.shape
    assert wcin == c
    s = stride
    oh = (hh - kh) // s + 1
    ow = (ww - kw) // s + 1
    assert oh >= 1 and ow >= 1
    th = -(-kh // s)
    tw = -(-kw // s)
    hs = oh + th - 1
    ws = ow + tw - 1
    ph = min(s, kh)
    pw = min(s, kw)
    slabs = []
    wb = jnp.zeros((th, tw, ph * pw * c, cout), w.dtype)
    for p in range(ph):
        for q in range(pw):
            slab = p * pw + q
            xs = x[:, :, p::s, q::s][:, :, :hs, :ws]
            xs = jnp.pad(xs, ((0, 0), (0, 0),
                              (0, hs - xs.shape[2]), (0, ws - xs.shape[3])))
            slabs.append(xs)
            for a in range(th):
                ki = s * a + p
                if ki >= kh:
                    continue
                for bb in range(tw):
                    kj = s * bb + q
                    if kj >= kw:
                        continue
                    wb = wb.at[a, bb, slab * c:(slab + 1) * c, :].set(w[ki, kj])
    xs_all = jnp.concatenate(slabs, axis=1)    # (N, ph*pw*C, hs, ws)
    layer = (wb, b, None, None, None, 1)
    return to_canvas(xs_all), layer


def conv_transpose2d(act, w, b, stride):
    """ConvTranspose2d(k, stride, padding=0, output_padding=0): ONE fused
    pallas_call computing all stride^2 output phases as extra OUTPUT channels
    of a stride-1 VALID conv, followed by an XLA interleave + crop."""
    x = from_canvas(act)                       # (N, Cin, H, W) bf16
    n, cin, hh, ww = x.shape
    kh, kw, wcin, cout = w.shape
    assert wcin == cin
    s = stride
    th = -(-kh // s)
    tw = -(-kw // s)
    oh = (hh - 1) * s + kh
    ow = (ww - 1) * s + kw
    xp = jnp.pad(x, ((0, 0), (0, 0), (th - 1, th - 1), (tw - 1, tw - 1)))
    hph = hh + th - 1
    wph = ww + tw - 1
    wb = jnp.zeros((th, tw, cin, s * s * cout), w.dtype)
    for rh in range(s):
        for rw in range(s):
            slab = rh * s + rw
            for a in range(th):
                ki = s * (th - 1 - a) + rh
                if ki >= kh:
                    continue
                for bb in range(tw):
                    kj = s * (tw - 1 - bb) + rw
                    if kj >= kw:
                        continue
                    wb = wb.at[a, bb, :,
                               slab * cout:(slab + 1) * cout].set(w[ki, kj])
    b_big = jnp.tile(b, (s * s,))
    layer = (wb, b_big, None, None, None, 1)
    o = conv_chain(to_canvas(xp), [layer], out_dtype=jnp.bfloat16)
    od = from_canvas(o)                        # (N, s*s*Cout, hph, wph)
    od = od.reshape(n, s, s, cout, hph, wph)
    od = jnp.transpose(od, (0, 3, 4, 1, 5, 2)) # (N, Cout, hph, s, wph, s)
    od = od.reshape(n, cout, hph * s, wph * s)[:, :, :oh, :ow]
    return to_canvas(od)


def crop_like(sh, x):
    """Center-crop dense NCHW `sh` spatially to match `x`."""
    dh = sh.shape[2] - x.shape[2]
    dw = sh.shape[3] - x.shape[3]
    return sh[:, :, dh // 2: dh // 2 + x.shape[2],
                    dw // 2: dw // 2 + x.shape[3]]


# --------------------------- parameter construction ----------------------------

def _conv_params(key, kh, kw, cin, cout):
    kw_, kb = jax.random.split(key)
    scale = 1.0 / float(np.sqrt(kh * kw * cin))
    return {
        "w": jax.random.uniform(kw_, (kh, kw, cin, cout), jnp.float32,
                                -scale, scale),
        "b": jax.random.uniform(kb, (cout,), jnp.float32, -scale, scale),
    }


def _convblock_params(key, k, cin, cout):
    p = _conv_params(key, k, k, cin, cout)
    p["gamma"] = jnp.ones((cout,), jnp.float32)
    p["beta"] = jnp.zeros((cout,), jnp.float32)
    return p


def init_unet_params(key, in_channels, out_channels, channels, depth,
                     kernel_size, masking=False):
    keys = iter(jax.random.split(key, 256))
    P = {}
    P["pre"] = _conv_params(next(keys), 1, 1, in_channels, channels[0])
    P["down_blocks"], P["down"], P["down_ch"] = [], [], []
    up_ch, up, up_blocks = [], [], []
    for idx in range(len(channels) - 1):
        ch = channels[idx]
        P["down_blocks"].append(
            [_convblock_params(next(keys), kernel_size, ch, ch)
             for _ in range(depth)])
        P["down"].append(
            _conv_params(next(keys), kernel_size, kernel_size, ch, ch))
        P["down_ch"].append(
            _convblock_params(next(keys), kernel_size, ch, channels[idx + 1]))
        chin = (channels[idx + 1]
                if (masking or idx == len(channels) - 2)
                else channels[idx + 1] * 2)
        up_ch.append(_convblock_params(next(keys), kernel_size, chin, ch))
        up.append(_conv_params(next(keys), kernel_size, kernel_size, ch, ch))
        up_blocks.append(
            [_convblock_params(next(keys), kernel_size, ch, ch)
             for _ in range(depth)])
    P["up_ch"] = up_ch[::-1]
    P["up"] = up[::-1]
    P["up_blocks"] = up_blocks[::-1]
    P["bottle"] = [
        _convblock_params(next(keys), kernel_size, channels[-1], channels[-1])
        for _ in range(2)]
    chin = channels[0] if masking else channels[0] * 2
    P["post"] = _conv_params(next(keys), 1, 1, chin, out_channels)
    return P


# ---------------------------------- forward ------------------------------------

def unet_forward(params, x_nchw, *, gn_channels, stride, dilation,
                 masking=False):
    cin_raw = x_nchw.shape[1]
    x = x_nchw.astype(jnp.bfloat16)
    # Pad input channels to a sublane-friendly multiple of 8 so the first
    # (1x1) conv's MXU operand is not a 3-row sliver.
    cin_pad = _round_up(cin_raw, 8)
    if cin_pad != cin_raw:
        x = jnp.pad(x, ((0, 0), (0, cin_pad - cin_raw), (0, 0), (0, 0)))

    state = {"act": to_canvas(x), "pending": []}

    def push(layer):
        state["pending"].append(layer)

    def flush(out_dtype=jnp.bfloat16):
        if state["pending"]:
            state["act"] = conv_chain(state["act"], state["pending"],
                                      out_dtype=out_dtype)
            state["pending"] = []
        return state["act"]

    def cblock(p):
        cout = p["w"].shape[-1]
        return (p["w"], p["b"], p["gamma"], p["beta"], cout // gn_channels,
                dilation)

    # pre: 1x1 conv (zero-pad its Cin to match the padded input channels).
    w_pre = params["pre"]["w"]
    if w_pre.shape[2] != cin_pad:
        w_pre = jnp.pad(w_pre,
                        ((0, 0), (0, 0), (0, cin_pad - w_pre.shape[2]), (0, 0)))
    push((w_pre, params["pre"]["b"], None, None, None, 1))

    short = []
    for blk, down, dch in zip(params["down_blocks"], params["down"],
                              params["down_ch"]):
        for p in blk:
            push(cblock(p))
        flush()
        short.append(state["act"])                     # skip (canvas, bf16)
        new_act, layer = strided_conv_as_layer(state["act"], down["w"],
                                               down["b"], stride)
        state["act"] = new_act
        push(layer)                                    # fused into next chain
        push(cblock(dch))
    for p in params["bottle"]:
        push(cblock(p))
    short.reverse()
    for upp, blk, uch, sh in zip(params["up"], params["up_blocks"],
                                 params["up_ch"], short):
        push(cblock(uch))
        flush()
        state["act"] = conv_transpose2d(state["act"], upp["w"], upp["b"],
                                        stride)
        for p in blk:
            push(cblock(p))
        flush()
        xd = from_canvas(state["act"])
        shd = crop_like(from_canvas(sh), xd)
        merged = shd * xd if masking else jnp.concatenate((xd, shd), axis=1)
        state["act"] = to_canvas(merged)

    # post: 1x1 conv; pad Cout to 8 for a sublane-aligned store, slice after.
    w_post, b_post = params["post"]["w"], params["post"]["b"]
    cout_raw = w_post.shape[-1]
    cout_pad = _round_up(cout_raw, 8)
    if cout_pad != cout_raw:
        w_post = jnp.pad(w_post,
                         ((0, 0), (0, 0), (0, 0), (0, cout_pad - cout_raw)))
        b_post = jnp.pad(b_post, (0, cout_pad - cout_raw))
    push((w_post, b_post, None, None, None, 1))
    flush(out_dtype=jnp.float32)
    return from_canvas(state["act"])[:, :cout_raw]                 # NCHW f32


# ----------------------------------- main ---------------------------------------

if __name__ == "__main__":
    in_channels, out_channels = 3, 3
    channels = [8, 16]            # one UNet level + bottleneck
    depth, kernel_size, stride, gn_channels = 2, 3, 2, 8

    key = jax.random.PRNGKey(0)
    kx, kp = jax.random.split(key)
    x = jax.random.normal(kx, (2, in_channels, 31, 31), jnp.float32)
    params = init_unet_params(kp, in_channels, out_channels, channels,
                              depth, kernel_size, masking=False)

    fwd = jax.jit(functools.partial(unet_forward, gn_channels=gn_channels,
                                    stride=stride, dilation=1, masking=False))
    y = fwd(params, x)
    jax.block_until_ready(y)
    assert y.shape == (2, out_channels, 7, 7), y.shape
    assert bool(jnp.all(jnp.isfinite(y)))
    print("KERNEL_OK")
</pallas_src>

<mosaic_0001>
module attributes {stable_mosaic.version = 11 : i64} {
  func.func @_chain_kernel(%arg0: i32, %arg1: memref<1x8x961xbf16, #tpu.memory_space<vmem>>, %arg2: memref<1x961xi32, #tpu.memory_space<vmem>>, %arg3: memref<8x8xbf16, #tpu.memory_space<vmem>>, %arg4: memref<8x1xf32, #tpu.memory_space<vmem>>, %arg5: memref<8x72xbf16, #tpu.memory_space<vmem>>, %arg6: memref<8x3xf32, #tpu.memory_space<vmem>>, %arg7: memref<8x72xbf16, #tpu.memory_space<vmem>>, %arg8: memref<8x3xf32, #tpu.memory_space<vmem>>, %arg9: memref<1x8x837xbf16, #tpu.memory_space<vmem>>) attributes {dimension_semantics = [#tpu.dimension_semantics<parallel>], iteration_bounds = array<i64: 2>, scalar_prefetch = 0 : i64, scratch_operands = 0 : i64, tpu.core_type = #tpu.core_type<tc>, window_params = [{transform_indices = @transform_0, window_bounds = array<i64: 1, 8, 961>}, {pipeline_mode = #tpu.pipeline_mode<synchronous>, transform_indices = @transform_1, window_bounds = array<i64: 1, 961>}, {pipeline_mode = #tpu.pipeline_mode<synchronous>, transform_indices = @transform_2, window_bounds = array<i64: 8, 8>}, {pipeline_mode = #tpu.pipeline_mode<synchronous>, transform_indices = @transform_3, window_bounds = array<i64: 8, 1>}, {pipeline_mode = #tpu.pipeline_mode<synchronous>, transform_indices = @transform_4, window_bounds = array<i64: 8, 72>}, {pipeline_mode = #tpu.pipeline_mode<synchronous>, transform_indices = @transform_5, window_bounds = array<i64: 8, 3>}, {pipeline_mode = #tpu.pipeline_mode<synchronous>, transform_indices = @transform_6, window_bounds = array<i64: 8, 72>}, {pipeline_mode = #tpu.pipeline_mode<synchronous>, transform_indices = @transform_7, window_bounds = array<i64: 8, 3>}, {transform_indices = @transform_8, window_bounds = array<i64: 1, 8, 837>}]} {
    %c0 = arith.constant 0 : index
    %c0_0 = arith.constant 0 : index
    %c0_1 = arith.constant 0 : index
    %0 = vector.load %arg1[%c0, %c0_0, %c0_1] : memref<1x8x961xbf16, #tpu.memory_space<vmem>>, vector<1x8x961xbf16>
    %1 = vector.shape_cast %0 : vector<1x8x961xbf16> to vector<8x961xbf16>
    %c0_2 = arith.constant 0 : index
    %c0_3 = arith.constant 0 : index
    %2 = vector.load %arg2[%c0_2, %c0_3] : memref<1x961xi32, #tpu.memory_space<vmem>>, vector<1x961xi32>
    %cst = arith.constant 0.000000e+00 : bf16
    %3 = vector.broadcast %cst : bf16 to vector<8x31xbf16>
    %4 = tpu.concatenate %1, %3 in 1 : vector<8x961xbf16>, vector<8x31xbf16> -> vector<8x992xbf16>
    %c0_4 = arith.constant 0 : index
    %c0_5 = arith.constant 0 : index
    %5 = vector.load %arg3[%c0_4, %c0_5] : memref<8x8xbf16, #tpu.memory_space<vmem>>, vector<8x8xbf16>
    %c0_6 = arith.constant 0 : index
    %c0_7 = arith.constant 0 : index
    %6 = vector.load %arg4[%c0_6, %c0_7] : memref<8x1xf32, #tpu.memory_space<vmem>>, vector<8x1xf32>
    %7 = vector.extract_strided_slice %4 {offsets = [0, 0], sizes = [8, 961], strides = [1, 1]} : vector<8x992xbf16> to vector<8x961xbf16>
    %cst_8 = arith.constant dense<0.000000e+00> : vector<8x961xf32>
    %8 = tpu.matmul %5, %7, %cst_8 {dimension_numbers = #tpu.dot_dimension_numbers<[1], [0], [0], [1], [0, 0, 1, 1], [], []>} : vector<8x8xbf16>, vector<8x961xbf16>, vector<8x961xf32> -> vector<8x961xf32>
    %9 = vector.broadcast %6 : vector<8x1xf32> to vector<8x961xf32>
    %10 = arith.addf %8, %9 : vector<8x961xf32>
    %c31_i32 = arith.constant 31 : i32
    %11 = vector.broadcast %c31_i32 : i32 to vector<1x961xi32>
    %12 = arith.cmpi slt, %2, %11 : vector<1x961xi32>
    %cst_9 = arith.constant 0.000000e+00 : f32
    %13 = vector.shape_cast %12 : vector<1x961xi1> to vector<1x961xi1>
    %14 = vector.broadcast %13 : vector<1x961xi1> to vector<8x961xi1>
    %15 = vector.broadcast %cst_9 : f32 to vector<8x961xf32>
    %16 = arith.select %14, %10, %15 : vector<8x961xi1>, vector<8x961xf32>
    %17 = arith.truncf %16 : vector<8x961xf32> to vector<8x961xbf16>
    %cst_10 = arith.constant 0.000000e+00 : bf16
    %18 = vector.broadcast %cst_10 : bf16 to vector<8x31xbf16>
    %19 = tpu.concatenate %17, %18 in 1 : vector<8x961xbf16>, vector<8x31xbf16> -> vector<8x992xbf16>
    %c0_11 = arith.constant 0 : index
    %c0_12 = arith.constant 0 : index
    %20 = vector.load %arg5[%c0_11, %c0_12] : memref<8x72xbf16, #tpu.memory_space<vmem>>, vector<8x72xbf16>
    %c0_13 = arith.constant 0 : index
    %c0_14 = arith.constant 0 : index
    %21 = vector.load %arg6[%c0_13, %c0_14] : memref<8x3xf32, #tpu.memory_space<vmem>>, vector<8x3xf32>
    %22 = vector.extract_strided_slice %19 {offsets = [0, 0], sizes = [8, 899], strides = [1, 1]} : vector<8x992xbf16> to vector<8x899xbf16>
    %23 = vector.extract_strided_slice %19 {offsets = [0, 1], sizes = [8, 899], strides = [1, 1]} : vector<8x992xbf16> to vector<8x899xbf16>
    %24 = vector.extract_strided_slice %19 {offsets = [0, 2], sizes = [8, 899], strides = [1, 1]} : vector<8x992xbf16> to vector<8x899xbf16>
    %25 = vector.extract_strided_slice %19 {offsets = [0, 31], sizes = [8, 899], strides = [1, 1]} : vector<8x992xbf16> to vector<8x899xbf16>
    %26 = vector.extract_strided_slice %19 {offsets = [0, 32], sizes = [8, 899], strides = [1, 1]} : vector<8x992xbf16> to vector<8x899xbf16>
    %27 = vector.extract_strided_slice %19 {offsets = [0, 33], sizes = [8, 899], strides = [1, 1]} : vector<8x992xbf16> to vector<8x899xbf16>
    %28 = vector.extract_strided_slice %19 {offsets = [0, 62], sizes = [8, 899], strides = [1, 1]} : vector<8x992xbf16> to vector<8x899xbf16>
    %29 = vector.extract_strided_slice %19 {offsets = [0, 63], sizes = [8, 899], strides = [1, 1]} : vector<8x992xbf16> to vector<8x899xbf16>
    %30 = vector.extract_strided_slice %19 {offsets = [0, 64], sizes = [8, 899], strides = [1, 1]} : vector<8x992xbf16> to vector<8x899xbf16>
    %31 = tpu.concatenate %22, %23, %24, %25, %26, %27, %28, %29, %30 in 0 : vector<8x899xbf16>, vector<8x899xbf16>, vector<8x899xbf16>, vector<8x899xbf16>, vector<8x899xbf16>, vector<8x899xbf16>, vector<8x899xbf16>, vector<8x899xbf16>, vector<8x899xbf16> -> vector<72x899xbf16>
    %cst_15 = arith.constant dense<0.000000e+00> : vector<8x899xf32>
    %32 = tpu.matmul %20, %31, %cst_15 {dimension_numbers = #tpu.dot_dimension_numbers<[1], [0], [0], [1], [0, 0, 1, 1], [], []>} : vector<8x72xbf16>, vector<72x899xbf16>, vector<8x899xf32> -> vector<8x899xf32>
    %33 = vector.extract_strided_slice %21 {offsets = [0, 0], sizes = [8, 1], strides = [1, 1]} : vector<8x3xf32> to vector<8x1xf32>
    %34 = vector.broadcast %33 : vector<8x1xf32> to vector<8x899xf32>
    %35 = arith.addf %32, %34 : vector<8x899xf32>
    %36 = vector.extract_strided_slice %2 {offsets = [0, 0], sizes = [1, 899], strides = [1, 1]} : vector<1x961xi32> to vector<1x899xi32>
    %c29_i32 = arith.constant 29 : i32
    %37 = vector.broadcast %c29_i32 : i32 to vector<1x899xi32>
    %38 = arith.cmpi slt, %36, %37 : vector<1x899xi32>
    %cst_16 = arith.constant 0.000000e+00 : f32
    %39 = vector.shape_cast %38 : vector<1x899xi1> to vector<1x899xi1>
    %40 = vector.broadcast %39 : vector<1x899xi1> to vector<8x899xi1>
    %41 = vector.broadcast %cst_16 : f32 to vector<8x899xf32>
    %42 = arith.select %40, %35, %41 : vector<8x899xi1>, vector<8x899xf32>
    %cst_17 = arith.constant dense<0.000000e+00> : vector<8xf32>
    %43 = vector.multi_reduction <add>, %42, %cst_17 [1] : vector<8x899xf32> to vector<8xf32>
    %44 = vector.shape_cast %43 : vector<8xf32> to vector<8x1xf32>
    %45 = arith.mulf %42, %42 : vector<8x899xf32>
    %cst_18 = arith.constant dense<0.000000e+00> : vector<8xf32>
    %46 = vector.multi_reduction <add>, %45, %cst_18 [1] : vector<8x899xf32> to vector<8xf32>
    %47 = vector.shape_cast %46 : vector<8xf32> to vector<8x1xf32>
    %48 = tpu.concatenate %44, %47 in 1 : vector<8x1xf32>, vector<8x1xf32> -> vector<8x2xf32>
    %cst_19 = arith.constant dense<0.000000e+00> : vector<2xf32>
    %49 = vector.multi_reduction <add>, %48, %cst_19 [0] : vector<8x2xf32> to vector<2xf32>
    %50 = vector.shape_cast %49 : vector<2xf32> to vector<1x2xf32>
    %51 = vector.shape_cast %50 : vector<1x2xf32> to vector<1x2xf32>
    %52 = vector.broadcast %51 : vector<1x2xf32> to vector<8x2xf32>
    %53 = vector.extract_strided_slice %52 {offsets = [0, 0], sizes = [8, 1], strides = [1, 1]} : vector<8x2xf32> to vector<8x1xf32>
    %cst_20 = arith.constant 1.48632578E-4 : f32
    %54 = vector.broadcast %cst_20 : f32 to vector<8x1xf32>
    %55 = arith.mulf %53, %54 : vector<8x1xf32>
    %56 = vector.extract_strided_slice %52 {offsets = [0, 1], sizes = [8, 1], strides = [1, 1]} : vector<8x2xf32> to vector<8x1xf32>
    %cst_21 = arith.constant 1.48632578E-4 : f32
    %57 = vector.broadcast %cst_21 : f32 to vector<8x1xf32>
    %58 = arith.mulf %56, %57 : vector<8x1xf32>
    %59 = arith.mulf %55, %55 : vector<8x1xf32>
    %60 = arith.subf %58, %59 : vector<8x1xf32>
    %cst_22 = arith.constant 0.000000e+00 : f32
    %61 = vector.broadcast %cst_22 : f32 to vector<8x1xf32>
    %62 = arith.maximumf %60, %61 : vector<8x1xf32>
    %63 = vector.broadcast %55 : vector<8x1xf32> to vector<8x899xf32>
    %64 = arith.subf %35, %63 : vector<8x899xf32>
    %cst_23 = arith.constant 9.99999974E-6 : f32
    %65 = vector.broadcast %cst_23 : f32 to vector<8x1xf32>
    %66 = arith.addf %62, %65 : vector<8x1xf32>
    %67 = math.rsqrt %66 : vector<8x1xf32>
    %68 = vector.broadcast %67 : vector<8x1xf32> to vector<8x899xf32>
    %69 = arith.mulf %64, %68 : vector<8x899xf32>
    %70 = vector.extract_strided_slice %21 {offsets = [0, 1], sizes = [8, 1], strides = [1, 1]} : vector<8x3xf32> to vector<8x1xf32>
    %71 = vector.broadcast %70 : vector<8x1xf32> to vector<8x899xf32>
    %72 = arith.mulf %69, %71 : vector<8x899xf32>
    %73 = vector.extract_strided_slice %21 {offsets = [0, 2], sizes = [8, 1], strides = [1, 1]} : vector<8x3xf32> to vector<8x1xf32>
    %74 = vector.broadcast %73 : vector<8x1xf32> to vector<8x899xf32>
    %75 = arith.addf %72, %74 : vector<8x899xf32>
    %76 = arith.negf %75 : vector<8x899xf32>
    %77 = math.exp %76 : vector<8x899xf32>
    %cst_24 = arith.constant 1.000000e+00 : f32
    %78 = vector.broadcast %cst_24 : f32 to vector<8x899xf32>
    %79 = arith.addf %78, %77 : vector<8x899xf32>
    %80 = arith.divf %78, %79 : vector<8x899xf32>
    %81 = arith.mulf %75, %80 : vector<8x899xf32>
    %cst_25 = arith.constant 0.000000e+00 : f32
    %82 = vector.shape_cast %38 : vector<1x899xi1> to vector<1x899xi1>
    %83 = vector.broadcast %82 : vector<1x899xi1> to vector<8x899xi1>
    %84 = vector.broadcast %cst_25 : f32 to vector<8x899xf32>
    %85 = arith.select %83, %81, %84 : vector<8x899xi1>, vector<8x899xf32>
    %86 = arith.truncf %85 : vector<8x899xf32> to vector<8x899xbf16>
    %cst_26 = arith.constant 0.000000e+00 : bf16
    %87 = vector.broadcast %cst_26 : bf16 to vector<8x31xbf16>
    %88 = tpu.concatenate %86, %87 in 1 : vector<8x899xbf16>, vector<8x31xbf16> -> vector<8x930xbf16>
    %c0_27 = arith.constant 0 : index
    %c0_28 = arith.constant 0 : index
    %89 = vector.load %arg7[%c0_27, %c0_28] : memref<8x72xbf16, #tpu.memory_space<vmem>>, vector<8x72xbf16>
    %c0_29 = arith.constant 0 : index
    %c0_30 = arith.constant 0 : index
    %90 = vector.load %arg8[%c0_29, %c0_30] : memref<8x3xf32, #tpu.memory_space<vmem>>, vector<8x3xf32>
    %91 = vector.extract_strided_slice %88 {offsets = [0, 0], sizes = [8, 837], strides = [1, 1]} : vector<8x930xbf16> to vector<8x837xbf16>
    %92 = vector.extract_strided_slice %88 {offsets = [0, 1], sizes = [8, 837], strides = [1, 1]} : vector<8x930xbf16> to vector<8x837xbf16>
    %93 = vector.extract_strided_slice %88 {offsets = [0, 2], sizes = [8, 837], strides = [1, 1]} : vector<8x930xbf16> to vector<8x837xbf16>
    %94 = vector.extract_strided_slice %88 {offsets = [0, 31], sizes = [8, 837], strides = [1, 1]} : vector<8x930xbf16> to vector<8x837xbf16>
    %95 = vector.extract_strided_slice %88 {offsets = [0, 32], sizes = [8, 837], strides = [1, 1]} : vector<8x930xbf16> to vector<8x837xbf16>
    %96 = vector.extract_strided_slice %88 {offsets = [0, 33], sizes = [8, 837], strides = [1, 1]} : vector<8x930xbf16> to vector<8x837xbf16>
    %97 = vector.extract_strided_slice %88 {offsets = [0, 62], sizes = [8, 837], strides = [1, 1]} : vector<8x930xbf16> to vector<8x837xbf16>
    %98 = vector.extract_strided_slice %88 {offsets = [0, 63], sizes = [8, 837], strides = [1, 1]} : vector<8x930xbf16> to vector<8x837xbf16>
    %99 = vector.extract_strided_slice %88 {offsets = [0, 64], sizes = [8, 837], strides = [1, 1]} : vector<8x930xbf16> to vector<8x837xbf16>
    %100 = tpu.concatenate %91, %92, %93, %94, %95, %96, %97, %98, %99 in 0 : vector<8x837xbf16>, vector<8x837xbf16>, vector<8x837xbf16>, vector<8x837xbf16>, vector<8x837xbf16>, vector<8x837xbf16>, vector<8x837xbf16>, vector<8x837xbf16>, vector<8x837xbf16> -> vector<72x837xbf16>
    %cst_31 = arith.constant dense<0.000000e+00> : vector<8x837xf32>
    %101 = tpu.matmul %89, %100, %cst_31 {dimension_numbers = #tpu.dot_dimension_numbers<[1], [0], [0], [1], [0, 0, 1, 1], [], []>} : vector<8x72xbf16>, vector<72x837xbf16>, vector<8x837xf32> -> vector<8x837xf32>
    %102 = vector.extract_strided_slice %90 {offsets = [0, 0], sizes = [8, 1], strides = [1, 1]} : vector<8x3xf32> to vector<8x1xf32>
    %103 = vector.broadcast %102 : vector<8x1xf32> to vector<8x837xf32>
    %104 = arith.addf %101, %103 : vector<8x837xf32>
    %105 = vector.extract_strided_slice %2 {offsets = [0, 0], sizes = [1, 837], strides = [1, 1]} : vector<1x961xi32> to vector<1x837xi32>
    %c27_i32 = arith.constant 27 : i32
    %106 = vector.broadcast %c27_i32 : i32 to vector<1x837xi32>
    %107 = arith.cmpi slt, %105, %106 : vector<1x837xi32>
    %cst_32 = arith.constant 0.000000e+00 : f32
    %108 = vector.shape_cast %107 : vector<1x837xi1> to vector<1x837xi1>
    %109 = vector.broadcast %108 : vector<1x837xi1> to vector<8x837xi1>
    %110 = vector.broadcast %cst_32 : f32 to vector<8x837xf32>
    %111 = arith.select %109, %104, %110 : vector<8x837xi1>, vector<8x837xf32>
    %cst_33 = arith.constant dense<0.000000e+00> : vector<8xf32>
    %112 = vector.multi_reduction <add>, %111, %cst_33 [1] : vector<8x837xf32> to vector<8xf32>
    %113 = vector.shape_cast %112 : vector<8xf32> to vector<8x1xf32>
    %114 = arith.mulf %111, %111 : vector<8x837xf32>
    %cst_34 = arith.constant dense<0.000000e+00> : vector<8xf32>
    %115 = vector.multi_reduction <add>, %114, %cst_34 [1] : vector<8x837xf32> to vector<8xf32>
    %116 = vector.shape_cast %115 : vector<8xf32> to vector<8x1xf32>
    %117 = tpu.concatenate %113, %116 in 1 : vector<8x1xf32>, vector<8x1xf32> -> vector<8x2xf32>
    %cst_35 = arith.constant dense<0.000000e+00> : vector<2xf32>
    %118 = vector.multi_reduction <add>, %117, %cst_35 [0] : vector<8x2xf32> to vector<2xf32>
    %119 = vector.shape_cast %118 : vector<2xf32> to vector<1x2xf32>
    %120 = vector.shape_cast %119 : vector<1x2xf32> to vector<1x2xf32>
    %121 = vector.broadcast %120 : vector<1x2xf32> to vector<8x2xf32>
    %122 = vector.extract_strided_slice %121 {offsets = [0, 0], sizes = [8, 1], strides = [1, 1]} : vector<8x2xf32> to vector<8x1xf32>
    %cst_36 = arith.constant 1.71467764E-4 : f32
    %123 = vector.broadcast %cst_36 : f32 to vector<8x1xf32>
    %124 = arith.mulf %122, %123 : vector<8x1xf32>
    %125 = vector.extract_strided_slice %121 {offsets = [0, 1], sizes = [8, 1], strides = [1, 1]} : vector<8x2xf32> to vector<8x1xf32>
    %cst_37 = arith.constant 1.71467764E-4 : f32
    %126 = vector.broadcast %cst_37 : f32 to vector<8x1xf32>
    %127 = arith.mulf %125, %126 : vector<8x1xf32>
    %128 = arith.mulf %124, %124 : vector<8x1xf32>
    %129 = arith.subf %127, %128 : vector<8x1xf32>
    %cst_38 = arith.constant 0.000000e+00 : f32
    %130 = vector.broadcast %cst_38 : f32 to vector<8x1xf32>
    %131 = arith.maximumf %129, %130 : vector<8x1xf32>
    %132 = vector.broadcast %124 : vector<8x1xf32> to vector<8x837xf32>
    %133 = arith.subf %104, %132 : vector<8x837xf32>
    %cst_39 = arith.constant 9.99999974E-6 : f32
    %134 = vector.broadcast %cst_39 : f32 to vector<8x1xf32>
    %135 = arith.addf %131, %134 : vector<8x1xf32>
    %136 = math.rsqrt %135 : vector<8x1xf32>
    %137 = vector.broadcast %136 : vector<8x1xf32> to vector<8x837xf32>
    %138 = arith.mulf %133, %137 : vector<8x837xf32>
    %139 = vector.extract_strided_slice %90 {offsets = [0, 1], sizes = [8, 1], strides = [1, 1]} : vector<8x3xf32> to vector<8x1xf32>
    %140 = vector.broadcast %139 : vector<8x1xf32> to vector<8x837xf32>
    %141 = arith.mulf %138, %140 : vector<8x837xf32>
    %142 = vector.extract_strided_slice %90 {offsets = [0, 2], sizes = [8, 1], strides = [1, 1]} : vector<8x3xf32> to vector<8x1xf32>
    %143 = vector.broadcast %142 : vector<8x1xf32> to vector<8x837xf32>
    %144 = arith.addf %141, %143 : vector<8x837xf32>
    %145 = arith.negf %144 : vector<8x837xf32>
    %146 = math.exp %145 : vector<8x837xf32>
    %cst_40 = arith.constant 1.000000e+00 : f32
    %147 = vector.broadcast %cst_40 : f32 to vector<8x837xf32>
    %148 = arith.addf %147, %146 : vector<8x837xf32>
    %149 = arith.divf %147, %148 : vector<8x837xf32>
    %150 = arith.mulf %144, %149 : vector<8x837xf32>
    %cst_41 = arith.constant 0.000000e+00 : f32
    %151 = vector.shape_cast %107 : vector<1x837xi1> to vector<1x837xi1>
    %152 = vector.broadcast %151 : vector<1x837xi1> to vector<8x837xi1>
    %153 = vector.broadcast %cst_41 : f32 to vector<8x837xf32>
    %154 = arith.select %152, %150, %153 : vector<8x837xi1>, vector<8x837xf32>
    %155 = arith.truncf %154 : vector<8x837xf32> to vector<8x837xbf16>
    %c0_42 = arith.constant 0 : index
    %c0_43 = arith.constant 0 : index
    %c0_44 = arith.constant 0 : index
    %156 = vector.load %arg9[%c0_42, %c0_43, %c0_44] : memref<1x8x837xbf16, #tpu.memory_space<vmem>>, vector<1x8x837xbf16>
    %157 = vector.shape_cast %156 : vector<1x8x837xbf16> to vector<8x837xbf16>
    %158 = vector.shape_cast %155 : vector<8x837xbf16> to vector<1x8x837xbf16>
    tpu.vector_store %arg9[%c0_42, %c0_43, %c0_44], %158 {strides = array<i32>} : memref<1x8x837xbf16, #tpu.memory_space<vmem>>, vector<1x8x837xbf16>,
    return
  }
  func.func @transform_0(%arg0: i32) -> (i32, i32, i32) {
    %c0_i32 = arith.constant 0 : i32
    %c0_i32_0 = arith.constant 0 : i32
    %c0_i32_1 = arith.constant 0 : i32
    return %arg0, %c0_i32, %c0_i32_0 : i32, i32, i32
  }
  func.func @transform_1(%arg0: i32) -> (i32, i32) {
    %c0_i32 = arith.constant 0 : i32
    %c0_i32_0 = arith.constant 0 : i32
    %c0_i32_1 = arith.constant 0 : i32
    return %c0_i32, %c0_i32_0 : i32, i32
  }
  func.func @transform_2(%arg0: i32) -> (i32, i32) {
    %c0_i32 = arith.constant 0 : i32
    %c0_i32_0 = arith.constant 0 : i32
    %c0_i32_1 = arith.constant 0 : i32
    return %c0_i32, %c0_i32_0 : i32, i32
  }
  func.func @transform_3(%arg0: i32) -> (i32, i32) {
    %c0_i32 = arith.constant 0 : i32
    %c0_i32_0 = arith.constant 0 : i32
    %c0_i32_1 = arith.constant 0 : i32
    return %c0_i32, %c0_i32_0 : i32, i32
  }
  func.func @transform_4(%arg0: i32) -> (i32, i32) {
    %c0_i32 = arith.constant 0 : i32
    %c0_i32_0 = arith.constant 0 : i32
    %c0_i32_1 = arith.constant 0 : i32
    return %c0_i32, %c0_i32_0 : i32, i32
  }
  func.func @transform_5(%arg0: i32) -> (i32, i32) {
    %c0_i32 = arith.constant 0 : i32
    %c0_i32_0 = arith.constant 0 : i32
    %c0_i32_1 = arith.constant 0 : i32
    return %c0_i32, %c0_i32_0 : i32, i32
  }
  func.func @transform_6(%arg0: i32) -> (i32, i32) {
    %c0_i32 = arith.constant 0 : i32
    %c0_i32_0 = arith.constant 0 : i32
    %c0_i32_1 = arith.constant 0 : i32
    return %c0_i32, %c0_i32_0 : i32, i32
  }
  func.func @transform_7(%arg0: i32) -> (i32, i32) {
    %c0_i32 = arith.constant 0 : i32
    %c0_i32_0 = arith.constant 0 : i32
    %c0_i32_1 = arith.constant 0 : i32
    return %c0_i32, %c0_i32_0 : i32, i32
  }
  func.func @transform_8(%arg0: i32) -> (i32, i32, i32) {
    %c0_i32 = arith.constant 0 : i32
    %c0_i32_0 = arith.constant 0 : i32
    %c0_i32_1 = arith.constant 0 : i32
    return %arg0, %c0_i32, %c0_i32_0 : i32, i32, i32
  }
}

module attributes {stable_mosaic.version = 11 : i64} {
  func.func @_chain_kernel(%arg0: i32, %arg1: memref<1x32x196xbf16, #tpu.memory_space<vmem>>, %arg2: memref<1x196xi32, #tpu.memory_space<vmem>>, %arg3: memref<8x128xbf16, #tpu.memory_space<vmem>>, %arg4: memref<8x1xf32, #tpu.memory_space<vmem>>, %arg5: memref<16x72xbf16, #tpu.memory_space<vmem>>, %arg6: memref<16x3xf32, #tpu.memory_space<vmem>>, %arg7: memref<16x144xbf16, #tpu.memory_space<vmem>>, %arg8: memref<16x3xf32, #tpu.memory_space<vmem>>, %arg9: memref<16x144xbf16, #tpu.memory_space<vmem>>, %arg10: memref<16x3xf32, #tpu.memory_space<vmem>>, %arg11: memref<8x144xbf16, #tpu.memory_space<vmem>>, %arg12: memref<8x3xf32, #tpu.memory_space<vmem>>, %arg13: memref<1x8x70xbf16, #tpu.memory_space<vmem>>) attributes {dimension_semantics = [#tpu.dimension_semantics<parallel>], iteration_bounds = array<i64: 2>, scalar_prefetch = 0 : i64, scratch_operands = 0 : i64, tpu.core_type = #tpu.core_type<tc>, window_params = [{transform_indices = @transform_0, window_bounds = array<i64: 1, 32, 196>}, {pipeline_mode = #tpu.pipeline_mode<synchronous>, transform_indices = @transform_1, window_bounds = array<i64: 1, 196>}, {pipeline_mode = #tpu.pipeline_mode<synchronous>, transform_indices = @transform_2, window_bounds = array<i64: 8, 128>}, {pipeline_mode = #tpu.pipeline_mode<synchronous>, transform_indices = @transform_3, window_bounds = array<i64: 8, 1>}, {pipeline_mode = #tpu.pipeline_mode<synchronous>, transform_indices = @transform_4, window_bounds = array<i64: 16, 72>}, {pipeline_mode = #tpu.pipeline_mode<synchronous>, transform_indices = @transform_5, window_bounds = array<i64: 16, 3>}, {pipeline_mode = #tpu.pipeline_mode<synchronous>, transform_indices = @transform_6, window_bounds = array<i64: 16, 144>}, {pipeline_mode = #tpu.pipeline_mode<synchronous>, transform_indices = @transform_7, window_bounds = array<i64: 16, 3>}, {pipeline_mode = #tpu.pipeline_mode<synchronous>, transform_indices = @transform_8, window_bounds = array<i64: 16, 144>}, {pipeline_mode = #tpu.pipeline_mode<synchronous>, transform_indices = @transform_9, window_bounds = array<i64: 16, 3>}, {pipeline_mode = #tpu.pipeline_mode<synchronous>, transform_indices = @transform_10, window_bounds = array<i64: 8, 144>}, {pipeline_mode = #tpu.pipeline_mode<synchronous>, transform_indices = @transform_11, window_bounds = array<i64: 8, 3>}, {transform_indices = @transform_12, window_bounds = array<i64: 1, 8, 70>}]} {
    %c0 = arith.constant 0 : index
    %c0_0 = arith.constant 0 : index
    %c0_1 = arith.constant 0 : index
    %0 = vector.load %arg1[%c0, %c0_0, %c0_1] : memref<1x32x196xbf16, #tpu.memory_space<vmem>>, vector<1x32x196xbf16>
    %1 = vector.shape_cast %0 : vector<1x32x196xbf16> to vector<32x196xbf16>
    %c0_2 = arith.constant 0 : index
    %c0_3 = arith.constant 0 : index
    %2 = vector.load %arg2[%c0_2, %c0_3] : memref<1x196xi32, #tpu.memory_space<vmem>>, vector<1x196xi32>
    %cst = arith.constant 0.000000e+00 : bf16
    %3 = vector.broadcast %cst : bf16 to vector<32x14xbf16>
    %4 = tpu.concatenate %1, %3 in 1 : vector<32x196xbf16>, vector<32x14xbf16> -> vector<32x210xbf16>
    %c0_4 = arith.constant 0 : index
    %c0_5 = arith.constant 0 : index
    %5 = vector.load %arg3[%c0_4, %c0_5] : memref<8x128xbf16, #tpu.memory_space<vmem>>, vector<8x128xbf16>
    %c0_6 = arith.constant 0 : index
    %c0_7 = arith.constant 0 : index
    %6 = vector.load %arg4[%c0_6, %c0_7] : memref<8x1xf32, #tpu.memory_space<vmem>>, vector<8x1xf32>
    %7 = vector.extract_strided_slice %4 {offsets = [0, 0], sizes = [32, 182], strides = [1, 1]} : vector<32x210xbf16> to vector<32x182xbf16>
    %8 = vector.extract_strided_slice %4 {offsets = [0, 1], sizes = [32, 182], strides = [1, 1]} : vector<32x210xbf16> to vector<32x182xbf16>
    %9 = vector.extract_strided_slice %4 {offsets = [0, 14], sizes = [32, 182], strides = [1, 1]} : vector<32x210xbf16> to vector<32x182xbf16>
    %10 = vector.extract_strided_slice %4 {offsets = [0, 15], sizes = [32, 182], strides = [1, 1]} : vector<32x210xbf16> to vector<32x182xbf16>
    %11 = tpu.concatenate %7, %8, %9, %10 in 0 : vector<32x182xbf16>, vector<32x182xbf16>, vector<32x182xbf16>, vector<32x182xbf16> -> vector<128x182xbf16>
    %cst_8 = arith.constant dense<0.000000e+00> : vector<8x182xf32>
    %12 = tpu.matmul %5, %11, %cst_8 {dimension_numbers = #tpu.dot_dimension_numbers<[1], [0], [0], [1], [0, 0, 1, 1], [], []>} : vector<8x128xbf16>, vector<128x182xbf16>, vector<8x182xf32> -> vector<8x182xf32>
    %13 = vector.broadcast %6 : vector<8x1xf32> to vector<8x182xf32>
    %14 = arith.addf %12, %13 : vector<8x182xf32>
    %15 = vector.extract_strided_slice %2 {offsets = [0, 0], sizes = [1, 182], strides = [1, 1]} : vector<1x196xi32> to vector<1x182xi32>
    %c13_i32 = arith.constant 13 : i32
    %16 = vector.broadcast %c13_i32 : i32 to vector<1x182xi32>
    %17 = arith.cmpi slt, %15, %16 : vector<1x182xi32>
    %cst_9 = arith.constant 0.000000e+00 : f32
    %18 = vector.shape_cast %17 : vector<1x182xi1> to vector<1x182xi1>
    %19 = vector.broadcast %18 : vector<1x182xi1> to vector<8x182xi1>
    %20 = vector.broadcast %cst_9 : f32 to vector<8x182xf32>
    %21 = arith.select %19, %14, %20 : vector<8x182xi1>, vector<8x182xf32>
    %22 = arith.truncf %21 : vector<8x182xf32> to vector<8x182xbf16>
    %cst_10 = arith.constant 0.000000e+00 : bf16
    %23 = vector.broadcast %cst_10 : bf16 to vector<8x14xbf16>
    %24 = tpu.concatenate %22, %23 in 1 : vector<8x182xbf16>, vector<8x14xbf16> -> vector<8x196xbf16>
    %c0_11 = arith.constant 0 : index
    %c0_12 = arith.constant 0 : index
    %25 = vector.load %arg5[%c0_11, %c0_12] : memref<16x72xbf16, #tpu.memory_space<vmem>>, vector<16x72xbf16>
    %c0_13 = arith.constant 0 : index
    %c0_14 = arith.constant 0 : index
    %26 = vector.load %arg6[%c0_13, %c0_14] : memref<16x3xf32, #tpu.memory_space<vmem>>, vector<16x3xf32>
    %27 = vector.extract_strided_slice %24 {offsets = [0, 0], sizes = [8, 154], strides = [1, 1]} : vector<8x196xbf16> to vector<8x154xbf16>
    %28 = vector.extract_strided_slice %24 {offsets = [0, 1], sizes = [8, 154], strides = [1, 1]} : vector<8x196xbf16> to vector<8x154xbf16>
    %29 = vector.extract_strided_slice %24 {offsets = [0, 2], sizes = [8, 154], strides = [1, 1]} : vector<8x196xbf16> to vector<8x154xbf16>
    %30 = vector.extract_strided_slice %24 {offsets = [0, 14], sizes = [8, 154], strides = [1, 1]} : vector<8x196xbf16> to vector<8x154xbf16>
    %31 = vector.extract_strided_slice %24 {offsets = [0, 15], sizes = [8, 154], strides = [1, 1]} : vector<8x196xbf16> to vector<8x154xbf16>
    %32 = vector.extract_strided_slice %24 {offsets = [0, 16], sizes = [8, 154], strides = [1, 1]} : vector<8x196xbf16> to vector<8x154xbf16>
    %33 = vector.extract_strided_slice %24 {offsets = [0, 28], sizes = [8, 154], strides = [1, 1]} : vector<8x196xbf16> to vector<8x154xbf16>
    %34 = vector.extract_strided_slice %24 {offsets = [0, 29], sizes = [8, 154], strides = [1, 1]} : vector<8x196xbf16> to vector<8x154xbf16>
    %35 = vector.extract_strided_slice %24 {offsets = [0, 30], sizes = [8, 154], strides = [1, 1]} : vector<8x196xbf16> to vector<8x154xbf16>
    %36 = tpu.concatenate %27, %28, %29, %30, %31, %32, %33, %34, %35 in 0 : vector<8x154xbf16>, vector<8x154xbf16>, vector<8x154xbf16>, vector<8x154xbf16>, vector<8x154xbf16>, vector<8x154xbf16>, vector<8x154xbf16>, vector<8x154xbf16>, vector<8x154xbf16> -> vector<72x154xbf16>
    %cst_15 = arith.constant dense<0.000000e+00> : vector<16x154xf32>
    %37 = tpu.matmul %25, %36, %cst_15 {dimension_numbers = #tpu.dot_dimension_numbers<[1], [0], [0], [1], [0, 0, 1, 1], [], []>} : vector<16x72xbf16>, vector<72x154xbf16>, vector<16x154xf32> -> vector<16x154xf32>
    %38 = vector.extract_strided_slice %26 {offsets = [0, 0], sizes = [16, 1], strides = [1, 1]} : vector<16x3xf32> to vector<16x1xf32>
    %39 = vector.broadcast %38 : vector<16x1xf32> to vector<16x154xf32>
    %40 = arith.addf %37, %39 : vector<16x154xf32>
    %41 = vector.extract_strided_slice %2 {offsets = [0, 0], sizes = [1, 154], strides = [1, 1]} : vector<1x196xi32> to vector<1x154xi32>
    %c11_i32 = arith.constant 11 : i32
    %42 = vector.broadcast %c11_i32 : i32 to vector<1x154xi32>
    %43 = arith.cmpi slt, %41, %42 : vector<1x154xi32>
    %cst_16 = arith.constant 0.000000e+00 : f32
    %44 = vector.shape_cast %43 : vector<1x154xi1> to vector<1x154xi1>
    %45 = vector.broadcast %44 : vector<1x154xi1> to vector<16x154xi1>
    %46 = vector.broadcast %cst_16 : f32 to vector<16x154xf32>
    %47 = arith.select %45, %40, %46 : vector<16x154xi1>, vector<16x154xf32>
    %cst_17 = arith.constant dense<0.000000e+00> : vector<16xf32>
    %48 = vector.multi_reduction <add>, %47, %cst_17 [1] : vector<16x154xf32> to vector<16xf32>
    %49 = vector.shape_cast %48 : vector<16xf32> to vector<16x1xf32>
    %50 = arith.mulf %47, %47 : vector<16x154xf32>
    %cst_18 = arith.constant dense<0.000000e+00> : vector<16xf32>
    %51 = vector.multi_reduction <add>, %50, %cst_18 [1] : vector<16x154xf32> to vector<16xf32>
    %52 = vector.shape_cast %51 : vector<16xf32> to vector<16x1xf32>
    %53 = tpu.concatenate %49, %52 in 1 : vector<16x1xf32>, vector<16x1xf32> -> vector<16x2xf32>
    %54 = vector.extract_strided_slice %53 {offsets = [0, 0], sizes = [8, 2], strides = [1, 1]} : vector<16x2xf32> to vector<8x2xf32>
    %cst_19 = arith.constant dense<0.000000e+00> : vector<2xf32>
    %55 = vector.multi_reduction <add>, %54, %cst_19 [0] : vector<8x2xf32> to vector<2xf32>
    %56 = vector.shape_cast %55 : vector<2xf32> to vector<1x2xf32>
    %57 = vector.shape_cast %56 : vector<1x2xf32> to vector<1x2xf32>
    %58 = vector.broadcast %57 : vector<1x2xf32> to vector<8x2xf32>
    %59 = vector.extract_strided_slice %53 {offsets = [8, 0], sizes = [8, 2], strides = [1, 1]} : vector<16x2xf32> to vector<8x2xf32>
    %cst_20 = arith.constant dense<0.000000e+00> : vector<2xf32>
    %60 = vector.multi_reduction <add>, %59, %cst_20 [0] : vector<8x2xf32> to vector<2xf32>
    %61 = vector.shape_cast %60 : vector<2xf32> to vector<1x2xf32>
    %62 = vector.shape_cast %61 : vector<1x2xf32> to vector<1x2xf32>
    %63 = vector.broadcast %62 : vector<1x2xf32> to vector<8x2xf32>
    %64 = tpu.concatenate %58, %63 in 0 : vector<8x2xf32>, vector<8x2xf32> -> vector<16x2xf32>
    %65 = vector.extract_strided_slice %64 {offsets = [0, 0], sizes = [16, 1], strides = [1, 1]} : vector<16x2xf32> to vector<16x1xf32>
    %cst_21 = arith.constant 0.00103305781 : f32
    %66 = vector.broadcast %cst_21 : f32 to vector<16x1xf32>
    %67 = arith.mulf %65, %66 : vector<16x1xf32>
    %68 = vector.extract_strided_slice %64 {offsets = [0, 1], sizes = [16, 1], strides = [1, 1]} : vector<16x2xf32> to vector<16x1xf32>
    %cst_22 = arith.constant 0.00103305781 : f32
    %69 = vector.broadcast %cst_22 : f32 to vector<16x1xf32>
    %70 = arith.mulf %68, %69 : vector<16x1xf32>
    %71 = arith.mulf %67, %67 : vector<16x1xf32>
    %72 = arith.subf %70, %71 : vector<16x1xf32>
    %cst_23 = arith.constant 0.000000e+00 : f32
    %73 = vector.broadcast %cst_23 : f32 to vector<16x1xf32>
    %74 = arith.maximumf %72, %73 : vector<16x1xf32>
    %75 = vector.broadcast %67 : vector<16x1xf32> to vector<16x154xf32>
    %76 = arith.subf %40, %75 : vector<16x154xf32>
    %cst_24 = arith.constant 9.99999974E-6 : f32
    %77 = vector.broadcast %cst_24 : f32 to vector<16x1xf32>
    %78 = arith.addf %74, %77 : vector<16x1xf32>
    %79 = math.rsqrt %78 : vector<16x1xf32>
    %80 = vector.broadcast %79 : vector<16x1xf32> to vector<16x154xf32>
    %81 = arith.mulf %76, %80 : vector<16x154xf32>
    %82 = vector.extract_strided_slice %26 {offsets = [0, 1], sizes = [16, 1], strides = [1, 1]} : vector<16x3xf32> to vector<16x1xf32>
    %83 = vector.broadcast %82 : vector<16x1xf32> to vector<16x154xf32>
    %84 = arith.mulf %81, %83 : vector<16x154xf32>
    %85 = vector.extract_strided_slice %26 {offsets = [0, 2], sizes = [16, 1], strides = [1, 1]} : vector<16x3xf32> to vector<16x1xf32>
    %86 = vector.broadcast %85 : vector<16x1xf32> to vector<16x154xf32>
    %87 = arith.addf %84, %86 : vector<16x154xf32>
    %88 = arith.negf %87 : vector<16x154xf32>
    %89 = math.exp %88 : vector<16x154xf32>
    %cst_25 = arith.constant 1.000000e+00 : f32
    %90 = vector.broadcast %cst_25 : f32 to vector<16x154xf32>
    %91 = arith.addf %90, %89 : vector<16x154xf32>
    %92 = arith.divf %90, %91 : vector<16x154xf32>
    %93 = arith.mulf %87, %92 : vector<16x154xf32>
    %cst_26 = arith.constant 0.000000e+00 : f32
    %94 = vector.shape_cast %43 : vector<1x154xi1> to vector<1x154xi1>
    %95 = vector.broadcast %94 : vector<1x154xi1> to vector<16x154xi1>
    %96 = vector.broadcast %cst_26 : f32 to vector<16x154xf32>
    %97 = arith.select %95, %93, %96 : vector<16x154xi1>, vector<16x154xf32>
    %98 = arith.truncf %97 : vector<16x154xf32> to vector<16x154xbf16>
    %cst_27 = arith.constant 0.000000e+00 : bf16
    %99 = vector.broadcast %cst_27 : bf16 to vector<16x14xbf16>
    %100 = tpu.concatenate %98, %99 in 1 : vector<16x154xbf16>, vector<16x14xbf16> -> vector<16x168xbf16>
    %c0_28 = arith.constant 0 : index
    %c0_29 = arith.constant 0 : index
    %101 = vector.load %arg7[%c0_28, %c0_29] : memref<16x144xbf16, #tpu.memory_space<vmem>>, vector<16x144xbf16>
    %c0_30 = arith.constant 0 : index
    %c0_31 = arith.constant 0 : index
    %102 = vector.load %arg8[%c0_30, %c0_31] : memref<16x3xf32, #tpu.memory_space<vmem>>, vector<16x3xf32>
    %103 = vector.extract_strided_slice %100 {offsets = [0, 0], sizes = [16, 126], strides = [1, 1]} : vector<16x168xbf16> to vector<16x126xbf16>
    %104 = vector.extract_strided_slice %100 {offsets = [0, 1], sizes = [16, 126], strides = [1, 1]} : vector<16x168xbf16> to vector<16x126xbf16>
    %105 = vector.extract_strided_slice %100 {offsets = [0, 2], sizes = [16, 126], strides = [1, 1]} : vector<16x168xbf16> to vector<16x126xbf16>
    %106 = vector.extract_strided_slice %100 {offsets = [0, 14], sizes = [16, 126], strides = [1, 1]} : vector<16x168xbf16> to vector<16x126xbf16>
    %107 = vector.extract_strided_slice %100 {offsets = [0, 15], sizes = [16, 126], strides = [1, 1]} : vector<16x168xbf16> to vector<16x126xbf16>
    %108 = vector.extract_strided_slice %100 {offsets = [0, 16], sizes = [16, 126], strides = [1, 1]} : vector<16x168xbf16> to vector<16x126xbf16>
    %109 = vector.extract_strided_slice %100 {offsets = [0, 28], sizes = [16, 126], strides = [1, 1]} : vector<16x168xbf16> to vector<16x126xbf16>
    %110 = vector.extract_strided_slice %100 {offsets = [0, 29], sizes = [16, 126], strides = [1, 1]} : vector<16x168xbf16> to vector<16x126xbf16>
    %111 = vector.extract_strided_slice %100 {offsets = [0, 30], sizes = [16, 126], strides = [1, 1]} : vector<16x168xbf16> to vector<16x126xbf16>
    %112 = tpu.concatenate %103, %104, %105, %106, %107, %108, %109, %110, %111 in 0 : vector<16x126xbf16>, vector<16x126xbf16>, vector<16x126xbf16>, vector<16x126xbf16>, vector<16x126xbf16>, vector<16x126xbf16>, vector<16x126xbf16>, vector<16x126xbf16>, vector<16x126xbf16> -> vector<144x126xbf16>
    %cst_32 = arith.constant dense<0.000000e+00> : vector<16x126xf32>
    %113 = tpu.matmul %101, %112, %cst_32 {dimension_numbers = #tpu.dot_dimension_numbers<[1], [0], [0], [1], [0, 0, 1, 1], [], []>} : vector<16x144xbf16>, vector<144x126xbf16>, vector<16x126xf32> -> vector<16x126xf32>
    %114 = vector.extract_strided_slice %102 {offsets = [0, 0], sizes = [16, 1], strides = [1, 1]} : vector<16x3xf32> to vector<16x1xf32>
    %115 = vector.broadcast %114 : vector<16x1xf32> to vector<16x126xf32>
    %116 = arith.addf %113, %115 : vector<16x126xf32>
    %117 = vector.extract_strided_slice %2 {offsets = [0, 0], sizes = [1, 126], strides = [1, 1]} : vector<1x196xi32> to vector<1x126xi32>
    %c9_i32 = arith.constant 9 : i32
    %118 = vector.broadcast %c9_i32 : i32 to vector<1x126xi32>
    %119 = arith.cmpi slt, %117, %118 : vector<1x126xi32>
    %cst_33 = arith.constant 0.000000e+00 : f32
    %120 = vector.shape_cast %119 : vector<1x126xi1> to vector<1x126xi1>
    %121 = vector.broadcast %120 : vector<1x126xi1> to vector<16x126xi1>
    %122 = vector.broadcast %cst_33 : f32 to vector<16x126xf32>
    %123 = arith.select %121, %116, %122 : vector<16x126xi1>, vector<16x126xf32>
    %cst_34 = arith.constant dense<0.000000e+00> : vector<16xf32>
    %124 = vector.multi_reduction <add>, %123, %cst_34 [1] : vector<16x126xf32> to vector<16xf32>
    %125 = vector.shape_cast %124 : vector<16xf32> to vector<16x1xf32>
    %126 = arith.mulf %123, %123 : vector<16x126xf32>
    %cst_35 = arith.constant dense<0.000000e+00> : vector<16xf32>
    %127 = vector.multi_reduction <add>, %126, %cst_35 [1] : vector<16x126xf32> to vector<16xf32>
    %128 = vector.shape_cast %127 : vector<16xf32> to vector<16x1xf32>
    %129 = tpu.concatenate %125, %128 in 1 : vector<16x1xf32>, vector<16x1xf32> -> vector<16x2xf32>
    %130 = vector.extract_strided_slice %129 {offsets = [0, 0], sizes = [8, 2], strides = [1, 1]} : vector<16x2xf32> to vector<8x2xf32>
    %cst_36 = arith.constant dense<0.000000e+00> : vector<2xf32>
    %131 = vector.multi_reduction <add>, %130, %cst_36 [0] : vector<8x2xf32> to vector<2xf32>
    %132 = vector.shape_cast %131 : vector<2xf32> to vector<1x2xf32>
    %133 = vector.shape_cast %132 : vector<1x2xf32> to vector<1x2xf32>
    %134 = vector.broadcast %133 : vector<1x2xf32> to vector<8x2xf32>
    %135 = vector.extract_strided_slice %129 {offsets = [8, 0], sizes = [8, 2], strides = [1, 1]} : vector<16x2xf32> to vector<8x2xf32>
    %cst_37 = arith.constant dense<0.000000e+00> : vector<2xf32>
    %136 = vector.multi_reduction <add>, %135, %cst_37 [0] : vector<8x2xf32> to vector<2xf32>
    %137 = vector.shape_cast %136 : vector<2xf32> to vector<1x2xf32>
    %138 = vector.shape_cast %137 : vector<1x2xf32> to vector<1x2xf32>
    %139 = vector.broadcast %138 : vector<1x2xf32> to vector<8x2xf32>
    %140 = tpu.concatenate %134, %139 in 0 : vector<8x2xf32>, vector<8x2xf32> -> vector<16x2xf32>
    %141 = vector.extract_strided_slice %140 {offsets = [0, 0], sizes = [16, 1], strides = [1, 1]} : vector<16x2xf32> to vector<16x1xf32>
    %cst_38 = arith.constant 0.00154320989 : f32
    %142 = vector.broadcast %cst_38 : f32 to vector<16x1xf32>
    %143 = arith.mulf %141, %142 : vector<16x1xf32>
    %144 = vector.extract_strided_slice %140 {offsets = [0, 1], sizes = [16, 1], strides = [1, 1]} : vector<16x2xf32> to vector<16x1xf32>
    %cst_39 = arith.constant 0.00154320989 : f32
    %145 = vector.broadcast %cst_39 : f32 to vector<16x1xf32>
    %146 = arith.mulf %144, %145 : vector<16x1xf32>
    %147 = arith.mulf %143, %143 : vector<16x1xf32>
    %148 = arith.subf %146, %147 : vector<16x1xf32>
    %cst_40 = arith.constant 0.000000e+00 : f32
    %149 = vector.broadcast %cst_40 : f32 to vector<16x1xf32>
    %150 = arith.maximumf %148, %149 : vector<16x1xf32>
    %151 = vector.broadcast %143 : vector<16x1xf32> to vector<16x126xf32>
    %152 = arith.subf %116, %151 : vector<16x126xf32>
    %cst_41 = arith.constant 9.99999974E-6 : f32
    %153 = vector.broadcast %cst_41 : f32 to vector<16x1xf32>
    %154 = arith.addf %150, %153 : vector<16x1xf32>
    %155 = math.rsqrt %154 : vector<16x1xf32>
    %156 = vector.broadcast %155 : vector<16x1xf32> to vector<16x126xf32>
    %157 = arith.mulf %152, %156 : vector<16x126xf32>
    %158 = vector.extract_strided_slice %102 {offsets = [0, 1], sizes = [16, 1], strides = [1, 1]} : vector<16x3xf32> to vector<16x1xf32>
    %159 = vector.broadcast %158 : vector<16x1xf32> to vector<16x126xf32>
    %160 = arith.mulf %157, %159 : vector<16x126xf32>
    %161 = vector.extract_strided_slice %102 {offsets = [0, 2], sizes = [16, 1], strides = [1, 1]} : vector<16x3xf32> to vector<16x1xf32>
    %162 = vector.broadcast %161 : vector<16x1xf32> to vector<16x126xf32>
    %163 = arith.addf %160, %162 : vector<16x126xf32>
    %164 = arith.negf %163 : vector<16x126xf32>
    %165 = math.exp %164 : vector<16x126xf32>
    %cst_42 = arith.constant 1.000000e+00 : f32
    %166 = vector.broadcast %cst_42 : f32 to vector<16x126xf32>
    %167 = arith.addf %166, %165 : vector<16x126xf32>
    %168 = arith.divf %166, %167 : vector<16x126xf32>
    %169 = arith.mulf %163, %168 : vector<16x126xf32>
    %cst_43 = arith.constant 0.000000e+00 : f32
    %170 = vector.shape_cast %119 : vector<1x126xi1> to vector<1x126xi1>
    %171 = vector.broadcast %170 : vector<1x126xi1> to vector<16x126xi1>
    %172 = vector.broadcast %cst_43 : f32 to vector<16x126xf32>
    %173 = arith.select %171, %169, %172 : vector<16x126xi1>, vector<16x126xf32>
    %174 = arith.truncf %173 : vector<16x126xf32> to vector<16x126xbf16>
    %cst_44 = arith.constant 0.000000e+00 : bf16
    %175 = vector.broadcast %cst_44 : bf16 to vector<16x14xbf16>
    %176 = tpu.concatenate %174, %175 in 1 : vector<16x126xbf16>, vector<16x14xbf16> -> vector<16x140xbf16>
    %c0_45 = arith.constant 0 : index
    %c0_46 = arith.constant 0 : index
    %177 = vector.load %arg9[%c0_45, %c0_46] : memref<16x144xbf16, #tpu.memory_space<vmem>>, vector<16x144xbf16>
    %c0_47 = arith.constant 0 : index
    %c0_48 = arith.constant 0 : index
    %178 = vector.load %arg10[%c0_47, %c0_48] : memref<16x3xf32, #tpu.memory_space<vmem>>, vector<16x3xf32>
    %179 = vector.extract_strided_slice %176 {offsets = [0, 0], sizes = [16, 98], strides = [1, 1]} : vector<16x140xbf16> to vector<16x98xbf16>
    %180 = vector.extract_strided_slice %176 {offsets = [0, 1], sizes = [16, 98], strides = [1, 1]} : vector<16x140xbf16> to vector<16x98xbf16>
    %181 = vector.extract_strided_slice %176 {offsets = [0, 2], sizes = [16, 98], strides = [1, 1]} : vector<16x140xbf16> to vector<16x98xbf16>
    %182 = vector.extract_strided_slice %176 {offsets = [0, 14], sizes = [16, 98], strides = [1, 1]} : vector<16x140xbf16> to vector<16x98xbf16>
    %183 = vector.extract_strided_slice %176 {offsets = [0, 15], sizes = [16, 98], strides = [1, 1]} : vector<16x140xbf16> to vector<16x98xbf16>
    %184 = vector.extract_strided_slice %176 {offsets = [0, 16], sizes = [16, 98], strides = [1, 1]} : vector<16x140xbf16> to vector<16x98xbf16>
    %185 = vector.extract_strided_slice %176 {offsets = [0, 28], sizes = [16, 98], strides = [1, 1]} : vector<16x140xbf16> to vector<16x98xbf16>
    %186 = vector.extract_strided_slice %176 {offsets = [0, 29], sizes = [16, 98], strides = [1, 1]} : vector<16x140xbf16> to vector<16x98xbf16>
    %187 = vector.extract_strided_slice %176 {offsets = [0, 30], sizes = [16, 98], strides = [1, 1]} : vector<16x140xbf16> to vector<16x98xbf16>
    %188 = tpu.concatenate %179, %180, %181, %182, %183, %184, %185, %186, %187 in 0 : vector<16x98xbf16>, vector<16x98xbf16>, vector<16x98xbf16>, vector<16x98xbf16>, vector<16x98xbf16>, vector<16x98xbf16>, vector<16x98xbf16>, vector<16x98xbf16>, vector<16x98xbf16> -> vector<144x98xbf16>
    %cst_49 = arith.constant dense<0.000000e+00> : vector<16x98xf32>
    %189 = tpu.matmul %177, %188, %cst_49 {dimension_numbers = #tpu.dot_dimension_numbers<[1], [0], [0], [1], [0, 0, 1, 1], [], []>} : vector<16x144xbf16>, vector<144x98xbf16>, vector<16x98xf32> -> vector<16x98xf32>
    %190 = vector.extract_strided_slice %178 {offsets = [0, 0], sizes = [16, 1], strides = [1, 1]} : vector<16x3xf32> to vector<16x1xf32>
    %191 = vector.broadcast %190 : vector<16x1xf32> to vector<16x98xf32>
    %192 = arith.addf %189, %191 : vector<16x98xf32>
    %193 = vector.extract_strided_slice %2 {offsets = [0, 0], sizes = [1, 98], strides = [1, 1]} : vector<1x196xi32> to vector<1x98xi32>
    %c7_i32 = arith.constant 7 : i32
    %194 = vector.broadcast %c7_i32 : i32 to vector<1x98xi32>
    %195 = arith.cmpi slt, %193, %194 : vector<1x98xi32>
    %cst_50 = arith.constant 0.000000e+00 : f32
    %196 = vector.shape_cast %195 : vector<1x98xi1> to vector<1x98xi1>
    %197 = vector.broadcast %196 : vector<1x98xi1> to vector<16x98xi1>
    %198 = vector.broadcast %cst_50 : f32 to vector<16x98xf32>
    %199 = arith.select %197, %192, %198 : vector<16x98xi1>, vector<16x98xf32>
    %cst_51 = arith.constant dense<0.000000e+00> : vector<16xf32>
    %200 = vector.multi_reduction <add>, %199, %cst_51 [1] : vector<16x98xf32> to vector<16xf32>
    %201 = vector.shape_cast %200 : vector<16xf32> to vector<16x1xf32>
    %202 = arith.mulf %199, %199 : vector<16x98xf32>
    %cst_52 = arith.constant dense<0.000000e+00> : vector<16xf32>
    %203 = vector.multi_reduction <add>, %202, %cst_52 [1] : vector<16x98xf32> to vector<16xf32>
    %204 = vector.shape_cast %203 : vector<16xf32> to vector<16x1xf32>
    %205 = tpu.concatenate %201, %204 in 1 : vector<16x1xf32>, vector<16x1xf32> -> vector<16x2xf32>
    %206 = vector.extract_strided_slice %205 {offsets = [0, 0], sizes = [8, 2], strides = [1, 1]} : vector<16x2xf32> to vector<8x2xf32>
    %cst_53 = arith.constant dense<0.000000e+00> : vector<2xf32>
    %207 = vector.multi_reduction <add>, %206, %cst_53 [0] : vector<8x2xf32> to vector<2xf32>
    %208 = vector.shape_cast %207 : vector<2xf32> to vector<1x2xf32>
    %209 = vector.shape_cast %208 : vector<1x2xf32> to vector<1x2xf32>
    %210 = vector.broadcast %209 : vector<1x2xf32> to vector<8x2xf32>
    %211 = vector.extract_strided_slice %205 {offsets = [8, 0], sizes = [8, 2], strides = [1, 1]} : vector<16x2xf32> to vector<8x2xf32>
    %cst_54 = arith.constant dense<0.000000e+00> : vector<2xf32>
    %212 = vector.multi_reduction <add>, %211, %cst_54 [0] : vector<8x2xf32> to vector<2xf32>
    %213 = vector.shape_cast %212 : vector<2xf32> to vector<1x2xf32>
    %214 = vector.shape_cast %213 : vector<1x2xf32> to vector<1x2xf32>
    %215 = vector.broadcast %214 : vector<1x2xf32> to vector<8x2xf32>
    %216 = tpu.concatenate %210, %215 in 0 : vector<8x2xf32>, vector<8x2xf32> -> vector<16x2xf32>
    %217 = vector.extract_strided_slice %216 {offsets = [0, 0], sizes = [16, 1], strides = [1, 1]} : vector<16x2xf32> to vector<16x1xf32>
    %cst_55 = arith.constant 0.00255102036 : f32
    %218 = vector.broadcast %cst_55 : f32 to vector<16x1xf32>
    %219 = arith.mulf %217, %218 : vector<16x1xf32>
    %220 = vector.extract_strided_slice %216 {offsets = [0, 1], sizes = [16, 1], strides = [1, 1]} : vector<16x2xf32> to vector<16x1xf32>
    %cst_56 = arith.constant 0.00255102036 : f32
    %221 = vector.broadcast %cst_56 : f32 to vector<16x1xf32>
    %222 = arith.mulf %220, %221 : vector<16x1xf32>
    %223 = arith.mulf %219, %219 : vector<16x1xf32>
    %224 = arith.subf %222, %223 : vector<16x1xf32>
    %cst_57 = arith.constant 0.000000e+00 : f32
    %225 = vector.broadcast %cst_57 : f32 to vector<16x1xf32>
    %226 = arith.maximumf %224, %225 : vector<16x1xf32>
    %227 = vector.broadcast %219 : vector<16x1xf32> to vector<16x98xf32>
    %228 = arith.subf %192, %227 : vector<16x98xf32>
    %cst_58 = arith.constant 9.99999974E-6 : f32
    %229 = vector.broadcast %cst_58 : f32 to vector<16x1xf32>
    %230 = arith.addf %226, %229 : vector<16x1xf32>
    %231 = math.rsqrt %230 : vector<16x1xf32>
    %232 = vector.broadcast %231 : vector<16x1xf32> to vector<16x98xf32>
    %233 = arith.mulf %228, %232 : vector<16x98xf32>
    %234 = vector.extract_strided_slice %178 {offsets = [0, 1], sizes = [16, 1], strides = [1, 1]} : vector<16x3xf32> to vector<16x1xf32>
    %235 = vector.broadcast %234 : vector<16x1xf32> to vector<16x98xf32>
    %236 = arith.mulf %233, %235 : vector<16x98xf32>
    %237 = vector.extract_strided_slice %178 {offsets = [0, 2], sizes = [16, 1], strides = [1, 1]} : vector<16x3xf32> to vector<16x1xf32>
    %238 = vector.broadcast %237 : vector<16x1xf32> to vector<16x98xf32>
    %239 = arith.addf %236, %238 : vector<16x98xf32>
    %240 = arith.negf %239 : vector<16x98xf32>
    %241 = math.exp %240 : vector<16x98xf32>
    %cst_59 = arith.constant 1.000000e+00 : f32
    %242 = vector.broadcast %cst_59 : f32 to vector<16x98xf32>
    %243 = arith.addf %242, %241 : vector<16x98xf32>
    %244 = arith.divf %242, %243 : vector<16x98xf32>
    %245 = arith.mulf %239, %244 : vector<16x98xf32>
    %cst_60 = arith.constant 0.000000e+00 : f32
    %246 = vector.shape_cast %195 : vector<1x98xi1> to vector<1x98xi1>
    %247 = vector.broadcast %246 : vector<1x98xi1> to vector<16x98xi1>
    %248 = vector.broadcast %cst_60 : f32 to vector<16x98xf32>
    %249 = arith.select %247, %245, %248 : vector<16x98xi1>, vector<16x98xf32>
    %250 = arith.truncf %249 : vector<16x98xf32> to vector<16x98xbf16>
    %cst_61 = arith.constant 0.000000e+00 : bf16
    %251 = vector.broadcast %cst_61 : bf16 to vector<16x14xbf16>
    %252 = tpu.concatenate %250, %251 in 1 : vector<16x98xbf16>, vector<16x14xbf16> -> vector<16x112xbf16>
    %c0_62 = arith.constant 0 : index
    %c0_63 = arith.constant 0 : index
    %253 = vector.load %arg11[%c0_62, %c0_63] : memref<8x144xbf16, #tpu.memory_space<vmem>>, vector<8x144xbf16>
    %c0_64 = arith.constant 0 : index
    %c0_65 = arith.constant 0 : index
    %254 = vector.load %arg12[%c0_64, %c0_65] : memref<8x3xf32, #tpu.memory_space<vmem>>, vector<8x3xf32>
    %255 = vector.extract_strided_slice %252 {offsets = [0, 0], sizes = [16, 70], strides = [1, 1]} : vector<16x112xbf16> to vector<16x70xbf16>
    %256 = vector.extract_strided_slice %252 {offsets = [0, 1], sizes = [16, 70], strides = [1, 1]} : vector<16x112xbf16> to vector<16x70xbf16>
    %257 = vector.extract_strided_slice %252 {offsets = [0, 2], sizes = [16, 70], strides = [1, 1]} : vector<16x112xbf16> to vector<16x70xbf16>
    %258 = vector.extract_strided_slice %252 {offsets = [0, 14], sizes = [16, 70], strides = [1, 1]} : vector<16x112xbf16> to vector<16x70xbf16>
    %259 = vector.extract_strided_slice %252 {offsets = [0, 15], sizes = [16, 70], strides = [1, 1]} : vector<16x112xbf16> to vector<16x70xbf16>
    %260 = vector.extract_strided_slice %252 {offsets = [0, 16], sizes = [16, 70], strides = [1, 1]} : vector<16x112xbf16> to vector<16x70xbf16>
    %261 = vector.extract_strided_slice %252 {offsets = [0, 28], sizes = [16, 70], strides = [1, 1]} : vector<16x112xbf16> to vector<16x70xbf16>
    %262 = vector.extract_strided_slice %252 {offsets = [0, 29], sizes = [16, 70], strides = [1, 1]} : vector<16x112xbf16> to vector<16x70xbf16>
    %263 = vector.extract_strided_slice %252 {offsets = [0, 30], sizes = [16, 70], strides = [1, 1]} : vector<16x112xbf16> to vector<16x70xbf16>
    %264 = tpu.concatenate %255, %256, %257, %258, %259, %260, %261, %262, %263 in 0 : vector<16x70xbf16>, vector<16x70xbf16>, vector<16x70xbf16>, vector<16x70xbf16>, vector<16x70xbf16>, vector<16x70xbf16>, vector<16x70xbf16>, vector<16x70xbf16>, vector<16x70xbf16> -> vector<144x70xbf16>
    %cst_66 = arith.constant dense<0.000000e+00> : vector<8x70xf32>
    %265 = tpu.matmul %253, %264, %cst_66 {dimension_numbers = #tpu.dot_dimension_numbers<[1], [0], [0], [1], [0, 0, 1, 1], [], []>} : vector<8x144xbf16>, vector<144x70xbf16>, vector<8x70xf32> -> vector<8x70xf32>
    %266 = vector.extract_strided_slice %254 {offsets = [0, 0], sizes = [8, 1], strides = [1, 1]} : vector<8x3xf32> to vector<8x1xf32>
    %267 = vector.broadcast %266 : vector<8x1xf32> to vector<8x70xf32>
    %268 = arith.addf %265, %267 : vector<8x70xf32>
    %269 = vector.extract_strided_slice %2 {offsets = [0, 0], sizes = [1, 70], strides = [1, 1]} : vector<1x196xi32> to vector<1x70xi32>
    %c5_i32 = arith.constant 5 : i32
    %270 = vector.broadcast %c5_i32 : i32 to vector<1x70xi32>
    %271 = arith.cmpi slt, %269, %270 : vector<1x70xi32>
    %cst_67 = arith.constant 0.000000e+00 : f32
    %272 = vector.shape_cast %271 : vector<1x70xi1> to vector<1x70xi1>
    %273 = vector.broadcast %272 : vector<1x70xi1> to vector<8x70xi1>
    %274 = vector.broadcast %cst_67 : f32 to vector<8x70xf32>
    %275 = arith.select %273, %268, %274 : vector<8x70xi1>, vector<8x70xf32>
    %cst_68 = arith.constant dense<0.000000e+00> : vector<8xf32>
    %276 = vector.multi_reduction <add>, %275, %cst_68 [1] : vector<8x70xf32> to vector<8xf32>
    %277 = vector.shape_cast %276 : vector<8xf32> to vector<8x1xf32>
    %278 = arith.mulf %275, %275 : vector<8x70xf32>
    %cst_69 = arith.constant dense<0.000000e+00> : vector<8xf32>
    %279 = vector.multi_reduction <add>, %278, %cst_69 [1] : vector<8x70xf32> to vector<8xf32>
    %280 = vector.shape_cast %279 : vector<8xf32> to vector<8x1xf32>
    %281 = tpu.concatenate %277, %280 in 1 : vector<8x1xf32>, vector<8x1xf32> -> vector<8x2xf32>
    %cst_70 = arith.constant dense<0.000000e+00> : vector<2xf32>
    %282 = vector.multi_reduction <add>, %281, %cst_70 [0] : vector<8x2xf32> to vector<2xf32>
    %283 = vector.shape_cast %282 : vector<2xf32> to vector<1x2xf32>
    %284 = vector.shape_cast %283 : vector<1x2xf32> to vector<1x2xf32>
    %285 = vector.broadcast %284 : vector<1x2xf32> to vector<8x2xf32>
    %286 = vector.extract_strided_slice %285 {offsets = [0, 0], sizes = [8, 1], strides = [1, 1]} : vector<8x2xf32> to vector<8x1xf32>
    %cst_71 = arith.constant 5.000000e-03 : f32
    %287 = vector.broadcast %cst_71 : f32 to vector<8x1xf32>
    %288 = arith.mulf %286, %287 : vector<8x1xf32>
    %289 = vector.extract_strided_slice %285 {offsets = [0, 1], sizes = [8, 1], strides = [1, 1]} : vector<8x2xf32> to vector<8x1xf32>
    %cst_72 = arith.constant 5.000000e-03 : f32
    %290 = vector.broadcast %cst_72 : f32 to vector<8x1xf32>
    %291 = arith.mulf %289, %290 : vector<8x1xf32>
    %292 = arith.mulf %288, %288 : vector<8x1xf32>
    %293 = arith.subf %291, %292 : vector<8x1xf32>
    %cst_73 = arith.constant 0.000000e+00 : f32
    %294 = vector.broadcast %cst_73 : f32 to vector<8x1xf32>
    %295 = arith.maximumf %293, %294 : vector<8x1xf32>
    %296 = vector.broadcast %288 : vector<8x1xf32> to vector<8x70xf32>
    %297 = arith.subf %268, %296 : vector<8x70xf32>
    %cst_74 = arith.constant 9.99999974E-6 : f32
    %298 = vector.broadcast %cst_74 : f32 to vector<8x1xf32>
    %299 = arith.addf %295, %298 : vector<8x1xf32>
    %300 = math.rsqrt %299 : vector<8x1xf32>
    %301 = vector.broadcast %300 : vector<8x1xf32> to vector<8x70xf32>
    %302 = arith.mulf %297, %301 : vector<8x70xf32>
    %303 = vector.extract_strided_slice %254 {offsets = [0, 1], sizes = [8, 1], strides = [1, 1]} : vector<8x3xf32> to vector<8x1xf32>
    %304 = vector.broadcast %303 : vector<8x1xf32> to vector<8x70xf32>
    %305 = arith.mulf %302, %304 : vector<8x70xf32>
    %306 = vector.extract_strided_slice %254 {offsets = [0, 2], sizes = [8, 1], strides = [1, 1]} : vector<8x3xf32> to vector<8x1xf32>
    %307 = vector.broadcast %306 : vector<8x1xf32> to vector<8x70xf32>
    %308 = arith.addf %305, %307 : vector<8x70xf32>
    %309 = arith.negf %308 : vector<8x70xf32>
    %310 = math.exp %309 : vector<8x70xf32>
    %cst_75 = arith.constant 1.000000e+00 : f32
    %311 = vector.broadcast %cst_75 : f32 to vector<8x70xf32>
    %312 = arith.addf %311, %310 : vector<8x70xf32>
    %313 = arith.divf %311, %312 : vector<8x70xf32>
    %314 = arith.mulf %308, %313 : vector<8x70xf32>
    %cst_76 = arith.constant 0.000000e+00 : f32
    %315 = vector.shape_cast %271 : vector<1x70xi1> to vector<1x70xi1>
    %316 = vector.broadcast %315 : vector<1x70xi1> to vector<8x70xi1>
    %317 = vector.broadcast %cst_76 : f32 to vector<8x70xf32>
    %318 = arith.select %316, %314, %317 : vector<8x70xi1>, vector<8x70xf32>
    %319 = arith.truncf %318 : vector<8x70xf32> to vector<8x70xbf16>
    %c0_77 = arith.constant 0 : index
    %c0_78 = arith.constant 0 : index
    %c0_79 = arith.constant 0 : index
    %320 = vector.load %arg13[%c0_77, %c0_78, %c0_79] : memref<1x8x70xbf16, #tpu.memory_space<vmem>>, vector<1x8x70xbf16>
    %321 = vector.shape_cast %320 : vector<1x8x70xbf16> to vector<8x70xbf16>
    %322 = vector.shape_cast %319 : vector<8x70xbf16> to vector<1x8x70xbf16>
    tpu.vector_store %arg13[%c0_77, %c0_78, %c0_79], %322 {strides = array<i32>} : memref<1x8x70xbf16, #tpu.memory_space<vmem>>, vector<1x8x70xbf16>,
    return
  }
  func.func @transform_0(%arg0: i32) -> (i32, i32, i32) {
    %c0_i32 = arith.constant 0 : i32
    %c0_i32_0 = arith.constant 0 : i32
    %c0_i32_1 = arith.constant 0 : i32
    return %arg0, %c0_i32, %c0_i32_0 : i32, i32, i32
  }
  func.func @transform_1(%arg0: i32) -> (i32, i32) {
    %c0_i32 = arith.constant 0 : i32
    %c0_i32_0 = arith.constant 0 : i32
    %c0_i32_1 = arith.constant 0 : i32
    return %c0_i32, %c0_i32_0 : i32, i32
  }
  func.func @transform_2(%arg0: i32) -> (i32, i32) {
    %c0_i32 = arith.constant 0 : i32
    %c0_i32_0 = arith.constant 0 : i32
    %c0_i32_1 = arith.constant 0 : i32
    return %c0_i32, %c0_i32_0 : i32, i32
  }
  func.func @transform_3(%arg0: i32) -> (i32, i32) {
    %c0_i32 = arith.constant 0 : i32
    %c0_i32_0 = arith.constant 0 : i32
    %c0_i32_1 = arith.constant 0 : i32
    return %c0_i32, %c0_i32_0 : i32, i32
  }
  func.func @transform_4(%arg0: i32) -> (i32, i32) {
    %c0_i32 = arith.constant 0 : i32
    %c0_i32_0 = arith.constant 0 : i32
    %c0_i32_1 = arith.constant 0 : i32
    return %c0_i32, %c0_i32_0 : i32, i32
  }
  func.func @transform_5(%arg0: i32) -> (i32, i32) {
    %c0_i32 = arith.constant 0 : i32
    %c0_i32_0 = arith.constant 0 : i32
    %c0_i32_1 = arith.constant 0 : i32
    return %c0_i32, %c0_i32_0 : i32, i32
  }
  func.func @transform_6(%arg0: i32) -> (i32, i32) {
    %c0_i32 = arith.constant 0 : i32
    %c0_i32_0 = arith.constant 0 : i32
    %c0_i32_1 = arith.constant 0 : i32
    return %c0_i32, %c0_i32_0 : i32, i32
  }
  func.func @transform_7(%arg0: i32) -> (i32, i32) {
    %c0_i32 = arith.constant 0 : i32
    %c0_i32_0 = arith.constant 0 : i32
    %c0_i32_1 = arith.constant 0 : i32
    return %c0_i32, %c0_i32_0 : i32, i32
  }
  func.func @transform_8(%arg0: i32) -> (i32, i32) {
    %c0_i32 = arith.constant 0 : i32
    %c0_i32_0 = arith.constant 0 : i32
    %c0_i32_1 = arith.constant 0 : i32
    return %c0_i32, %c0_i32_0 : i32, i32
  }
  func.func @transform_9(%arg0: i32) -> (i32, i32) {
    %c0_i32 = arith.constant 0 : i32
    %c0_i32_0 = arith.constant 0 : i32
    %c0_i32_1 = arith.constant 0 : i32
    return %c0_i32, %c0_i32_0 : i32, i32
  }
  func.func @transform_10(%arg0: i32) -> (i32, i32) {
    %c0_i32 = arith.constant 0 : i32
    %c0_i32_0 = arith.constant 0 : i32
    %c0_i32_1 = arith.constant 0 : i32
    return %c0_i32, %c0_i32_0 : i32, i32
  }
  func.func @transform_11(%arg0: i32) -> (i32, i32) {
    %c0_i32 = arith.constant 0 : i32
    %c0_i32_0 = arith.constant 0 : i32
    %c0_i32_1 = arith.constant 0 : i32
    return %c0_i32, %c0_i32_0 : i32, i32
  }
  func.func @transform_12(%arg0: i32) -> (i32, i32, i32) {
    %c0_i32 = arith.constant 0 : i32
    %c0_i32_0 = arith.constant 0 : i32
    %c0_i32_1 = arith.constant 0 : i32
    return %arg0, %c0_i32, %c0_i32_0 : i32, i32, i32
  }
}

module attributes {stable_mosaic.version = 11 : i64} {
  func.func @_chain_kernel(%arg0: i32, %arg1: memref<1x8x49xbf16, #tpu.memory_space<vmem>>, %arg2: memref<1x49xi32, #tpu.memory_space<vmem>>, %arg3: memref<32x32xbf16, #tpu.memory_space<vmem>>, %arg4: memref<32x1xf32, #tpu.memory_space<vmem>>, %arg5: memref<1x32x42xbf16, #tpu.memory_space<vmem>>) attributes {dimension_semantics = [#tpu.dimension_semantics<parallel>], iteration_bounds = array<i64: 2>, scalar_prefetch = 0 : i64, scratch_operands = 0 : i64, tpu.core_type = #tpu.core_type<tc>, window_params = [{transform_indices = @transform_0, window_bounds = array<i64: 1, 8, 49>}, {pipeline_mode = #tpu.pipeline_mode<synchronous>, transform_indices = @transform_1, window_bounds = array<i64: 1, 49>}, {pipeline_mode = #tpu.pipeline_mode<synchronous>, transform_indices = @transform_2, window_bounds = array<i64: 32, 32>}, {pipeline_mode = #tpu.pipeline_mode<synchronous>, transform_indices = @transform_3, window_bounds = array<i64: 32, 1>}, {transform_indices = @transform_4, window_bounds = array<i64: 1, 32, 42>}]} {
    %c0 = arith.constant 0 : index
    %c0_0 = arith.constant 0 : index
    %c0_1 = arith.constant 0 : index
    %0 = vector.load %arg1[%c0, %c0_0, %c0_1] : memref<1x8x49xbf16, #tpu.memory_space<vmem>>, vector<1x8x49xbf16>
    %1 = vector.shape_cast %0 : vector<1x8x49xbf16> to vector<8x49xbf16>
    %c0_2 = arith.constant 0 : index
    %c0_3 = arith.constant 0 : index
    %2 = vector.load %arg2[%c0_2, %c0_3] : memref<1x49xi32, #tpu.memory_space<vmem>>, vector<1x49xi32>
    %cst = arith.constant 0.000000e+00 : bf16
    %3 = vector.broadcast %cst : bf16 to vector<8x7xbf16>
    %4 = tpu.concatenate %1, %3 in 1 : vector<8x49xbf16>, vector<8x7xbf16> -> vector<8x56xbf16>
    %c0_4 = arith.constant 0 : index
    %c0_5 = arith.constant 0 : index
    %5 = vector.load %arg3[%c0_4, %c0_5] : memref<32x32xbf16, #tpu.memory_space<vmem>>, vector<32x32xbf16>
    %c0_6 = arith.constant 0 : index
    %c0_7 = arith.constant 0 : index
    %6 = vector.load %arg4[%c0_6, %c0_7] : memref<32x1xf32, #tpu.memory_space<vmem>>, vector<32x1xf32>
    %7 = vector.extract_strided_slice %4 {offsets = [0, 0], sizes = [8, 42], strides = [1, 1]} : vector<8x56xbf16> to vector<8x42xbf16>
    %8 = vector.extract_strided_slice %4 {offsets = [0, 1], sizes = [8, 42], strides = [1, 1]} : vector<8x56xbf16> to vector<8x42xbf16>
    %9 = vector.extract_strided_slice %4 {offsets = [0, 7], sizes = [8, 42], strides = [1, 1]} : vector<8x56xbf16> to vector<8x42xbf16>
    %10 = vector.extract_strided_slice %4 {offsets = [0, 8], sizes = [8, 42], strides = [1, 1]} : vector<8x56xbf16> to vector<8x42xbf16>
    %11 = tpu.concatenate %7, %8, %9, %10 in 0 : vector<8x42xbf16>, vector<8x42xbf16>, vector<8x42xbf16>, vector<8x42xbf16> -> vector<32x42xbf16>
    %cst_8 = arith.constant dense<0.000000e+00> : vector<32x42xf32>
    %12 = tpu.matmul %5, %11, %cst_8 {dimension_numbers = #tpu.dot_dimension_numbers<[1], [0], [0], [1], [0, 0, 1, 1], [], []>} : vector<32x32xbf16>, vector<32x42xbf16>, vector<32x42xf32> -> vector<32x42xf32>
    %13 = vector.broadcast %6 : vector<32x1xf32> to vector<32x42xf32>
    %14 = arith.addf %12, %13 : vector<32x42xf32>
    %15 = vector.extract_strided_slice %2 {offsets = [0, 0], sizes = [1, 42], strides = [1, 1]} : vector<1x49xi32> to vector<1x42xi32>
    %c6_i32 = arith.constant 6 : i32
    %16 = vector.broadcast %c6_i32 : i32 to vector<1x42xi32>
    %17 = arith.cmpi slt, %15, %16 : vector<1x42xi32>
    %cst_9 = arith.constant 0.000000e+00 : f32
    %18 = vector.shape_cast %17 : vector<1x42xi1> to vector<1x42xi1>
    %19 = vector.broadcast %18 : vector<1x42xi1> to vector<32x42xi1>
    %20 = vector.broadcast %cst_9 : f32 to vector<32x42xf32>
    %21 = arith.select %19, %14, %20 : vector<32x42xi1>, vector<32x42xf32>
    %22 = arith.truncf %21 : vector<32x42xf32> to vector<32x42xbf16>
    %c0_10 = arith.constant 0 : index
    %c0_11 = arith.constant 0 : index
    %c0_12 = arith.constant 0 : index
    %23 = vector.load %arg5[%c0_10, %c0_11, %c0_12] : memref<1x32x42xbf16, #tpu.memory_space<vmem>>, vector<1x32x42xbf16>
    %24 = vector.shape_cast %23 : vector<1x32x42xbf16> to vector<32x42xbf16>
    %25 = vector.shape_cast %22 : vector<32x42xbf16> to vector<1x32x42xbf16>
    tpu.vector_store %arg5[%c0_10, %c0_11, %c0_12], %25 {strides = array<i32>} : memref<1x32x42xbf16, #tpu.memory_space<vmem>>, vector<1x32x42xbf16>,
    return
  }
  func.func @transform_0(%arg0: i32) -> (i32, i32, i32) {
    %c0_i32 = arith.constant 0 : i32
    %c0_i32_0 = arith.constant 0 : i32
    %c0_i32_1 = arith.constant 0 : i32
    return %arg0, %c0_i32, %c0_i32_0 : i32, i32, i32
  }
  func.func @transform_1(%arg0: i32) -> (i32, i32) {
    %c0_i32 = arith.constant 0 : i32
    %c0_i32_0 = arith.constant 0 : i32
    %c0_i32_1 = arith.constant 0 : i32
    return %c0_i32, %c0_i32_0 : i32, i32
  }
  func.func @transform_2(%arg0: i32) -> (i32, i32) {
    %c0_i32 = arith.constant 0 : i32
    %c0_i32_0 = arith.constant 0 : i32
    %c0_i32_1 = arith.constant 0 : i32
    return %c0_i32, %c0_i32_0 : i32, i32
  }
  func.func @transform_3(%arg0: i32) -> (i32, i32) {
    %c0_i32 = arith.constant 0 : i32
    %c0_i32_0 = arith.constant 0 : i32
    %c0_i32_1 = arith.constant 0 : i32
    return %c0_i32, %c0_i32_0 : i32, i32
  }
  func.func @transform_4(%arg0: i32) -> (i32, i32, i32) {
    %c0_i32 = arith.constant 0 : i32
    %c0_i32_0 = arith.constant 0 : i32
    %c0_i32_1 = arith.constant 0 : i32
    return %arg0, %c0_i32, %c0_i32_0 : i32, i32, i32
  }
}

module attributes {stable_mosaic.version = 11 : i64} {
  func.func @_chain_kernel(%arg0: i32, %arg1: memref<1x8x121xbf16, #tpu.memory_space<vmem>>, %arg2: memref<1x121xi32, #tpu.memory_space<vmem>>, %arg3: memref<8x72xbf16, #tpu.memory_space<vmem>>, %arg4: memref<8x3xf32, #tpu.memory_space<vmem>>, %arg5: memref<8x72xbf16, #tpu.memory_space<vmem>>, %arg6: memref<8x3xf32, #tpu.memory_space<vmem>>, %arg7: memref<1x8x77xbf16, #tpu.memory_space<vmem>>) attributes {dimension_semantics = [#tpu.dimension_semantics<parallel>], iteration_bounds = array<i64: 2>, scalar_prefetch = 0 : i64, scratch_operands = 0 : i64, tpu.core_type = #tpu.core_type<tc>, window_params = [{transform_indices = @transform_0, window_bounds = array<i64: 1, 8, 121>}, {pipeline_mode = #tpu.pipeline_mode<synchronous>, transform_indices = @transform_1, window_bounds = array<i64: 1, 121>}, {pipeline_mode = #tpu.pipeline_mode<synchronous>, transform_indices = @transform_2, window_bounds = array<i64: 8, 72>}, {pipeline_mode = #tpu.pipeline_mode<synchronous>, transform_indices = @transform_3, window_bounds = array<i64: 8, 3>}, {pipeline_mode = #tpu.pipeline_mode<synchronous>, transform_indices = @transform_4, window_bounds = array<i64: 8, 72>}, {pipeline_mode = #tpu.pipeline_mode<synchronous>, transform_indices = @transform_5, window_bounds = array<i64: 8, 3>}, {transform_indices = @transform_6, window_bounds = array<i64: 1, 8, 77>}]} {
    %c0 = arith.constant 0 : index
    %c0_0 = arith.constant 0 : index
    %c0_1 = arith.constant 0 : index
    %0 = vector.load %arg1[%c0, %c0_0, %c0_1] : memref<1x8x121xbf16, #tpu.memory_space<vmem>>, vector<1x8x121xbf16>
    %1 = vector.shape_cast %0 : vector<1x8x121xbf16> to vector<8x121xbf16>
    %c0_2 = arith.constant 0 : index
    %c0_3 = arith.constant 0 : index
    %2 = vector.load %arg2[%c0_2, %c0_3] : memref<1x121xi32, #tpu.memory_space<vmem>>, vector<1x121xi32>
    %cst = arith.constant 0.000000e+00 : bf16
    %3 = vector.broadcast %cst : bf16 to vector<8x11xbf16>
    %4 = tpu.concatenate %1, %3 in 1 : vector<8x121xbf16>, vector<8x11xbf16> -> vector<8x132xbf16>
    %c0_4 = arith.constant 0 : index
    %c0_5 = arith.constant 0 : index
    %5 = vector.load %arg3[%c0_4, %c0_5] : memref<8x72xbf16, #tpu.memory_space<vmem>>, vector<8x72xbf16>
    %c0_6 = arith.constant 0 : index
    %c0_7 = arith.constant 0 : index
    %6 = vector.load %arg4[%c0_6, %c0_7] : memref<8x3xf32, #tpu.memory_space<vmem>>, vector<8x3xf32>
    %7 = vector.extract_strided_slice %4 {offsets = [0, 0], sizes = [8, 99], strides = [1, 1]} : vector<8x132xbf16> to vector<8x99xbf16>
    %8 = vector.extract_strided_slice %4 {offsets = [0, 1], sizes = [8, 99], strides = [1, 1]} : vector<8x132xbf16> to vector<8x99xbf16>
    %9 = vector.extract_strided_slice %4 {offsets = [0, 2], sizes = [8, 99], strides = [1, 1]} : vector<8x132xbf16> to vector<8x99xbf16>
    %10 = vector.extract_strided_slice %4 {offsets = [0, 11], sizes = [8, 99], strides = [1, 1]} : vector<8x132xbf16> to vector<8x99xbf16>
    %11 = vector.extract_strided_slice %4 {offsets = [0, 12], sizes = [8, 99], strides = [1, 1]} : vector<8x132xbf16> to vector<8x99xbf16>
    %12 = vector.extract_strided_slice %4 {offsets = [0, 13], sizes = [8, 99], strides = [1, 1]} : vector<8x132xbf16> to vector<8x99xbf16>
    %13 = vector.extract_strided_slice %4 {offsets = [0, 22], sizes = [8, 99], strides = [1, 1]} : vector<8x132xbf16> to vector<8x99xbf16>
    %14 = vector.extract_strided_slice %4 {offsets = [0, 23], sizes = [8, 99], strides = [1, 1]} : vector<8x132xbf16> to vector<8x99xbf16>
    %15 = vector.extract_strided_slice %4 {offsets = [0, 24], sizes = [8, 99], strides = [1, 1]} : vector<8x132xbf16> to vector<8x99xbf16>
    %16 = tpu.concatenate %7, %8, %9, %10, %11, %12, %13, %14, %15 in 0 : vector<8x99xbf16>, vector<8x99xbf16>, vector<8x99xbf16>, vector<8x99xbf16>, vector<8x99xbf16>, vector<8x99xbf16>, vector<8x99xbf16>, vector<8x99xbf16>, vector<8x99xbf16> -> vector<72x99xbf16>
    %cst_8 = arith.constant dense<0.000000e+00> : vector<8x99xf32>
    %17 = tpu.matmul %5, %16, %cst_8 {dimension_numbers = #tpu.dot_dimension_numbers<[1], [0], [0], [1], [0, 0, 1, 1], [], []>} : vector<8x72xbf16>, vector<72x99xbf16>, vector<8x99xf32> -> vector<8x99xf32>
    %18 = vector.extract_strided_slice %6 {offsets = [0, 0], sizes = [8, 1], strides = [1, 1]} : vector<8x3xf32> to vector<8x1xf32>
    %19 = vector.broadcast %18 : vector<8x1xf32> to vector<8x99xf32>
    %20 = arith.addf %17, %19 : vector<8x99xf32>
    %21 = vector.extract_strided_slice %2 {offsets = [0, 0], sizes = [1, 99], strides = [1, 1]} : vector<1x121xi32> to vector<1x99xi32>
    %c9_i32 = arith.constant 9 : i32
    %22 = vector.broadcast %c9_i32 : i32 to vector<1x99xi32>
    %23 = arith.cmpi slt, %21, %22 : vector<1x99xi32>
    %cst_9 = arith.constant 0.000000e+00 : f32
    %24 = vector.shape_cast %23 : vector<1x99xi1> to vector<1x99xi1>
    %25 = vector.broadcast %24 : vector<1x99xi1> to vector<8x99xi1>
    %26 = vector.broadcast %cst_9 : f32 to vector<8x99xf32>
    %27 = arith.select %25, %20, %26 : vector<8x99xi1>, vector<8x99xf32>
    %cst_10 = arith.constant dense<0.000000e+00> : vector<8xf32>
    %28 = vector.multi_reduction <add>, %27, %cst_10 [1] : vector<8x99xf32> to vector<8xf32>
    %29 = vector.shape_cast %28 : vector<8xf32> to vector<8x1xf32>
    %30 = arith.mulf %27, %27 : vector<8x99xf32>
    %cst_11 = arith.constant dense<0.000000e+00> : vector<8xf32>
    %31 = vector.multi_reduction <add>, %30, %cst_11 [1] : vector<8x99xf32> to vector<8xf32>
    %32 = vector.shape_cast %31 : vector<8xf32> to vector<8x1xf32>
    %33 = tpu.concatenate %29, %32 in 1 : vector<8x1xf32>, vector<8x1xf32> -> vector<8x2xf32>
    %cst_12 = arith.constant dense<0.000000e+00> : vector<2xf32>
    %34 = vector.multi_reduction <add>, %33, %cst_12 [0] : vector<8x2xf32> to vector<2xf32>
    %35 = vector.shape_cast %34 : vector<2xf32> to vector<1x2xf32>
    %36 = vector.shape_cast %35 : vector<1x2xf32> to vector<1x2xf32>
    %37 = vector.broadcast %36 : vector<1x2xf32> to vector<8x2xf32>
    %38 = vector.extract_strided_slice %37 {offsets = [0, 0], sizes = [8, 1], strides = [1, 1]} : vector<8x2xf32> to vector<8x1xf32>
    %cst_13 = arith.constant 0.00154320989 : f32
    %39 = vector.broadcast %cst_13 : f32 to vector<8x1xf32>
    %40 = arith.mulf %38, %39 : vector<8x1xf32>
    %41 = vector.extract_strided_slice %37 {offsets = [0, 1], sizes = [8, 1], strides = [1, 1]} : vector<8x2xf32> to vector<8x1xf32>
    %cst_14 = arith.constant 0.00154320989 : f32
    %42 = vector.broadcast %cst_14 : f32 to vector<8x1xf32>
    %43 = arith.mulf %41, %42 : vector<8x1xf32>
    %44 = arith.mulf %40, %40 : vector<8x1xf32>
    %45 = arith.subf %43, %44 : vector<8x1xf32>
    %cst_15 = arith.constant 0.000000e+00 : f32
    %46 = vector.broadcast %cst_15 : f32 to vector<8x1xf32>
    %47 = arith.maximumf %45, %46 : vector<8x1xf32>
    %48 = vector.broadcast %40 : vector<8x1xf32> to vector<8x99xf32>
    %49 = arith.subf %20, %48 : vector<8x99xf32>
    %cst_16 = arith.constant 9.99999974E-6 : f32
    %50 = vector.broadcast %cst_16 : f32 to vector<8x1xf32>
    %51 = arith.addf %47, %50 : vector<8x1xf32>
    %52 = math.rsqrt %51 : vector<8x1xf32>
    %53 = vector.broadcast %52 : vector<8x1xf32> to vector<8x99xf32>
    %54 = arith.mulf %49, %53 : vector<8x99xf32>
    %55 = vector.extract_strided_slice %6 {offsets = [0, 1], sizes = [8, 1], strides = [1, 1]} : vector<8x3xf32> to vector<8x1xf32>
    %56 = vector.broadcast %55 : vector<8x1xf32> to vector<8x99xf32>
    %57 = arith.mulf %54, %56 : vector<8x99xf32>
    %58 = vector.extract_strided_slice %6 {offsets = [0, 2], sizes = [8, 1], strides = [1, 1]} : vector<8x3xf32> to vector<8x1xf32>
    %59 = vector.broadcast %58 : vector<8x1xf32> to vector<8x99xf32>
    %60 = arith.addf %57, %59 : vector<8x99xf32>
    %61 = arith.negf %60 : vector<8x99xf32>
    %62 = math.exp %61 : vector<8x99xf32>
    %cst_17 = arith.constant 1.000000e+00 : f32
    %63 = vector.broadcast %cst_17 : f32 to vector<8x99xf32>
    %64 = arith.addf %63, %62 : vector<8x99xf32>
    %65 = arith.divf %63, %64 : vector<8x99xf32>
    %66 = arith.mulf %60, %65 : vector<8x99xf32>
    %cst_18 = arith.constant 0.000000e+00 : f32
    %67 = vector.shape_cast %23 : vector<1x99xi1> to vector<1x99xi1>
    %68 = vector.broadcast %67 : vector<1x99xi1> to vector<8x99xi1>
    %69 = vector.broadcast %cst_18 : f32 to vector<8x99xf32>
    %70 = arith.select %68, %66, %69 : vector<8x99xi1>, vector<8x99xf32>
    %71 = arith.truncf %70 : vector<8x99xf32> to vector<8x99xbf16>
    %cst_19 = arith.constant 0.000000e+00 : bf16
    %72 = vector.broadcast %cst_19 : bf16 to vector<8x11xbf16>
    %73 = tpu.concatenate %71, %72 in 1 : vector<8x99xbf16>, vector<8x11xbf16> -> vector<8x110xbf16>
    %c0_20 = arith.constant 0 : index
    %c0_21 = arith.constant 0 : index
    %74 = vector.load %arg5[%c0_20, %c0_21] : memref<8x72xbf16, #tpu.memory_space<vmem>>, vector<8x72xbf16>
    %c0_22 = arith.constant 0 : index
    %c0_23 = arith.constant 0 : index
    %75 = vector.load %arg6[%c0_22, %c0_23] : memref<8x3xf32, #tpu.memory_space<vmem>>, vector<8x3xf32>
    %76 = vector.extract_strided_slice %73 {offsets = [0, 0], sizes = [8, 77], strides = [1, 1]} : vector<8x110xbf16> to vector<8x77xbf16>
    %77 = vector.extract_strided_slice %73 {offsets = [0, 1], sizes = [8, 77], strides = [1, 1]} : vector<8x110xbf16> to vector<8x77xbf16>
    %78 = vector.extract_strided_slice %73 {offsets = [0, 2], sizes = [8, 77], strides = [1, 1]} : vector<8x110xbf16> to vector<8x77xbf16>
    %79 = vector.extract_strided_slice %73 {offsets = [0, 11], sizes = [8, 77], strides = [1, 1]} : vector<8x110xbf16> to vector<8x77xbf16>
    %80 = vector.extract_strided_slice %73 {offsets = [0, 12], sizes = [8, 77], strides = [1, 1]} : vector<8x110xbf16> to vector<8x77xbf16>
    %81 = vector.extract_strided_slice %73 {offsets = [0, 13], sizes = [8, 77], strides = [1, 1]} : vector<8x110xbf16> to vector<8x77xbf16>
    %82 = vector.extract_strided_slice %73 {offsets = [0, 22], sizes = [8, 77], strides = [1, 1]} : vector<8x110xbf16> to vector<8x77xbf16>
    %83 = vector.extract_strided_slice %73 {offsets = [0, 23], sizes = [8, 77], strides = [1, 1]} : vector<8x110xbf16> to vector<8x77xbf16>
    %84 = vector.extract_strided_slice %73 {offsets = [0, 24], sizes = [8, 77], strides = [1, 1]} : vector<8x110xbf16> to vector<8x77xbf16>
    %85 = tpu.concatenate %76, %77, %78, %79, %80, %81, %82, %83, %84 in 0 : vector<8x77xbf16>, vector<8x77xbf16>, vector<8x77xbf16>, vector<8x77xbf16>, vector<8x77xbf16>, vector<8x77xbf16>, vector<8x77xbf16>, vector<8x77xbf16>, vector<8x77xbf16> -> vector<72x77xbf16>
    %cst_24 = arith.constant dense<0.000000e+00> : vector<8x77xf32>
    %86 = tpu.matmul %74, %85, %cst_24 {dimension_numbers = #tpu.dot_dimension_numbers<[1], [0], [0], [1], [0, 0, 1, 1], [], []>} : vector<8x72xbf16>, vector<72x77xbf16>, vector<8x77xf32> -> vector<8x77xf32>
    %87 = vector.extract_strided_slice %75 {offsets = [0, 0], sizes = [8, 1], strides = [1, 1]} : vector<8x3xf32> to vector<8x1xf32>
    %88 = vector.broadcast %87 : vector<8x1xf32> to vector<8x77xf32>
    %89 = arith.addf %86, %88 : vector<8x77xf32>
    %90 = vector.extract_strided_slice %2 {offsets = [0, 0], sizes = [1, 77], strides = [1, 1]} : vector<1x121xi32> to vector<1x77xi32>
    %c7_i32 = arith.constant 7 : i32
    %91 = vector.broadcast %c7_i32 : i32 to vector<1x77xi32>
    %92 = arith.cmpi slt, %90, %91 : vector<1x77xi32>
    %cst_25 = arith.constant 0.000000e+00 : f32
    %93 = vector.shape_cast %92 : vector<1x77xi1> to vector<1x77xi1>
    %94 = vector.broadcast %93 : vector<1x77xi1> to vector<8x77xi1>
    %95 = vector.broadcast %cst_25 : f32 to vector<8x77xf32>
    %96 = arith.select %94, %89, %95 : vector<8x77xi1>, vector<8x77xf32>
    %cst_26 = arith.constant dense<0.000000e+00> : vector<8xf32>
    %97 = vector.multi_reduction <add>, %96, %cst_26 [1] : vector<8x77xf32> to vector<8xf32>
    %98 = vector.shape_cast %97 : vector<8xf32> to vector<8x1xf32>
    %99 = arith.mulf %96, %96 : vector<8x77xf32>
    %cst_27 = arith.constant dense<0.000000e+00> : vector<8xf32>
    %100 = vector.multi_reduction <add>, %99, %cst_27 [1] : vector<8x77xf32> to vector<8xf32>
    %101 = vector.shape_cast %100 : vector<8xf32> to vector<8x1xf32>
    %102 = tpu.concatenate %98, %101 in 1 : vector<8x1xf32>, vector<8x1xf32> -> vector<8x2xf32>
    %cst_28 = arith.constant dense<0.000000e+00> : vector<2xf32>
    %103 = vector.multi_reduction <add>, %102, %cst_28 [0] : vector<8x2xf32> to vector<2xf32>
    %104 = vector.shape_cast %103 : vector<2xf32> to vector<1x2xf32>
    %105 = vector.shape_cast %104 : vector<1x2xf32> to vector<1x2xf32>
    %106 = vector.broadcast %105 : vector<1x2xf32> to vector<8x2xf32>
    %107 = vector.extract_strided_slice %106 {offsets = [0, 0], sizes = [8, 1], strides = [1, 1]} : vector<8x2xf32> to vector<8x1xf32>
    %cst_29 = arith.constant 0.00255102036 : f32
    %108 = vector.broadcast %cst_29 : f32 to vector<8x1xf32>
    %109 = arith.mulf %107, %108 : vector<8x1xf32>
    %110 = vector.extract_strided_slice %106 {offsets = [0, 1], sizes = [8, 1], strides = [1, 1]} : vector<8x2xf32> to vector<8x1xf32>
    %cst_30 = arith.constant 0.00255102036 : f32
    %111 = vector.broadcast %cst_30 : f32 to vector<8x1xf32>
    %112 = arith.mulf %110, %111 : vector<8x1xf32>
    %113 = arith.mulf %109, %109 : vector<8x1xf32>
    %114 = arith.subf %112, %113 : vector<8x1xf32>
    %cst_31 = arith.constant 0.000000e+00 : f32
    %115 = vector.broadcast %cst_31 : f32 to vector<8x1xf32>
    %116 = arith.maximumf %114, %115 : vector<8x1xf32>
    %117 = vector.broadcast %109 : vector<8x1xf32> to vector<8x77xf32>
    %118 = arith.subf %89, %117 : vector<8x77xf32>
    %cst_32 = arith.constant 9.99999974E-6 : f32
    %119 = vector.broadcast %cst_32 : f32 to vector<8x1xf32>
    %120 = arith.addf %116, %119 : vector<8x1xf32>
    %121 = math.rsqrt %120 : vector<8x1xf32>
    %122 = vector.broadcast %121 : vector<8x1xf32> to vector<8x77xf32>
    %123 = arith.mulf %118, %122 : vector<8x77xf32>
    %124 = vector.extract_strided_slice %75 {offsets = [0, 1], sizes = [8, 1], strides = [1, 1]} : vector<8x3xf32> to vector<8x1xf32>
    %125 = vector.broadcast %124 : vector<8x1xf32> to vector<8x77xf32>
    %126 = arith.mulf %123, %125 : vector<8x77xf32>
    %127 = vector.extract_strided_slice %75 {offsets = [0, 2], sizes = [8, 1], strides = [1, 1]} : vector<8x3xf32> to vector<8x1xf32>
    %128 = vector.broadcast %127 : vector<8x1xf32> to vector<8x77xf32>
    %129 = arith.addf %126, %128 : vector<8x77xf32>
    %130 = arith.negf %129 : vector<8x77xf32>
    %131 = math.exp %130 : vector<8x77xf32>
    %cst_33 = arith.constant 1.000000e+00 : f32
    %132 = vector.broadcast %cst_33 : f32 to vector<8x77xf32>
    %133 = arith.addf %132, %131 : vector<8x77xf32>
    %134 = arith.divf %132, %133 : vector<8x77xf32>
    %135 = arith.mulf %129, %134 : vector<8x77xf32>
    %cst_34 = arith.constant 0.000000e+00 : f32
    %136 = vector.shape_cast %92 : vector<1x77xi1> to vector<1x77xi1>
    %137 = vector.broadcast %136 : vector<1x77xi1> to vector<8x77xi1>
    %138 = vector.broadcast %cst_34 : f32 to vector<8x77xf32>
    %139 = arith.select %137, %135, %138 : vector<8x77xi1>, vector<8x77xf32>
    %140 = arith.truncf %139 : vector<8x77xf32> to vector<8x77xbf16>
    %c0_35 = arith.constant 0 : index
    %c0_36 = arith.constant 0 : index
    %c0_37 = arith.constant 0 : index
    %141 = vector.load %arg7[%c0_35, %c0_36, %c0_37] : memref<1x8x77xbf16, #tpu.memory_space<vmem>>, vector<1x8x77xbf16>
    %142 = vector.shape_cast %141 : vector<1x8x77xbf16> to vector<8x77xbf16>
    %143 = vector.shape_cast %140 : vector<8x77xbf16> to vector<1x8x77xbf16>
    tpu.vector_store %arg7[%c0_35, %c0_36, %c0_37], %143 {strides = array<i32>} : memref<1x8x77xbf16, #tpu.memory_space<vmem>>, vector<1x8x77xbf16>,
    return
  }
  func.func @transform_0(%arg0: i32) -> (i32, i32, i32) {
    %c0_i32 = arith.constant 0 : i32
    %c0_i32_0 = arith.constant 0 : i32
    %c0_i32_1 = arith.constant 0 : i32
    return %arg0, %c0_i32, %c0_i32_0 : i32, i32, i32
  }
  func.func @transform_1(%arg0: i32) -> (i32, i32) {
    %c0_i32 = arith.constant 0 : i32
    %c0_i32_0 = arith.constant 0 : i32
    %c0_i32_1 = arith.constant 0 : i32
    return %c0_i32, %c0_i32_0 : i32, i32
  }
  func.func @transform_2(%arg0: i32) -> (i32, i32) {
    %c0_i32 = arith.constant 0 : i32
    %c0_i32_0 = arith.constant 0 : i32
    %c0_i32_1 = arith.constant 0 : i32
    return %c0_i32, %c0_i32_0 : i32, i32
  }
  func.func @transform_3(%arg0: i32) -> (i32, i32) {
    %c0_i32 = arith.constant 0 : i32
    %c0_i32_0 = arith.constant 0 : i32
    %c0_i32_1 = arith.constant 0 : i32
    return %c0_i32, %c0_i32_0 : i32, i32
  }
  func.func @transform_4(%arg0: i32) -> (i32, i32) {
    %c0_i32 = arith.constant 0 : i32
    %c0_i32_0 = arith.constant 0 : i32
    %c0_i32_1 = arith.constant 0 : i32
    return %c0_i32, %c0_i32_0 : i32, i32
  }
  func.func @transform_5(%arg0: i32) -> (i32, i32) {
    %c0_i32 = arith.constant 0 : i32
    %c0_i32_0 = arith.constant 0 : i32
    %c0_i32_1 = arith.constant 0 : i32
    return %c0_i32, %c0_i32_0 : i32, i32
  }
  func.func @transform_6(%arg0: i32) -> (i32, i32, i32) {
    %c0_i32 = arith.constant 0 : i32
    %c0_i32_0 = arith.constant 0 : i32
    %c0_i32_1 = arith.constant 0 : i32
    return %arg0, %c0_i32, %c0_i32_0 : i32, i32, i32
  }
}

module attributes {stable_mosaic.version = 11 : i64} {
  func.func @_chain_kernel(%arg0: i32, %arg1: memref<1x16x49xbf16, #tpu.memory_space<vmem>>, %arg2: memref<1x49xi32, #tpu.memory_space<vmem>>, %arg3: memref<8x16xbf16, #tpu.memory_space<vmem>>, %arg4: memref<8x1xf32, #tpu.memory_space<vmem>>, %arg5: memref<1x8x49xf32, #tpu.memory_space<vmem>>) attributes {dimension_semantics = [#tpu.dimension_semantics<parallel>], iteration_bounds = array<i64: 2>, scalar_prefetch = 0 : i64, scratch_operands = 0 : i64, tpu.core_type = #tpu.core_type<tc>, window_params = [{transform_indices = @transform_0, window_bounds = array<i64: 1, 16, 49>}, {pipeline_mode = #tpu.pipeline_mode<synchronous>, transform_indices = @transform_1, window_bounds = array<i64: 1, 49>}, {pipeline_mode = #tpu.pipeline_mode<synchronous>, transform_indices = @transform_2, window_bounds = array<i64: 8, 16>}, {pipeline_mode = #tpu.pipeline_mode<synchronous>, transform_indices = @transform_3, window_bounds = array<i64: 8, 1>}, {transform_indices = @transform_4, window_bounds = array<i64: 1, 8, 49>}]} {
    %c0 = arith.constant 0 : index
    %c0_0 = arith.constant 0 : index
    %c0_1 = arith.constant 0 : index
    %0 = vector.load %arg1[%c0, %c0_0, %c0_1] : memref<1x16x49xbf16, #tpu.memory_space<vmem>>, vector<1x16x49xbf16>
    %1 = vector.shape_cast %0 : vector<1x16x49xbf16> to vector<16x49xbf16>
    %c0_2 = arith.constant 0 : index
    %c0_3 = arith.constant 0 : index
    %2 = vector.load %arg2[%c0_2, %c0_3] : memref<1x49xi32, #tpu.memory_space<vmem>>, vector<1x49xi32>
    %cst = arith.constant 0.000000e+00 : bf16
    %3 = vector.broadcast %cst : bf16 to vector<16x7xbf16>
    %4 = tpu.concatenate %1, %3 in 1 : vector<16x49xbf16>, vector<16x7xbf16> -> vector<16x56xbf16>
    %c0_4 = arith.constant 0 : index
    %c0_5 = arith.constant 0 : index
    %5 = vector.load %arg3[%c0_4, %c0_5] : memref<8x16xbf16, #tpu.memory_space<vmem>>, vector<8x16xbf16>
    %c0_6 = arith.constant 0 : index
    %c0_7 = arith.constant 0 : index
    %6 = vector.load %arg4[%c0_6, %c0_7] : memref<8x1xf32, #tpu.memory_space<vmem>>, vector<8x1xf32>
    %7 = vector.extract_strided_slice %4 {offsets = [0, 0], sizes = [16, 49], strides = [1, 1]} : vector<16x56xbf16> to vector<16x49xbf16>
    %cst_8 = arith.constant dense<0.000000e+00> : vector<8x49xf32>
    %8 = tpu.matmul %5, %7, %cst_8 {dimension_numbers = #tpu.dot_dimension_numbers<[1], [0], [0], [1], [0, 0, 1, 1], [], []>} : vector<8x16xbf16>, vector<16x49xbf16>, vector<8x49xf32> -> vector<8x49xf32>
    %9 = vector.broadcast %6 : vector<8x1xf32> to vector<8x49xf32>
    %10 = arith.addf %8, %9 : vector<8x49xf32>
    %c7_i32 = arith.constant 7 : i32
    %11 = vector.broadcast %c7_i32 : i32 to vector<1x49xi32>
    %12 = arith.cmpi slt, %2, %11 : vector<1x49xi32>
    %cst_9 = arith.constant 0.000000e+00 : f32
    %13 = vector.shape_cast %12 : vector<1x49xi1> to vector<1x49xi1>
    %14 = vector.broadcast %13 : vector<1x49xi1> to vector<8x49xi1>
    %15 = vector.broadcast %cst_9 : f32 to vector<8x49xf32>
    %16 = arith.select %14, %10, %15 : vector<8x49xi1>, vector<8x49xf32>
    %c0_10 = arith.constant 0 : index
    %c0_11 = arith.constant 0 : index
    %c0_12 = arith.constant 0 : index
    %17 = vector.load %arg5[%c0_10, %c0_11, %c0_12] : memref<1x8x49xf32, #tpu.memory_space<vmem>>, vector<1x8x49xf32>
    %18 = vector.shape_cast %17 : vector<1x8x49xf32> to vector<8x49xf32>
    %19 = vector.shape_cast %16 : vector<8x49xf32> to vector<1x8x49xf32>
    tpu.vector_store %arg5[%c0_10, %c0_11, %c0_12], %19 {strides = array<i32>} : memref<1x8x49xf32, #tpu.memory_space<vmem>>, vector<1x8x49xf32>,
    return
  }
  func.func @transform_0(%arg0: i32) -> (i32, i32, i32) {
    %c0_i32 = arith.constant 0 : i32
    %c0_i32_0 = arith.constant 0 : i32
    %c0_i32_1 = arith.constant 0 : i32
    return %arg0, %c0_i32, %c0_i32_0 : i32, i32, i32
  }
  func.func @transform_1(%arg0: i32) -> (i32, i32) {
    %c0_i32 = arith.constant 0 : i32
    %c0_i32_0 = arith.constant 0 : i32
    %c0_i32_1 = arith.constant 0 : i32
    return %c0_i32, %c0_i32_0 : i32, i32
  }
  func.func @transform_2(%arg0: i32) -> (i32, i32) {
    %c0_i32 = arith.constant 0 : i32
    %c0_i32_0 = arith.constant 0 : i32
    %c0_i32_1 = arith.constant 0 : i32
    return %c0_i32, %c0_i32_0 : i32, i32
  }
  func.func @transform_3(%arg0: i32) -> (i32, i32) {
    %c0_i32 = arith.constant 0 : i32
    %c0_i32_0 = arith.constant 0 : i32
    %c0_i32_1 = arith.constant 0 : i32
    return %c0_i32, %c0_i32_0 : i32, i32
  }
  func.func @transform_4(%arg0: i32) -> (i32, i32, i32) {
    %c0_i32 = arith.constant 0 : i32
    %c0_i32_0 = arith.constant 0 : i32
    %c0_i32_1 = arith.constant 0 : i32
    return %arg0, %c0_i32, %c0_i32_0 : i32, i32, i32
  }
}

</mosaic_0001>

<bundles_post_ra>
// kernel: unet_forward.5
= control target key start
LH: loop header
LB: loop body
LE: loop exit
PB: predicated region body
PF: predicated region fallthrough
CT: control target
= control target key end

     0   :  { %s2378_s27 = smov 0   ;;  %s3415_s0 = inlined_call_operand.vmem [shape: bf16[2,8,961], index: 0, kind: input, shape index: {}]   ;;  %s3416_s1 = inlined_call_operand.vmem [shape: s32[1,961], index: 1, kind: input, shape index: {}]   ;;  %s3417_s2 = inlined_call_operand.vmem [shape: bf16[8,8], index: 2, kind: input, shape index: {}]   ;;  %s3418_s3 = inlined_call_operand.vmem [shape: f32[8,1], index: 3, kind: input, shape index: {}]   ;;  %s3419_s4 = inlined_call_operand.vmem [shape: bf16[8,72], index: 4, kind: input, shape index: {}]   ;;  %s3420_s5 = inlined_call_operand.vmem [shape: f32[8,3], index: 5, kind: input, shape index: {}]   ;;  %s3421_s6 = inlined_call_operand.vmem [shape: bf16[8,72], index: 6, kind: input, shape index: {}]   ;;  %s3422_s7 = inlined_call_operand.vmem [shape: f32[8,3], index: 7, kind: input, shape index: {}]   ;;  %s3423_s8 = inlined_call_operand.vmem [shape: bf16[2,8,837], index: 8, kind: output, shape index: {}]  }
   0x1 LB: > { %s2122_s28 = sadd.s32 4294967295, %s2317_s27   ;;  %p2126_p0 = scmp.ge.s32.totalorder %s2317_s27, 1  ;;  %s2317_s27 = sphi %s2378_s27, %s18_s27  }
   0x2   : > { %p262_p1 = scmp.lt.s32.totalorder %s2317_s27, 3 }
   0x4   : > { %p263_p2 = pnand %p2126_p0, %p262_p1 }
   0x5   : > { %p296_p3 = scmp.lt.s32.totalorder (!%p263_p2), %s2122_s28, 1  ;;  %v2319_v0 = vmov (!%p263_p2), 0   ;;  %v337_v1 = vld [vmem:[%s3418_s3] sm:$0xff] (!%p263_p2)  ;;  %vm347_vm0 = vcmask (!%p263_p2), 1043456   ;;  %vm3426_vm1 = vcmask (!%p263_p2), 531456   ;;  %vm343_vm2 = vcmask (!%p263_p2), 64512  }
   0x6   : > { %266 = sbr.rel (%p263_p2) target bundleno = 2089 (0x829), region = 52  ;;  %403 = vmatprep.mubr.bf16.mxu0 (!%p263_p2), %v2319_v0  ;;  %444 = vmatprep.mubr.bf16.mxu1 (!%p263_p2), %v2319_v0  ;;  %v336_v16 = vld [vmem:[%s3417_s2] sm:$0xf] (!%p263_p2)  ;;  %v537_v20 = vlaneseq (!%p263_p2)  ;;  %s2320_s17 = smov (!%p263_p2), 126   ;;  %vm629_vm12 = vcmask (!%p263_p2), 1039360   ;;  %vm653_vm13 = vcmask (!%p263_p2), 1031168  }
   0x7   : > { %2230 = vset.pattern.permute.xlu0 (!%p263_p2), %v2319_v0  ;;  %2231 = vset.pattern.permute.xlu1 (!%p263_p2), %v2319_v0  ;;  %v2418_v21 = vld [vmem:[%s3416_s1] sm:$0xff] (!%p263_p2)  ;;  %s2321_s18 = smov (!%p263_p2), 96   ;;  %s2322_s19 = smov (!%p263_p2), 66   ;;  %vm3428_vm14 = vcmask (!%p263_p2), 793600   ;;  %vm701_vm15 = vcmask (!%p263_p2), 785408  }
   0x8   : > { %340 = vperm.xlu0 (!%p263_p2), %2230, %v337_v1   ;;  %v2420_v22 = vshrl.u32 (!%p263_p2), %v537_v20, 7  ;;  %vm535_vm3 = vcmp.lt.s32.totalorder (!%p263_p2), %v2418_v21, 31  ;;  %s2323_s20 = smov (!%p263_p2), 64   ;;  %s2324_s21 = smov (!%p263_p2), 127  }
   0x9   : > { %v2430_v25 = vsel (!%p263_p2), %vm535_vm3, 1, %v2319_v0  ;;  %s2325_s22 = smov (!%p263_p2), 97   ;;  %s2326_s23 = smov (!%p263_p2), 95   ;;  %vm749_vm3 = vcmask (!%p263_p2), 539648  }
   0xa   : > { %v2424_v23 = vsub.s32 (!%p263_p2), 0, %v2420_v22  ;;  %v2427_v24 = vsub.s32 (!%p263_p2), 2, %v2420_v22  ;;  %v2439_v31 = vsub.s32 (!%p263_p2), 6, %v2420_v22  ;;  %v2444_v36 = vsub.s32 (!%p263_p2), 5, %v2420_v22  ;;  %s2327_s24 = smov (!%p263_p2), 65  }
   0xb   : > { %v567_v37 = vsub.s32 (!%p263_p2), 7, %v2420_v22  ;;  %v2448_v38 = vsub.s32 (!%p263_p2), 1, %v2420_v22  ;;  %v2464_v51 = vsub.s32 (!%p263_p2), 3, %v2420_v22 }
   0xc   : > { %v540_v26 = vrot.slane (!%p263_p2), %v2430_v25, %v2424_v23  ;;  %v548_v27 = vrot.slane (!%p263_p2), %v2430_v25, %v2427_v24  ;;  %v564_v47 = vrot.slane (!%p263_p2), %v2430_v25, %v2439_v31  ;;  %v560_v48 = vrot.slane (!%p263_p2), %v2430_v25, %v2444_v36 }
   0xd   : > { %s3488_s28 = smov (!%p296_p3, %s2122_s28), 1  ;;  %v568_v49 = vrot.slane %v2430_v25, %v567_v37  ;;  %v544_v50 = vrot.slane %v2430_v25, %v2448_v38  ;;  %v552_v59 = vrot.slane %v2430_v25, %v2464_v51 }
   0xe   : > { %s2182_s9 = sshll.u32 %s3488_s28, 5  ;;  %vm569_vm4 = vcmp.eq.s32.totalorder %v540_v26, 1  ;;  %vm571_vm5 = vcmp.eq.s32.totalorder %v548_v27, 1  ;;  %vm2470_vm6 = vcmp.eq.s32.totalorder %v564_v47, 1  ;;  %vm574_vm7 = vcmp.eq.s32.totalorder %v560_v48, 1  ;;  %s2207_s16 = smul.u32 28, %s3488_s28 }
   0xf   : > { %s300_s12 = scalar_lea.vmem %s3415_s0, %s2182_s9  ;;  %vm576_vm8 = vcmp.eq.s32.totalorder %v568_v49, 1  ;;  %vm570_vm9 = vcmp.eq.s32.totalorder %v544_v50, 1  ;;  %vm572_vm10 = vcmp.eq.s32.totalorder %v552_v59, 1  ;;  %s2328_s9 = smov 1  }
  0x10   : > { %v307_v2 = vld [vmem:[%s300_s12] sm:$0xff]  ;;  %v308_v3 = vld [vmem:[%s300_s12 + $0x8] sm:$0xff]  ;;  %v309_v4 = vld [vmem:[%s300_s12 + $0x10] sm:$0xff] }
  0x11   : > { %v2131_v5 = vcombine.high %v307_v2, %v307_v2  ;;  %v2133_v6 = vcombine.high %v308_v3, %v308_v3  ;;  %v2130_v7 = vcombine.low %v307_v2, %v307_v2  ;;  %v2132_v8 = vcombine.low %v308_v3, %v308_v3  ;;  %v310_v9 = vld [vmem:[%s300_s12 + $0x18] sm:$0xff] }
  0x12   : > { %v2135_v10 = vcombine.high %v309_v4, %v309_v4  ;;  %v2137_v11 = vcombine.high %v310_v9, %v310_v9  ;;  %v2134_v12 = vcombine.low %v309_v4, %v309_v4  ;;  %v2136_v13 = vcombine.low %v310_v9, %v310_v9 }
  0x13   : > { %2138 = vmatprep.subr.msk.bf16.mxu0 %vm347_vm0, %v2131_v5  ;;  %2140 = vmatprep.subr.msk.bf16.mxu1 %vm347_vm0, %v2133_v6  ;;  %v349_v14 = vsel %vm347_vm0, %v2130_v7, 0  ;;  %v355_v15 = vsel %vm347_vm0, %v2132_v8, 0 }
  0x14   : > { %372 = vmatpush1.bf16.msra.mxu0 %v349_v14  ;;  %413 = vmatpush1.bf16.msra.mxu1 %v355_v15  ;;  %v335_v17 = vsel %vm3426_vm1, %v2137_v11, 0  ;;  %v361_v18 = vsel %vm347_vm0, %v2134_v12, 0  ;;  %v367_v19 = vsel %vm347_vm0, %v2136_v13, 0  ;;  %v2520_v13 = vsub.s32 4, %v2420_v22 }
  0x15   : > { %2142 = vmatprep.subr.msk.bf16.mxu0 %vm347_vm0, %v2135_v10  ;;  %2144 = vmatprep.subr.msk.bf16.mxu1 %vm347_vm0, %v335_v17 }
  0x16   : > { %v556_v14 = vrot.slane %v2430_v25, %v2520_v13 }
  0x17   : > { %2139 = vmatmul.mubr.msk.bf16.vlgmr.msra.gmra.mrb[0].mxu0 %vm343_vm2, %v336_v16  ;;  %2141 = vmatmul.mubr.msk.bf16.vlgmr.msra.gmra.mrb[0].mxu1 %vm343_vm2, %v336_v16 }
  0x18   : > { %454 = vmatpush1.bf16.msra.mxu0 %v361_v18  ;;  %495 = vmatpush1.bf16.msra.mxu1 %v367_v19  ;;  %vm573_vm11 = vcmp.eq.s32.totalorder %v556_v14, 1 }
  0x19   : > { %485 = vmatprep.mubr.bf16.mxu0 %v2319_v0  ;;  %526 = vmatprep.mubr.bf16.mxu1 %v2319_v0 }
  0x1f   : > { %2143 = vmatmul.mubr.msk.bf16.vlgmr.msra.gmra.mrb[4].mxu0 %vm343_vm2, %v336_v16  ;;  %2145 = vmatmul.mubr.msk.bf16.vlgmr.msra.gmra.mrb[4].mxu1 %vm343_vm2, %v336_v16  ;;  %vm3427_vm2 = vcmask 777216  }
  0x20   : > { %997 = vmatprep.mubr.bf16.mxu0 %v2319_v0  ;;  %1038 = vmatprep.mubr.bf16.mxu1 %v2319_v0 }
  0x87   : > { %v2436_v28 = vpop.permute.xlu0 %340 }
  0xea   : > { %v405_v29 = vpop.f32.mrb[0].mxu0  ;;  %v446_v30 = vpop.f32.mrb[0].mxu1 }
  0xeb   : > { %v406_v32 = vadd.f32 %v405_v29, %v2436_v28  ;;  %v447_v33 = vadd.f32 %v446_v30, %v2436_v28  ;;  %v407_v34 = vpop.f32.mrb[1].mxu0  ;;  %v448_v35 = vpop.f32.mrb[1].mxu1 }
  0xec   : > { %v450_v39 = vpop.f32.mrb[2].mxu1  ;;  %v409_v40 = vpop.f32.mrb[2].mxu0  ;;  %v408_v55 = vadd.f32 %v407_v34, %v2436_v28  ;;  %v449_v7 = vadd.f32 %v448_v35, %v2436_v28 }
  0xed   : > { %v577_v41 = vsel %vm569_vm4, %v406_v32, 0.0  ;;  %v579_v42 = vsel %vm571_vm5, %v447_v33, 0.0  ;;  %v451_v43 = vpop.f32.mrb[3].mxu1  ;;  %v410_v44 = vpop.f32.mrb[3].mxu0  ;;  %vm3425_vm4 = vcmask 523264   ;;  %vm3424_vm5 = vcmask 588800  }
  0xee   : > { %v2450_v45 = vpack.c.bf16 %v577_v41, %v577_v41  ;;  %v2452_v46 = vpack.c.bf16 %v579_v42, %v579_v42  ;;  %v578_v6 = vsel %vm570_vm9, %v408_v55, 0.0  ;;  %v580_v9 = vsel %vm572_vm10, %v449_v7, 0.0  ;;  %v2617_v42 = vld [vmem:[%s3420_s5] sm:$0xff] }
  0xef   : > { %v2493_v8 = vpack.c.bf16 %v578_v6, %v578_v6  ;;  %v2499_v10 = vpack.c.bf16 %v580_v9, %v580_v9 }
  0xf0   : > { %641 = vrot.lane.b32.xlu1 %v2452_v46, %s2320_s17  ;;  %637 = vrot.lane.b32.xlu0 %v2450_v45, %s2320_s17  ;;  %v607_v11 = vrot.slane %v2452_v46, 4  ;;  %v605_v12 = vrot.slane %v2450_v45, 4 }
  0xf1   : > { %v606_v15 = vrot.slane %v2493_v8, 4  ;;  %v608_v17 = vrot.slane %v2499_v10, 4 }
  0xf2   : > { %v487_v52 = vpop.f32.mrb[4].mxu0  ;;  %v528_v53 = vpop.f32.mrb[4].mxu1 }
  0xf3   : > { %v529_v56 = vadd.f32 %v528_v53, %v2436_v28  ;;  %v489_v57 = vpop.f32.mrb[5].mxu0  ;;  %v530_v58 = vpop.f32.mrb[5].mxu1  ;;  %v488_v16 = vadd.f32 %v487_v52, %v2436_v28 }
  0xf4   : > { %v490_v60 = vadd.f32 %v489_v57, %v2436_v28  ;;  %v531_v61 = vadd.f32 %v530_v58, %v2436_v28  ;;  %689 = vrot.lane.b32.xlu1 %v2452_v46, %s2321_s18  ;;  %685 = vrot.lane.b32.xlu0 %v2450_v45, %s2321_s18  ;;  %v491_v62 = vpop.f32.mrb[6].mxu0  ;;  %v532_v63 = vpop.f32.mrb[6].mxu1 }
  0xf5   : > { %v583_v1 = vsel %vm2470_vm6, %v529_v56, 0.0  ;;  %v492_v2 = vpop.f32.mrb[7].mxu0  ;;  %v533_v3 = vpop.f32.mrb[7].mxu1  ;;  %v581_v18 = vsel %vm573_vm11, %v488_v16, 0.0  ;;  %vm1129_vm6 = vcmp.lt.s32.totalorder %v2418_v21, 29 }
  0xf6   : > { %v582_v4 = vsel %vm574_vm7, %v490_v60, 0.0  ;;  %v2486_v5 = vsel %vm576_vm8, %v531_v61, 0.0  ;;  %v2537_v19 = vpack.c.bf16 %v581_v18, %v581_v18  ;;  %v2548_v20 = vpack.c.bf16 %v583_v1, %v583_v1 }
  0xf7   : > { %v2556_v25 = vpack.c.bf16 %v582_v4, %v582_v4  ;;  %v592_v28 = vpack.c.bf16 %v2486_v5, %v2486_v5 }
  0xf8   : > { %737 = vrot.lane.b32.xlu1 %v2452_v46, %s2322_s19  ;;  %733 = vrot.lane.b32.xlu0 %v2450_v45, %s2322_s19  ;;  %v609_v26 = vrot.slane %v2537_v19, 4  ;;  %v611_v27 = vrot.slane %v2548_v20, 4 }
  0xf9   : > { %v610_v29 = vrot.slane %v2556_v25, 4  ;;  %v2583_v30 = vsel %vm3426_vm1, %v592_v28, 0 }
  0xfa   : > { %v612_v32 = vrot.slane %v2583_v30, 4 }
  0xfc   : > { %783 = vrot.lane.b32.xlu1 %v2493_v8, %s2323_s20  ;;  %781 = vrot.lane.b32.xlu0 %v2450_v45, %s2323_s20 }
 0x100   : > { %787 = vrot.lane.b32.xlu1 %v2499_v10, %s2323_s20  ;;  %785 = vrot.lane.b32.xlu0 %v2452_v46, %s2323_s20 }
 0x104   : > { %617 = vrot.lane.b32.xlu1 %v607_v11, %s2324_s21  ;;  %639 = vrot.lane.b32.xlu0 %v2493_v8, %s2320_s17 }
 0x108   : > { %643 = vrot.lane.b32.xlu0 %v2499_v10, %s2320_s17  ;;  %613 = vrot.lane.b32.xlu1 %v605_v12, %s2324_s21 }
 0x10c   : > { %687 = vrot.lane.b32.xlu0 %v2493_v8, %s2321_s18  ;;  %665 = vrot.lane.b32.xlu1 %v607_v11, %s2325_s22 }
 0x110   : > { %691 = vrot.lane.b32.xlu0 %v2499_v10, %s2321_s18  ;;  %661 = vrot.lane.b32.xlu1 %v605_v12, %s2325_s22 }
 0x114   : > { %735 = vrot.lane.b32.xlu0 %v2493_v8, %s2322_s19  ;;  %713 = vrot.lane.b32.xlu1 %v607_v11, %s2326_s23 }
 0x118   : > { %739 = vrot.lane.b32.xlu0 %v2499_v10, %s2322_s19  ;;  %709 = vrot.lane.b32.xlu1 %v605_v12, %s2326_s23 }
 0x11c   : > { %615 = vrot.lane.b32.xlu0 %v606_v15, %s2324_s21  ;;  %761 = vrot.lane.b32.xlu1 %v607_v11, %s2327_s24 }
 0x120   : > { %619 = vrot.lane.b32.xlu0 %v608_v17, %s2324_s21  ;;  %757 = vrot.lane.b32.xlu1 %v605_v12, %s2327_s24 }
 0x124   : > { %663 = vrot.lane.b32.xlu0 %v606_v15, %s2325_s22  ;;  %645 = vrot.lane.b32.xlu1 %v2537_v19, %s2320_s17 }
 0x128   : > { %667 = vrot.lane.b32.xlu0 %v608_v17, %s2325_s22  ;;  %693 = vrot.lane.b32.xlu1 %v2537_v19, %s2321_s18 }
 0x12c   : > { %711 = vrot.lane.b32.xlu0 %v606_v15, %s2326_s23  ;;  %741 = vrot.lane.b32.xlu1 %v2537_v19, %s2322_s19 }
 0x130   : > { %715 = vrot.lane.b32.xlu0 %v608_v17, %s2326_s23  ;;  %697 = vrot.lane.b32.xlu1 %v2548_v20, %s2321_s18 }
 0x134   : > { %759 = vrot.lane.b32.xlu0 %v606_v15, %s2327_s24  ;;  %745 = vrot.lane.b32.xlu1 %v2548_v20, %s2322_s19 }
 0x138   : > { %763 = vrot.lane.b32.xlu0 %v608_v17, %s2327_s24  ;;  %647 = vrot.lane.b32.xlu1 %v2556_v25, %s2320_s17 }
 0x13c   : > { %789 = vrot.lane.b32.xlu0 %v2537_v19, %s2323_s20  ;;  %621 = vrot.lane.b32.xlu1 %v609_v26, %s2324_s21 }
 0x140   : > { %649 = vrot.lane.b32.xlu0 %v2548_v20, %s2320_s17  ;;  %669 = vrot.lane.b32.xlu1 %v609_v26, %s2325_s22 }
 0x144   : > { %695 = vrot.lane.b32.xlu0 %v2556_v25, %s2321_s18  ;;  %717 = vrot.lane.b32.xlu1 %v609_v26, %s2326_s23 }
 0x148   : > { %743 = vrot.lane.b32.xlu0 %v2556_v25, %s2322_s19  ;;  %765 = vrot.lane.b32.xlu1 %v609_v26, %s2327_s24 }
 0x14c   : > { %625 = vrot.lane.b32.xlu0 %v611_v27, %s2324_s21  ;;  %721 = vrot.lane.b32.xlu1 %v611_v27, %s2326_s23 }
 0x150   : > { %673 = vrot.lane.b32.xlu0 %v611_v27, %s2325_s22  ;;  %769 = vrot.lane.b32.xlu1 %v611_v27, %s2327_s24 }
 0x154   : > { %651 = vrot.lane.b32.xlu0 %v2583_v30, %s2320_s17  ;;  %623 = vrot.lane.b32.xlu1 %v610_v29, %s2324_s21 }
 0x158   : > { %699 = vrot.lane.b32.xlu0 %v2583_v30, %s2321_s18  ;;  %671 = vrot.lane.b32.xlu1 %v610_v29, %s2325_s22 }
 0x15c   : > { %719 = vrot.lane.b32.xlu0 %v610_v29, %s2326_s23  ;;  %627 = vrot.lane.b32.xlu1 %v612_v32, %s2324_s21 }
 0x160   : > { %767 = vrot.lane.b32.xlu0 %v610_v29, %s2327_s24  ;;  %675 = vrot.lane.b32.xlu1 %v612_v32, %s2325_s22 }
 0x162   : > { %v2596_v33 = vpop.permute.xlu1 %641  ;;  %v638_v34 = vpop.permute.xlu0 %637 }
 0x164   : > { %747 = vrot.lane.b32.xlu0 %v2583_v30, %s2322_s19  ;;  %723 = vrot.lane.b32.xlu1 %v612_v32, %s2326_s23 }
 0x166   : > { %v2601_v35 = vpop.permute.xlu1 %689  ;;  %v686_v39 = vpop.permute.xlu0 %685 }
 0x168   : > { %791 = vrot.lane.b32.xlu0 %v2556_v25, %s2323_s20  ;;  %771 = vrot.lane.b32.xlu1 %v612_v32, %s2327_s24 }
 0x16a   : > { %v2606_v40 = vpop.permute.xlu1 %737  ;;  %v2608_v41 = vpop.permute.xlu0 %733 }
 0x16c   : > { %795 = vrot.lane.b32.xlu0 %v2583_v30, %s2323_s20  ;;  %793 = vrot.lane.b32.xlu1 %v2548_v20, %s2323_s20 }
 0x16e   : > { %v2619_v43 = vpop.permute.xlu1 %783  ;;  %v2621_v44 = vpop.permute.xlu0 %781 }
 0x170   : > { %934 = vperm.xlu1 %2231, %v2617_v42  }
 0x172   : > { %v2624_v47 = vpop.permute.xlu1 %787  ;;  %v2626_v48 = vpop.permute.xlu0 %785 }
 0x176   : > { %v2628_v49 = vpop.permute.xlu1 %617  ;;  %v640_v50 = vpop.permute.xlu0 %639 }
 0x177   : > { %v654_v11 = vsel %vm653_vm13, %v638_v34, %v640_v50  ;;  %v655_v12 = vsel %vm653_vm13, %v640_v50, %v2596_v33 }
 0x17a   : > { %v2630_v52 = vpop.permute.xlu0 %643  ;;  %v614_v53 = vpop.permute.xlu1 %613 }
 0x17e   : > { %v688_v54 = vpop.permute.xlu0 %687  ;;  %v2632_v55 = vpop.permute.xlu1 %665 }
 0x17f   : > { %v702_v27 = vsel %vm701_vm15, %v686_v39, %v688_v54  ;;  %v703_v28 = vsel %vm701_vm15, %v688_v54, %v2601_v35 }
 0x182   : > { %v2634_v56 = vpop.permute.xlu0 %691  ;;  %v662_v57 = vpop.permute.xlu1 %661 }
 0x186   : > { %v736_v58 = vpop.permute.xlu0 %735  ;;  %v2636_v59 = vpop.permute.xlu1 %713 }
 0x187   : > { %v750_v54 = vsel %vm749_vm3, %v2608_v41, %v736_v58 }
 0x18a   : > { %v2638_v60 = vpop.permute.xlu0 %739  ;;  %v710_v61 = vpop.permute.xlu1 %709 }
 0x18e   : > { %v616_v62 = vpop.permute.xlu0 %615  ;;  %v2640_v63 = vpop.permute.xlu1 %761 }
 0x18f   : > { %v630_v1 = vsel %vm629_vm12, %v614_v53, %v616_v62  ;;  %v631_v2 = vsel %vm629_vm12, %v616_v62, %v2628_v49 }
 0x190   : > { %v811_v3 = vsel %vm347_vm0, %v2493_v8, %v631_v2  ;;  %v807_v4 = vsel %vm347_vm0, %v2450_v45, %v630_v1 }
 0x191   : > { %965 = vmatprep.subr.bf16.mxu0 %v811_v3 }
 0x192   : > { %v620_v5 = vpop.permute.xlu0 %619  ;;  %966 = vmatpush1.bf16.msra.mxu0 %v807_v4  ;;  %v758_v6 = vpop.permute.xlu1 %757 }
 0x196   : > { %v664_v7 = vpop.permute.xlu0 %663  ;;  %v2649_v9 = vpop.permute.xlu1 %645 }
 0x197   : > { %v678_v14 = vsel %vm3428_vm14, %v662_v57, %v664_v7  ;;  %v679_v8 = vsel %vm3428_vm14, %v664_v7, %v2632_v55  ;;  %v798_v7 = vsel %vm3425_vm4, %v2621_v44, %v2619_v43  ;;  %v2701_v44 = vld [vmem:[%s3419_s4] sm:$0xf] }
 0x198   : > { %v842_v45 = vsel %vm347_vm0, %v655_v12, %v679_v8  ;;  %v838_v15 = vsel %vm347_vm0, %v654_v11, %v678_v14  ;;  %v632_v12 = vsel %vm629_vm12, %v2628_v49, %v620_v5 }
 0x199   : > { %967 = vmatprep.subr.bf16.mxu0 %v842_v45 }
 0x19a   : > { %v668_v16 = vpop.permute.xlu0 %667  ;;  %968 = vmatpush1.bf16.msra.mxu0 %v838_v15  ;;  %v2659_v17 = vpop.permute.xlu1 %693  ;;  %v815_v15 = vsel %vm347_vm0, %v2452_v46, %v632_v12  ;;  %v656_v46 = vsel %vm653_vm13, %v2596_v33, %v2630_v52  ;;  %v704_v33 = vsel %vm701_vm15, %v2601_v35, %v2634_v56  ;;  %v752_v35 = vsel %vm749_vm3, %v2606_v40, %v2638_v60 }
 0x19b   : > { %v680_v49 = vsel %vm3428_vm14, %v2632_v55, %v668_v16 }
 0x19c   : > { %v846_v55 = vsel %vm347_vm0, %v656_v46, %v680_v49 }
 0x19e   : > { %v712_v18 = vpop.permute.xlu0 %711  ;;  %v2661_v26 = vpop.permute.xlu1 %741 }
 0x19f   : > { %v726_v29 = vsel %vm3427_vm2, %v710_v61, %v712_v18  ;;  %v727_v32 = vsel %vm3427_vm2, %v712_v18, %v2636_v59  ;;  %v751_v61 = vsel %vm749_vm3, %v736_v58, %v2606_v40  ;;  %v799_v58 = vsel %vm3425_vm4, %v2619_v43, %v2626_v48 }
 0x1a0   : > { %v874_v34 = vsel %vm347_vm0, %v703_v28, %v727_v32  ;;  %v870_v50 = vsel %vm347_vm0, %v702_v27, %v726_v29 }
 0x1a1   : > { %969 = vmatprep.subr.bf16.mxu0 %v874_v34 }
 0x1a2   : > { %v716_v53 = vpop.permute.xlu0 %715  ;;  %970 = vmatpush1.bf16.msra.mxu0 %v870_v50  ;;  %v2671_v57 = vpop.permute.xlu1 %697  ;;  %v705_v50 = vsel %vm701_vm15, %v2634_v56, %v2659_v17 }
 0x1a3   : > { %v728_v29 = vsel %vm3427_vm2, %v2636_v59, %v716_v53 }
 0x1a6   : > { %v760_v39 = vpop.permute.xlu0 %759  ;;  %v2673_v62 = vpop.permute.xlu1 %745 }
 0x1a7   : > { %v774_v1 = vsel %vm3426_vm1, %v758_v6, %v760_v39  ;;  %v775_v2 = vsel %vm3426_vm1, %v760_v39, %v2640_v63  ;;  %v942_v6 = vsel %vm347_vm0, %v798_v7, 0  ;;  %v878_v39 = vsel %vm347_vm0, %v704_v33, %v728_v29 }
 0x1a8   : > { %v906_v3 = vsel %vm347_vm0, %v751_v61, %v775_v2  ;;  %v902_v4 = vsel %vm347_vm0, %v750_v54, %v774_v1  ;;  %v753_v1 = vsel %vm749_vm3, %v2638_v60, %v2661_v26 }
 0x1a9   : > { %971 = vmatprep.subr.bf16.mxu0 %v906_v3 }
 0x1aa   : > { %v764_v11 = vpop.permute.xlu0 %763  ;;  %972 = vmatpush1.bf16.msra.mxu0 %v902_v4  ;;  %v2687_v41 = vpop.permute.xlu1 %647 }
 0x1ab   : > { %2146 = vmatprep.subr.msk.bf16.mxu0 %vm347_vm0, %v799_v58  ;;  %v776_v59 = vsel %vm3426_vm1, %v2640_v63, %v764_v11  ;;  %v800_v63 = vsel %vm3425_vm4, %v2626_v48, %v2624_v47  ;;  %v658_v49 = vsel %vm653_vm13, %v2649_v9, %v2687_v41 }
 0x1ac   : > { %v910_v2 = vsel %vm347_vm0, %v752_v35, %v776_v59  ;;  %v948_v40 = vsel %vm347_vm0, %v800_v63, 0 }
 0x1ae   : > { %v2696_v14 = vpop.permute.xlu0 %789  ;;  %974 = vmatpush1.bf16.msra.mxu0 %v942_v6  ;;  %v622_v8 = vpop.permute.xlu1 %621 }
 0x1af   : > { %v633_v45 = vsel %vm629_vm12, %v620_v5, %v622_v8  ;;  %v801_v7 = vsel %vm3425_vm4, %v2624_v47, %v2696_v14 }
 0x1b0   : > { %v819_v43 = vsel %vm347_vm0, %v2499_v10, %v633_v45  ;;  %v657_v10 = vsel %vm653_vm13, %v2630_v52, %v2649_v9 }
 0x1b1   : > { %1006 = vmatprep.subr.bf16.mxu1 %v819_v43  ;;  %2147 = vmatmul.mubr.msk.bf16.vlgmr.msra.gmra.mrb[8].mxu0 %vm3424_vm5, %v2701_v44 }
 0x1b2   : > { %v2712_v18 = vpop.permute.xlu0 %649  ;;  %1007 = vmatpush1.bf16.msra.mxu1 %v815_v15  ;;  %v670_v27 = vpop.permute.xlu1 %669  ;;  %1079 = vmatprep.mubr.bf16.mxu0 %v2319_v0 }
 0x1b3   : > { %v681_v5 = vsel %vm3428_vm14, %v668_v16, %v670_v27 }
 0x1b4   : > { %v850_v28 = vsel %vm347_vm0, %v657_v10, %v681_v5 }
 0x1b5   : > { %1008 = vmatprep.subr.bf16.mxu1 %v850_v28 }
 0x1b6   : > { %v696_v32 = vpop.permute.xlu0 %695  ;;  %1009 = vmatpush1.bf16.msra.mxu1 %v846_v55  ;;  %v718_v34 = vpop.permute.xlu1 %717 }
 0x1b7   : > { %v729_v16 = vsel %vm3427_vm2, %v716_v53, %v718_v34  ;;  %v706_v46 = vsel %vm701_vm15, %v2659_v17, %v696_v32  ;;  %v707_v28 = vsel %vm701_vm15, %v696_v32, %v2671_v57 }
 0x1b8   : > { %v882_v52 = vsel %vm347_vm0, %v705_v50, %v729_v16 }
 0x1b9   : > { %1010 = vmatprep.subr.bf16.mxu1 %v882_v52 }
 0x1ba   : > { %v744_v54 = vpop.permute.xlu0 %743  ;;  %1011 = vmatpush1.bf16.msra.mxu1 %v878_v39  ;;  %v766_v61 = vpop.permute.xlu1 %765 }
 0x1bb   : > { %v777_v53 = vsel %vm3426_vm1, %v764_v11, %v766_v61  ;;  %v755_v33 = vsel %vm749_vm3, %v744_v54, %v2673_v62 }
 0x1bc   : > { %v914_v56 = vsel %vm347_vm0, %v753_v1, %v777_v53 }
 0x1bd   : > { %1012 = vmatprep.subr.bf16.mxu1 %v914_v56 }
 0x1be   : > { %v626_v3 = vpop.permute.xlu0 %625  ;;  %1013 = vmatpush1.bf16.msra.mxu1 %v910_v2  ;;  %v722_v4 = vpop.permute.xlu1 %721 }
 0x1bf   : > { %2148 = vmatprep.subr.msk.bf16.mxu1 %vm347_vm0, %v801_v7 }
 0x1c2   : > { %v674_v60 = vpop.permute.xlu0 %673  ;;  %1015 = vmatpush1.bf16.msra.mxu1 %v948_v40  ;;  %v2754_v11 = vpop.permute.xlu1 %769 }
 0x1c5   : > { %2149 = vmatmul.mubr.msk.bf16.vlgmr.msra.gmra.mrb[8].mxu1 %vm3424_vm5, %v2701_v44 }
 0x1c6   : > { %v652_v58 = vpop.permute.xlu0 %651  ;;  %v624_v48 = vpop.permute.xlu1 %623  ;;  %1120 = vmatprep.mubr.bf16.mxu1 %v2319_v0 }
 0x1c7   : > { %v634_v6 = vsel %vm629_vm12, %v622_v8, %v624_v48  ;;  %v635_v12 = vsel %vm629_vm12, %v624_v48, %v626_v3  ;;  %v659_v8 = vsel %vm653_vm13, %v2687_v41, %v2712_v18  ;;  %v660_v52 = vsel %vm653_vm13, %v2712_v18, %v652_v58 }
 0x1c8   : > { %v827_v47 = vsel %vm347_vm0, %v2556_v25, %v635_v12  ;;  %v823_v45 = vsel %vm347_vm0, %v2537_v19, %v634_v6 }
 0x1c9   : > { %1047 = vmatprep.subr.bf16.mxu0 %v827_v47 }
 0x1ca   : > { %v700_v43 = vpop.permute.xlu0 %699  ;;  %1048 = vmatpush1.bf16.msra.mxu0 %v823_v45  ;;  %v672_v15 = vpop.permute.xlu1 %671 }
 0x1cb   : > { %v682_v10 = vsel %vm3428_vm14, %v670_v27, %v672_v15  ;;  %v683_v5 = vsel %vm3428_vm14, %v672_v15, %v674_v60 }
 0x1cc   : > { %v858_v25 = vsel %vm347_vm0, %v659_v8, %v683_v5  ;;  %v854_v19 = vsel %vm347_vm0, %v658_v49, %v682_v10 }
 0x1cd   : > { %1049 = vmatprep.subr.bf16.mxu0 %v858_v25 }
 0x1ce   : > { %v720_v9 = vpop.permute.xlu0 %719  ;;  %1050 = vmatpush1.bf16.msra.mxu0 %v854_v19  ;;  %v628_v55 = vpop.permute.xlu1 %627  ;;  %v1130_v19 = vsel %vm1129_vm6, 1, %v2319_v0 }
 0x1cf   : > { %v730_v41 = vsel %vm3427_vm2, %v718_v34, %v720_v9  ;;  %v731_v27 = vsel %vm3427_vm2, %v720_v9, %v722_v4  ;;  %v636_v29 = vsel %vm629_vm12, %v626_v3, %v628_v55  ;;  %v834_v50 = vsel %vm347_vm0, %v2583_v30, %v628_v55 }
 0x1d0   : > { %1088 = vmatprep.subr.bf16.mxu1 %v834_v50  ;;  %v890_v16 = vsel %vm347_vm0, %v707_v28, %v731_v27  ;;  %v831_v17 = vsel %vm347_vm0, %v2548_v20, %v636_v29  ;;  %v886_v32 = vsel %vm347_vm0, %v706_v46, %v730_v41  ;;  %v754_v34 = vsel %vm749_vm3, %v2661_v26, %v744_v54 }
 0x1d1   : > { %1051 = vmatprep.subr.bf16.mxu0 %v890_v16  ;;  %1089 = vmatpush1.bf16.msra.mxu1 %v831_v17  ;;  %v1134_v28 = vrot.slane %v1130_v19, %v2424_v23  ;;  %v1142_v41 = vrot.slane %v1130_v19, %v2427_v24 }
 0x1d2   : > { %v768_v30 = vpop.permute.xlu0 %767  ;;  %1052 = vmatpush1.bf16.msra.mxu0 %v886_v32  ;;  %v676_v39 = vpop.permute.xlu1 %675  ;;  %v1146_v32 = vrot.slane %v1130_v19, %v2464_v51 }
 0x1d3   : > { %v778_v59 = vsel %vm3426_vm1, %v766_v61, %v768_v30  ;;  %v779_v20 = vsel %vm3426_vm1, %v768_v30, %v2754_v11  ;;  %v684_v1 = vsel %vm3428_vm14, %v674_v60, %v676_v39  ;;  %v866_v53 = vsel %vm347_vm0, %v652_v58, %v676_v39 }
 0x1d4   : > { %1090 = vmatprep.subr.bf16.mxu1 %v866_v53  ;;  %v922_v26 = vsel %vm347_vm0, %v755_v33, %v779_v20  ;;  %v862_v54 = vsel %vm347_vm0, %v660_v52, %v684_v1  ;;  %v918_v35 = vsel %vm347_vm0, %v754_v34, %v778_v59  ;;  %v708_v61 = vsel %vm701_vm15, %v2671_v57, %v700_v43 }
 0x1d5   : > { %1053 = vmatprep.subr.bf16.mxu0 %v922_v26  ;;  %1091 = vmatpush1.bf16.msra.mxu1 %v862_v54  ;;  %vm2836_vm7 = vcmp.eq.s32.totalorder %v1134_v28, 1  ;;  %vm2852_vm9 = vcmp.eq.s32.totalorder %v1142_v41, 1  ;;  %vm2862_vm10 = vcmp.eq.s32.totalorder %v1146_v32, 1  ;;  %v1150_v53 = vrot.slane %v1130_v19, %v2520_v13 }
 0x1d6   : > { %v748_v18 = vpop.permute.xlu0 %747  ;;  %1054 = vmatpush1.bf16.msra.mxu0 %v918_v35  ;;  %v724_v56 = vpop.permute.xlu1 %723  ;;  %v1158_v54 = vrot.slane %v1130_v19, %v2439_v31  ;;  %v1154_v35 = vrot.slane %v1130_v19, %v2444_v36  ;;  %vm1210_vm14 = vcmask 15360  }
 0x1d7   : > { %v732_v2 = vsel %vm3427_vm2, %v722_v4, %v724_v56  ;;  %v898_v63 = vsel %vm347_vm0, %v700_v43, %v724_v56  ;;  %v756_v60 = vsel %vm749_vm3, %v2673_v62, %v748_v18  ;;  %v2874_v56 = vrot.slane %v1130_v19, %v567_v37 }
 0x1d8   : > { %1092 = vmatprep.subr.bf16.mxu1 %v898_v63  ;;  %v894_v3 = vsel %vm347_vm0, %v708_v61, %v732_v2  ;;  %vm2876_vm11 = vcmp.eq.s32.totalorder %v1150_v53, 1  ;;  %vm2884_vm6 = vcmp.eq.s32.totalorder %v1158_v54, 1  ;;  %vm1208_vm2 = vcmask 7168  }
 0x1d9   : > { %1093 = vmatpush1.bf16.msra.mxu1 %v894_v3 }
 0x1da   : > { %v792_v7 = vpop.permute.xlu0 %791  ;;  %v772_v40 = vpop.permute.xlu1 %771 }
 0x1db   : > { %v780_v58 = vsel %vm3426_vm1, %v2754_v11, %v772_v40  ;;  %v930_v48 = vsel %vm347_vm0, %v748_v18, %v772_v40  ;;  %v802_v4 = vsel %vm3425_vm4, %v2696_v14, %v792_v7  ;;  %vm1185_vm1 = vcmask 23552  }
 0x1dc   : > { %1094 = vmatprep.subr.bf16.mxu1 %v930_v48  ;;  %v926_v57 = vsel %vm347_vm0, %v756_v60, %v780_v58  ;;  %v954_v62 = vsel %vm347_vm0, %v802_v4, 0 }
 0x1dd   : > { %1095 = vmatpush1.bf16.msra.mxu1 %v926_v57 }
 0x1de   : > { %v796_v6 = vpop.permute.xlu0 %795  ;;  %v794_v12 = vpop.permute.xlu1 %793 }
 0x1df   : > { %v803_v47 = vsel %vm3425_vm4, %v792_v7, %v794_v12  ;;  %v804_v45 = vsel %vm3425_vm4, %v794_v12, %v796_v6  ;;  %2152 = vmatprep.subr.msk.bf16.mxu1 %vm347_vm0, %v796_v6  ;;  %vm1170_vm4 = vcmp.eq.s32.totalorder %v2874_v56, 1 }
 0x1e0   : > { %v960_v11 = vsel %vm347_vm0, %v804_v45, 0  ;;  %2150 = vmatprep.subr.msk.bf16.mxu0 %vm347_vm0, %v803_v47 }
 0x1e1   : > { %1056 = vmatpush1.bf16.msra.mxu0 %v954_v62  ;;  %1097 = vmatpush1.bf16.msra.mxu1 %v960_v11 }
 0x1e4   : > { %2151 = vmatmul.mubr.msk.bf16.vlgmr.msra.gmra.mrb[12].mxu0 %vm3424_vm5, %v2701_v44  ;;  %2153 = vmatmul.mubr.msk.bf16.vlgmr.msra.gmra.mrb[12].mxu1 %vm3424_vm5, %v2701_v44  ;;  %v1138_v44 = vrot.slane %v1130_v19, %v2448_v38  ;;  %vm2888_vm5 = vcmp.eq.s32.totalorder %v1154_v35, 1 }
 0x1e5   : > { %1712 = vmatprep.mubr.bf16.mxu0 %v2319_v0  ;;  %1753 = vmatprep.mubr.bf16.mxu1 %v2319_v0 }
 0x1e6   : > { %vm2840_vm8 = vcmp.eq.s32.totalorder %v1138_v44, 1 }
 0x1ef   : > { %v935_v46 = vpop.permute.xlu1 %934 }
 0x284   : > { %v999_v14 = vpop.f32.mrb[8].mxu0 }
 0x285   : > { %v1001_v43 = vpop.f32.mrb[9].mxu0  ;;  %v2831_v9 = vadd.f32 %v999_v14, %v935_v46 }
 0x286   : > { %v1003_v15 = vpop.f32.mrb[10].mxu0  ;;  %v2833_v55 = vadd.f32 %v1001_v43, %v935_v46 }
 0x287   : > { %v1004_v49 = vpop.f32.mrb[11].mxu0  ;;  %v1171_v50 = vsel %vm2836_vm7, %v2831_v9, 0.0 }
 0x288   : > { %v1172_v16 = vsel %vm2840_vm8, %v2833_v55, 0.0  ;;  %v1190_v34 = vmul.f32 %v1171_v50, %v1171_v50 }
 0x289   : > { %v1191_v33 = vmul.f32 %v1172_v16, %v1172_v16  ;;  %v1179_v39 = vadd.f32 %v1172_v16, %v1171_v50 }
 0x28b   : > { %v1198_v1 = vadd.f32 %v1191_v33, %v1190_v34 }
 0x298   : > { %v1040_v8 = vpop.f32.mrb[8].mxu1 }
 0x299   : > { %v1042_v10 = vpop.f32.mrb[9].mxu1  ;;  %v2844_v21 = vadd.f32 %v1040_v8, %v935_v46 }
 0x29a   : > { %v1044_v5 = vpop.f32.mrb[10].mxu1  ;;  %v2860_v30 = vadd.f32 %v1042_v10, %v935_v46 }
 0x29b   : > { %v1045_v25 = vpop.f32.mrb[11].mxu1  ;;  %v1173_v52 = vsel %vm2852_vm9, %v2844_v21, 0.0 }
 0x29c   : > { %v1192_v20 = vmul.f32 %v1173_v52, %v1173_v52  ;;  %v1174_v26 = vsel %vm2862_vm10, %v2860_v30, 0.0  ;;  %v1180_v18 = vadd.f32 %v1179_v39, %v1173_v52 }
 0x29d   : > { %v1193_v2 = vmul.f32 %v1174_v26, %v1174_v26 }
 0x29e   : > { %v1199_v61 = vadd.f32 %v1198_v1, %v1192_v20  ;;  %v1181_v57 = vadd.f32 %v1180_v18, %v1174_v26 }
 0x2a0   : > { %v1200_v14 = vadd.f32 %v1199_v61, %v1193_v2 }
 0x2b7   : > { %v1081_v63 = vpop.f32.mrb[12].mxu0  ;;  %v1122_v7 = vpop.f32.mrb[12].mxu1 }
 0x2b8   : > { %v2880_v40 = vadd.f32 %v1081_v63, %v935_v46  ;;  %v2882_v60 = vadd.f32 %v1122_v7, %v935_v46  ;;  %v1083_v48 = vpop.f32.mrb[13].mxu0  ;;  %v1124_v37 = vpop.f32.mrb[13].mxu1  ;;  %v2329_v7 = vmov 1  }
 0x2b9   : > { %v2892_v4 = vadd.f32 %v1083_v48, %v935_v46  ;;  %v2894_v6 = vadd.f32 %v1124_v37, %v935_v46  ;;  %v1085_v12 = vpop.f32.mrb[14].mxu0  ;;  %v1126_v47 = vpop.f32.mrb[14].mxu1  ;;  %2232 = vset.pattern.permute.xlu0 %v2329_v7  ;;  %v2330_v48 = vmov 2  }
 0x2ba   : > { %v1175_v45 = vsel %vm2876_vm11, %v2880_v40, 0.0  ;;  %v1086_v62 = vpop.f32.mrb[15].mxu0  ;;  %v1127_v11 = vpop.f32.mrb[15].mxu1  ;;  %v1177_v8 = vsel %vm2884_vm6, %v2882_v60, 0.0 }
 0x2bb   : > { %v1182_v43 = vadd.f32 %v1181_v57, %v1175_v45  ;;  %v1194_v15 = vmul.f32 %v1175_v45, %v1175_v45  ;;  %v1176_v49 = vsel %vm2888_vm5, %v2892_v4, 0.0  ;;  %v1178_v5 = vsel %vm1170_vm4, %v2894_v6, 0.0 }
 0x2bc   : > { %v1195_v10 = vmul.f32 %v1176_v49, %v1176_v49  ;;  %v1197_v46 = vmul.f32 %v1178_v5, %v1178_v5  ;;  %v1196_v28 = vmul.f32 %v1177_v8, %v1177_v8  ;;  %v1186_v50 = vsel %vm1185_vm1, %v1178_v5, 0.0 }
 0x2bd   : > { %v1201_v25 = vadd.f32 %v1200_v14, %v1194_v15  ;;  %v1183_v19 = vadd.f32 %v1182_v43, %v1176_v49 }
 0x2be   : > { %v1204_v34 = vsel %vm1185_vm1, %v1197_v46, 0.0 }
 0x2bf   : > { %v1184_v44 = vadd.f32 %v1183_v19, %v1177_v8  ;;  %v1202_v41 = vadd.f32 %v1201_v25, %v1195_v10 }
 0x2c1   : > { %v1187_v16 = vadd.f32 %v1186_v50, %v1184_v44  ;;  %v1203_v32 = vadd.f32 %v1202_v41, %v1196_v28 }
 0x2c3   : > { %1188 = vadd.xlane.f32.xlu0 %v1187_v16  ;;  %v1205_v33 = vadd.f32 %v1204_v34, %v1203_v32 }
 0x2c5   : > { %1206 = vadd.xlane.f32.xlu1 %v1205_v33 }
 0x350   : > { %v1189_v52 = vpop.xlane.xlu0 %1188 }
 0x352   : > { %v1207_v39 = vpop.xlane.xlu1 %1206 }
 0x353   : > { %v1209_v20 = vsel %vm1208_vm2, %v1189_v52, %v1207_v39 }
 0x354   : > { %v1211_v1 = vsel %vm1210_vm14, %v1209_v20, 0.0 }
 0x355   : > { %v1212_v53 = vrot.slane %v1211_v1, 4 }
 0x357   : > { %v1213_v26 = vadd.f32 %v1212_v53, %v1211_v1 }
 0x359   : > { %v1214_v54 = vrot.slane %v1213_v26, 2 }
 0x35b   : > { %v1215_v35 = vadd.f32 %v1214_v54, %v1213_v26 }
 0x35d   : > { %v1216_v18 = vrot.slane %v1215_v35, 1 }
 0x35f   : > { %v1217_v61 = vadd.f32 %v1216_v18, %v1215_v35 }
 0x361   : > { %v1218_v2 = vmul.f32 0.00014863258, %v1217_v61 }
 0x363   : > { %1228 = vperm.xlu1 %2231, %v1218_v2   ;;  %v1219_v63 = vmul.f32 %v1218_v2, %v1218_v2 }
 0x365   : > { %1221 = vrot.lane.b32.xlu0 %v1219_v63, %s2328_s9 }
 0x367   : > { %2233 = vset.pattern.permute.xlu1 %v2329_v7 }
 0x368   : > { %1255 = vperm.xlu1 %2233, %v2617_v42  }
 0x36c   : > { %2234 = vset.pattern.permute.xlu1 %v2330_v48 }
 0x36d   : > { %1267 = vperm.xlu1 %2234, %v2617_v42  }
 0x371   : > { %2235 = vset.pattern.permute.xlu1 %v2319_v0 }
 0x3d7   : > { %v1222_v37 = vpop.permute.xlu0 %1221 }
 0x3d8   : > { %v1224_v57 = vsub.f32 %v1218_v2, %v1222_v37 }
 0x3da   : > { %v1225_v12 = vmax.f32 %v1224_v57, 0.0 }
 0x3dc   : > { %v1239_v47 = vadd.f32 1e-05, %v1225_v12 }
 0x3de   : > { %2246 = vrsqrt.f32 %v1239_v47 }
 0x3e2   : > { %v2920_v62 = vpop.permute.xlu1 %1228 }
 0x3e3   : > { %v1231_v14 = vsub.f32 %v2831_v9, %v2920_v62  ;;  %v1232_v43 = vsub.f32 %v2833_v55, %v2920_v62  ;;  %v1233_v42 = vsub.f32 %v2844_v21, %v2920_v62  ;;  %v1234_v15 = vsub.f32 %v2860_v30, %v2920_v62 }
 0x3e4   : > { %v1235_v49 = vsub.f32 %v2880_v40, %v2920_v62  ;;  %v1236_v1 = vsub.f32 %v2892_v4, %v2920_v62 }
 0x3e7   : > { %v2922_v11 = vpop.permute.xlu1 %1255 }
 0x3e8   : > { %v2247_v45 = vpop.eup %2246 }
 0x3e9   : > { %1243 = vperm.xlu0 %2232, %v2247_v45  }
 0x3ec   : > { %v2941_v19 = vpop.permute.xlu1 %1267 }
 0x468   : > { %v2934_v8 = vpop.permute.xlu0 %1243 }
 0x469   : > { %v1246_v10 = vmul.f32 %v2934_v8, %v1231_v14  ;;  %v1247_v5 = vmul.f32 %v2934_v8, %v1232_v43  ;;  %v1248_v9 = vmul.f32 %v2934_v8, %v1233_v42  ;;  %v1249_v25 = vmul.f32 %v2934_v8, %v1234_v15 }
 0x46a   : > { %v1250_v55 = vmul.f32 %v2934_v8, %v1235_v49  ;;  %v1251_v53 = vmul.f32 %v2934_v8, %v1236_v1  ;;  %v1237_v14 = vsub.f32 %v2882_v60, %v2920_v62 }
 0x46b   : > { %v1258_v21 = vmul.f32 %v2922_v11, %v1246_v10  ;;  %v1259_v30 = vmul.f32 %v2922_v11, %v1247_v5  ;;  %v1260_v40 = vmul.f32 %v2922_v11, %v1248_v9  ;;  %v1261_v46 = vmul.f32 %v2922_v11, %v1249_v25 }
 0x46c   : > { %v1262_v28 = vmul.f32 %v2922_v11, %v1250_v55  ;;  %v1263_v61 = vmul.f32 %v2922_v11, %v1251_v53  ;;  %v1252_v42 = vmul.f32 %v2934_v8, %v1237_v14 }
 0x46d   : > { %v1270_v44 = vadd.f32 %v2941_v19, %v1258_v21  ;;  %v1271_v41 = vadd.f32 %v2941_v19, %v1259_v30  ;;  %v1272_v50 = vadd.f32 %v2941_v19, %v1260_v40  ;;  %v1273_v16 = vadd.f32 %v2941_v19, %v1261_v46 }
 0x46e   : > { %v1274_v32 = vadd.f32 %v2941_v19, %v1262_v28  ;;  %v1275_v45 = vadd.f32 %v2941_v19, %v1263_v61  ;;  %v1264_v21 = vmul.f32 %v2922_v11, %v1252_v42 }
 0x46f   : > { %v2154_v34 = vmul.f32 -1.442695, %v1270_v44  ;;  %v2155_v33 = vmul.f32 -1.442695, %v1271_v41  ;;  %v2156_v52 = vmul.f32 -1.442695, %v1272_v50 }
 0x470   : > { %v2157_v39 = vmul.f32 -1.442695, %v1273_v16  ;;  %v2158_v20 = vmul.f32 -1.442695, %v1274_v32  ;;  %v2159_v4 = vmul.f32 -1.442695, %v1275_v45  ;;  %v1276_v29 = vadd.f32 %v2941_v19, %v1264_v21 }
 0x471   : > { %2248 = vpow2.f32 %v2154_v34 }
 0x472   : > { %2250 = vpow2.f32 %v2155_v33 }
 0x473   : > { %2252 = vpow2.f32 %v2156_v52 }
 0x474   : > { %2254 = vpow2.f32 %v2157_v39 }
 0x475   : > { %2256 = vpow2.f32 %v2158_v20 }
 0x47b   : > { %v2249_v26 = vpop.eup %2248 }
 0x47c   : > { %v2251_v54 = vpop.eup %2250  ;;  %v1302_v35 = vadd.f32 1.0, %v2249_v26  ;;  %v1238_v26 = vsub.f32 %v2894_v6, %v2920_v62 }
 0x47d   : > { %v2253_v18 = vpop.eup %2252  ;;  %v1303_v2 = vadd.f32 1.0, %v2251_v54 }
 0x47e   : > { %v2255_v63 = vpop.eup %2254  ;;  %v1304_v37 = vadd.f32 1.0, %v2253_v18  ;;  %2258 = vrcp.f32 %v1302_v35  ;;  %v1253_v54 = vmul.f32 %v2934_v8, %v1238_v26 }
 0x47f   : > { %v2257_v57 = vpop.eup %2256  ;;  %v1305_v12 = vadd.f32 1.0, %v2255_v63  ;;  %2260 = vrcp.f32 %v1303_v2 }
 0x480   : > { %v1306_v47 = vadd.f32 1.0, %v2257_v57  ;;  %2262 = vrcp.f32 %v1304_v37  ;;  %v1265_v18 = vmul.f32 %v2922_v11, %v1253_v54 }
 0x481   : > { %2264 = vrcp.f32 %v1305_v12 }
 0x482   : > { %2266 = vrcp.f32 %v1306_v47  ;;  %v1277_v8 = vadd.f32 %v2941_v19, %v1265_v18 }
 0x483   : > { %2268 = vpow2.f32 %v2159_v4 }
 0x484   : > { %v2161_v2 = vmul.f32 -1.442695, %v1277_v8 }
 0x488   : > { %v2259_v43 = vpop.eup %2258 }
 0x489   : > { %v2261_v15 = vpop.eup %2260  ;;  %v1326_v5 = vmul.f32 %v2259_v43, %v1270_v44 }
 0x48a   : > { %v2263_v49 = vpop.eup %2262  ;;  %v1327_v10 = vmul.f32 %v2261_v15, %v1271_v41  ;;  %v3095_v15 = vld [vmem:[%s3422_s7] sm:$0xff] }
 0x48b   : > { %v2265_v9 = vpop.eup %2264  ;;  %v1328_v25 = vmul.f32 %v2263_v49, %v1272_v50  ;;  %v1334_v41 = vsel %vm2836_vm7, %v1326_v5, 0.0 }
 0x48c   : > { %v2267_v55 = vpop.eup %2266  ;;  %v1335_v30 = vsel %vm2840_vm8, %v1327_v10, 0.0  ;;  %v1329_v44 = vmul.f32 %v2265_v9, %v1273_v16  ;;  %v2979_v17 = vpack.c.bf16 %v1334_v41, %v1334_v41  ;;  %v2160_v16 = vmul.f32 -1.442695, %v1276_v29 }
 0x48d   : > { %v1336_v40 = vsel %vm2852_vm9, %v1328_v25, 0.0  ;;  %v2966_v60 = vpack.c.bf16 %v1335_v30, %v1335_v30  ;;  %v1330_v46 = vmul.f32 %v2267_v55, %v1274_v32  ;;  %v2269_v34 = vpop.eup %2268  ;;  %vm3449_vm8 = vcmask 777216  }
 0x48e   : > { %v2968_v28 = vpack.c.bf16 %v1336_v40, %v1336_v40  ;;  %v1337_v27 = vsel %vm2862_vm10, %v1329_v44, 0.0  ;;  %v1307_v33 = vadd.f32 1.0, %v2269_v34  ;;  %2270 = vpow2.f32 %v2160_v16  ;;  %vm3450_vm9 = vmmov %vm3449_vm8 }
 0x48f   : > { %1390 = vrot.lane.b32.xlu1 %v2966_v60, %s2320_s17  ;;  %v1338_v50 = vsel %vm2876_vm11, %v1330_v46, 0.0  ;;  %v2989_v3 = vpack.c.bf16 %v1337_v27, %v1337_v27  ;;  %v1362_v6 = vrot.slane %v2966_v60, 4  ;;  %v1361_v11 = vrot.slane %v2979_v17, 4  ;;  %vm3451_vm10 = vmmov %vm3449_vm8 }
 0x490   : > { %1392 = vrot.lane.b32.xlu0 %v2968_v28, %s2320_s17  ;;  %v2981_v32 = vpack.c.bf16 %v1338_v50, %v1338_v50  ;;  %2272 = vrcp.f32 %v1307_v33  ;;  %v1363_v19 = vrot.slane %v2968_v28, 4  ;;  %vm3452_vm11 = vmmov %vm3449_vm8 }
 0x491   : > { %v1364_v37 = vrot.slane %v2989_v3, 4 }
 0x492   : > { %v1365_v58 = vrot.slane %v2981_v32, 4 }
 0x493   : > { %1388 = vrot.lane.b32.xlu1 %v2979_v17, %s2320_s17 }
 0x494   : > { %1396 = vrot.lane.b32.xlu0 %v2981_v32, %s2320_s17 }
 0x497   : > { %1394 = vrot.lane.b32.xlu1 %v2989_v3, %s2320_s17 }
 0x498   : > { %1432 = vrot.lane.b32.xlu0 %v2968_v28, %s2321_s18  ;;  %v2271_v59 = vpop.eup %2270 }
 0x499   : > { %v1308_v39 = vadd.f32 1.0, %v2271_v59 }
 0x49a   : > { %v2273_v52 = vpop.eup %2272 }
 0x49b   : > { %1430 = vrot.lane.b32.xlu1 %v2966_v60, %s2321_s18  ;;  %v1331_v20 = vmul.f32 %v2273_v52, %v1275_v45  ;;  %2274 = vrcp.f32 %v1308_v39 }
 0x49c   : > { %1436 = vrot.lane.b32.xlu0 %v2981_v32, %s2321_s18  ;;  %2276 = vpow2.f32 %v2161_v2 }
 0x49d   : > { %v1339_v1 = vsel %vm2888_vm5, %v1331_v20, 0.0 }
 0x49e   : > { %v3017_v53 = vpack.c.bf16 %v1339_v1, %v1339_v1 }
 0x49f   : > { %1428 = vrot.lane.b32.xlu1 %v2979_v17, %s2321_s18 }
 0x4a0   : > { %1473 = vrot.lane.b32.xlu0 %v2968_v28, %s2322_s19  ;;  %v1366_v42 = vrot.slane %v3017_v53, 4 }
 0x4a3   : > { %1434 = vrot.lane.b32.xlu1 %v2989_v3, %s2321_s18 }
 0x4a4   : > { %1477 = vrot.lane.b32.xlu0 %v2981_v32, %s2322_s19 }
 0x4a5   : > { %v2275_v35 = vpop.eup %2274 }
 0x4a6   : > { %v1332_v22 = vmul.f32 %v2275_v35, %v1276_v29  ;;  %v2277_v63 = vpop.eup %2276 }
 0x4a7   : > { %1471 = vrot.lane.b32.xlu1 %v2966_v60, %s2322_s19  ;;  %v1309_v57 = vadd.f32 1.0, %v2277_v63 }
 0x4a8   : > { %1518 = vrot.lane.b32.xlu0 %v2966_v60, %s2323_s20  ;;  %v1340_v62 = vsel %vm2884_vm6, %v1332_v22, 0.0  ;;  %vm3453_vm6 = vcmask 531456  }
 0x4a9   : > { %v3042_v61 = vpack.c.bf16 %v1340_v62, %v1340_v62  ;;  %2278 = vrcp.f32 %v1309_v57 }
 0x4ab   : > { %1469 = vrot.lane.b32.xlu1 %v2979_v17, %s2322_s19  ;;  %v1367_v14 = vrot.slane %v3042_v61, 4 }
 0x4ac   : > { %1522 = vrot.lane.b32.xlu0 %v2989_v3, %s2323_s20 }
 0x4af   : > { %1475 = vrot.lane.b32.xlu1 %v2989_v3, %s2322_s19 }
 0x4b0   : > { %1398 = vrot.lane.b32.xlu0 %v3017_v53, %s2320_s17 }
 0x4b3   : > { %1516 = vrot.lane.b32.xlu1 %v2979_v17, %s2323_s20  ;;  %v2279_v12 = vpop.eup %2278 }
 0x4b4   : > { %1438 = vrot.lane.b32.xlu0 %v3017_v53, %s2321_s18  ;;  %v1333_v47 = vmul.f32 %v2279_v12, %v1277_v8 }
 0x4b6   : > { %v1341_v45 = vsel %vm1170_vm4, %v1333_v47, 0.0 }
 0x4b7   : > { %1520 = vrot.lane.b32.xlu1 %v2968_v28, %s2323_s20  ;;  %v1349_v4 = vpack.c.bf16 %v1341_v45, %v1341_v45 }
 0x4b8   : > { %1479 = vrot.lane.b32.xlu0 %v3017_v53, %s2322_s19 }
 0x4b9   : > { %v1351_v43 = vsel %vm1185_vm1, %v1349_v4, 0  ;;  %vm3445_vm1 = vcmask 793600  }
 0x4ba   : > { %v1492_v56 = vrot.slane %v1351_v43, 4  ;;  %vm3446_vm4 = vmmov %vm3445_vm1 }
 0x4bb   : > { %1524 = vrot.lane.b32.xlu1 %v2981_v32, %s2323_s20  ;;  %vm3447_vm5 = vmmov %vm3445_vm1 }
 0x4bc   : > { %1370 = vrot.lane.b32.xlu0 %v1362_v6, %s2324_s21  ;;  %vm3448_vm7 = vmmov %vm3445_vm1 }
 0x4bf   : > { %1400 = vrot.lane.b32.xlu1 %v3042_v61, %s2320_s17 }
 0x4c0   : > { %1368 = vrot.lane.b32.xlu0 %v1361_v11, %s2324_s21 }
 0x4c3   : > { %1440 = vrot.lane.b32.xlu1 %v3042_v61, %s2321_s18 }
 0x4c4   : > { %1376 = vrot.lane.b32.xlu0 %v1365_v58, %s2324_s21 }
 0x4c7   : > { %1481 = vrot.lane.b32.xlu1 %v3042_v61, %s2322_s19 }
 0x4c8   : > { %1412 = vrot.lane.b32.xlu0 %v1363_v19, %s2325_s22 }
 0x4cb   : > { %1372 = vrot.lane.b32.xlu1 %v1363_v19, %s2324_s21 }
 0x4cc   : > { %1408 = vrot.lane.b32.xlu0 %v1361_v11, %s2325_s22 }
 0x4cf   : > { %1374 = vrot.lane.b32.xlu1 %v1364_v37, %s2324_s21 }
 0x4d0   : > { %1416 = vrot.lane.b32.xlu0 %v1365_v58, %s2325_s22 }
 0x4d3   : > { %1410 = vrot.lane.b32.xlu1 %v1362_v6, %s2325_s22 }
 0x4d4   : > { %1452 = vrot.lane.b32.xlu0 %v1363_v19, %s2326_s23 }
 0x4d7   : > { %1414 = vrot.lane.b32.xlu1 %v1364_v37, %s2325_s22 }
 0x4d8   : > { %1448 = vrot.lane.b32.xlu0 %v1361_v11, %s2326_s23 }
 0x4db   : > { %1450 = vrot.lane.b32.xlu1 %v1362_v6, %s2326_s23 }
 0x4dc   : > { %1456 = vrot.lane.b32.xlu0 %v1365_v58, %s2326_s23 }
 0x4df   : > { %1454 = vrot.lane.b32.xlu1 %v1364_v37, %s2326_s23 }
 0x4e0   : > { %1497 = vrot.lane.b32.xlu0 %v1363_v19, %s2327_s24 }
 0x4e3   : > { %1495 = vrot.lane.b32.xlu1 %v1362_v6, %s2327_s24 }
 0x4e4   : > { %1493 = vrot.lane.b32.xlu0 %v1361_v11, %s2327_s24 }
 0x4e7   : > { %1499 = vrot.lane.b32.xlu1 %v1364_v37, %s2327_s24 }
 0x4e8   : > { %1501 = vrot.lane.b32.xlu0 %v1365_v58, %s2327_s24 }
 0x4eb   : > { %1380 = vrot.lane.b32.xlu1 %v1367_v14, %s2324_s21 }
 0x4ec   : > { %1483 = vrot.lane.b32.xlu0 %v1351_v43, %s2322_s19  ;;  %s305_s19 = scalar_lea.vmem %s3423_s8, %s2207_s16 }
 0x4ef   : > { %1420 = vrot.lane.b32.xlu1 %v1367_v14, %s2325_s22 }
 0x4f0   : > { %1378 = vrot.lane.b32.xlu0 %v1366_v42, %s2324_s21 }
 0x4f3   : > { %1460 = vrot.lane.b32.xlu1 %v1367_v14, %s2326_s23 }
 0x4f4   : > { %1418 = vrot.lane.b32.xlu0 %v1366_v42, %s2325_s22 }
 0x4f7   : > { %1505 = vrot.lane.b32.xlu1 %v1367_v14, %s2327_s24 }
 0x4f8   : > { %1458 = vrot.lane.b32.xlu0 %v1366_v42, %s2326_s23 }
 0x4fb   : > { %1507 = vrot.lane.b32.xlu1 %v1492_v56, %s2327_s24 }
 0x4fc   : > { %1503 = vrot.lane.b32.xlu0 %v1366_v42, %s2327_s24 }
 0x4ff   : > { %1528 = vrot.lane.b32.xlu1 %v3042_v61, %s2323_s20 }
 0x500   : > { %1526 = vrot.lane.b32.xlu0 %v3017_v53, %s2323_s20 }
 0x501   : > { %v1391_v49 = vpop.permute.xlu1 %1390 }
 0x502   : > { %v1393_v10 = vpop.permute.xlu0 %1392 }
 0x503   : > { %v1403_v5 = vsel %vm653_vm13, %v1391_v49, %v1393_v10  ;;  %1653 = vperm.xlu1 %2235, %v3095_v15  }
 0x504   : > { %1530 = vrot.lane.b32.xlu0 %v1351_v43, %s2323_s20 }
 0x505   : > { %v1389_v9 = vpop.permute.xlu1 %1388 }
 0x506   : > { %v1397_v25 = vpop.permute.xlu0 %1396  ;;  %v1402_v55 = vsel %vm653_vm13, %v1389_v9, %v1391_v49 }
 0x509   : > { %v1395_v21 = vpop.permute.xlu1 %1394 }
 0x50a   : > { %v3101_v30 = vpop.permute.xlu0 %1432  ;;  %v1404_v40 = vsel %vm653_vm13, %v1393_v10, %v1395_v21  ;;  %v1405_v46 = vsel %vm653_vm13, %v1395_v21, %v1397_v25 }
 0x50d   : > { %v1431_v41 = vpop.permute.xlu1 %1430 }
 0x50e   : > { %v3105_v44 = vpop.permute.xlu0 %1436  ;;  %v3109_v50 = vsel %vm701_vm15, %v1431_v41, %v3101_v30 }
 0x511   : > { %v1429_v29 = vpop.permute.xlu1 %1428 }
 0x512   : > { %v3111_v27 = vpop.permute.xlu0 %1473 }
 0x515   : > { %v3113_v34 = vpop.permute.xlu1 %1434 }
 0x516   : > { %v3115_v16 = vpop.permute.xlu0 %1477 }
 0x519   : > { %v3117_v33 = vpop.permute.xlu1 %1471 }
 0x51a   : > { %v3119_v59 = vpop.permute.xlu0 %1518 }
 0x51d   : > { %v3121_v52 = vpop.permute.xlu1 %1469 }
 0x51e   : > { %v3123_v39 = vpop.permute.xlu0 %1522 }
 0x521   : > { %v3125_v20 = vpop.permute.xlu1 %1475 }
 0x522   : > { %v3127_v1 = vpop.permute.xlu0 %1398 }
 0x523   : > { %v3131_v26 = vsel %vm653_vm13, %v1397_v25, %v3127_v1 }
 0x525   : > { %v3133_v54 = vpop.permute.xlu1 %1516 }
 0x526   : > { %v3135_v35 = vpop.permute.xlu0 %1438 }
 0x527   : > { %v3140_v22 = vsel %vm701_vm15, %v3105_v44, %v3135_v35 }
 0x529   : > { %v3142_v18 = vpop.permute.xlu1 %1520 }
 0x52a   : > { %v3144_v6 = vpop.permute.xlu0 %1479 }
 0x52b   : > { %v3149_v62 = vsel %vm749_vm3, %v3115_v16, %v3144_v6 }
 0x52d   : > { %v3151_v8 = vpop.permute.xlu1 %1524 }
 0x52e   : > { %v1371_v11 = vpop.permute.xlu0 %1370 }
 0x531   : > { %v3153_v2 = vpop.permute.xlu1 %1400 }
 0x532   : > { %v1369_v58 = vpop.permute.xlu0 %1368 }
 0x533   : > { %v1382_v12 = vsel %vm629_vm12, %v1369_v58, %v1371_v11 }
 0x534   : > { %v1541_v43 = vsel %vm347_vm0, %v2979_v17, %v1382_v12 }
 0x535   : > { %v3155_v19 = vpop.permute.xlu1 %1440 }
 0x536   : > { %v3157_v63 = vpop.permute.xlu0 %1376 }
 0x539   : > { %v3159_v37 = vpop.permute.xlu1 %1481 }
 0x53a   : > { %v1413_v57 = vpop.permute.xlu0 %1412 }
 0x53d   : > { %v1373_v47 = vpop.permute.xlu1 %1372 }
 0x53e   : > { %v1383_v45 = vsel %vm629_vm12, %v1371_v11, %v1373_v47  ;;  %v1409_v4 = vpop.permute.xlu0 %1408 }
 0x53f   : > { %v1545_v14 = vsel %vm347_vm0, %v2966_v60, %v1383_v45 }
 0x540   : > { %1680 = vmatprep.subr.bf16.mxu0 %v1545_v14 }
 0x541   : > { %v1375_v42 = vpop.permute.xlu1 %1374  ;;  %1681 = vmatpush1.bf16.msra.mxu0 %v1541_v43 }
 0x542   : > { %v1384_v56 = vsel %vm629_vm12, %v1373_v47, %v1375_v42  ;;  %v1385_v49 = vsel %vm629_vm12, %v1375_v42, %v3157_v63  ;;  %v3170_v10 = vpop.permute.xlu0 %1416 }
 0x543   : > { %v1553_v9 = vsel %vm347_vm0, %v2989_v3, %v1385_v49  ;;  %v1549_v25 = vsel %vm347_vm0, %v2968_v28, %v1384_v56 }
 0x544   : > { %1721 = vmatprep.subr.bf16.mxu1 %v1553_v9 }
 0x545   : > { %v1411_v60 = vpop.permute.xlu1 %1410  ;;  %1722 = vmatpush1.bf16.msra.mxu1 %v1549_v25 }
 0x546   : > { %v1422_v17 = vsel %vm3445_vm1, %v1409_v4, %v1411_v60  ;;  %v1423_v21 = vsel %vm3446_vm4, %v1411_v60, %v1413_v57  ;;  %v1453_v11 = vpop.permute.xlu0 %1452  ;;  %vm3454_vm1 = vmmov %vm3453_vm6  ;;  %vm3455_vm4 = vcmask 523264  }
 0x547   : > { %v1573_v58 = vsel %vm347_vm0, %v1403_v5, %v1423_v21  ;;  %v1569_v12 = vsel %vm347_vm0, %v1402_v55, %v1422_v17  ;;  %v1442_v5 = vsel %vm701_vm15, %v1429_v29, %v1431_v41  ;;  %v1445_v41 = vsel %vm701_vm15, %v3113_v34, %v3105_v44 }
 0x548   : > { %1682 = vmatprep.subr.bf16.mxu0 %v1573_v58 }
 0x549   : > { %v1415_v47 = vpop.permute.xlu1 %1414  ;;  %1683 = vmatpush1.bf16.msra.mxu0 %v1569_v12 }
 0x54a   : > { %v1424_v3 = vsel %vm3447_vm5, %v1413_v57, %v1415_v47  ;;  %v1425_v28 = vsel %vm3448_vm7, %v1415_v47, %v3170_v10  ;;  %v1449_v45 = vpop.permute.xlu0 %1448  ;;  %v1532_v47 = vsel %vm3455_vm4, %v3133_v54, %v3119_v59  ;;  %vm3456_vm5 = vmmov %vm3455_vm4  ;;  %v1488_v54 = vsel %vm749_vm3, %v3125_v20, %v3115_v16 }
 0x54b   : > { %v1581_v14 = vsel %vm347_vm0, %v1405_v46, %v1425_v28  ;;  %v1577_v4 = vsel %vm347_vm0, %v1404_v40, %v1424_v3  ;;  %v1444_v40 = vsel %vm701_vm15, %v3101_v30, %v3113_v34  ;;  %v1486_v30 = vsel %vm749_vm3, %v3117_v33, %v3111_v27  ;;  %vm3457_vm7 = vmmov %vm3454_vm1 }
 0x54c   : > { %1723 = vmatprep.subr.bf16.mxu1 %v1581_v14  ;;  %v1485_v34 = vsel %vm749_vm3, %v3121_v52, %v3117_v33  ;;  %v1533_v3 = vsel %vm3456_vm5, %v3119_v59, %v3142_v18  ;;  %v1487_v33 = vsel %vm749_vm3, %v3111_v27, %v3125_v20 }
 0x54d   : > { %v1451_v43 = vpop.permute.xlu1 %1450  ;;  %1724 = vmatpush1.bf16.msra.mxu1 %v1577_v4  ;;  %v1660_v4 = vsel %vm347_vm0, %v1532_v47, 0 }
 0x54e   : > { %v1462_v55 = vsel %vm3449_vm8, %v1449_v45, %v1451_v43  ;;  %v1463_v42 = vsel %vm3450_vm9, %v1451_v43, %v1453_v11  ;;  %v3188_v56 = vpop.permute.xlu0 %1456  ;;  %vm3458_vm8 = vmmov %vm3454_vm1 }
 0x54f   : > { %v1601_v57 = vsel %vm347_vm0, %v3109_v50, %v1463_v42  ;;  %v1597_v49 = vsel %vm347_vm0, %v1442_v5, %v1462_v55  ;;  %v3238_v5 = vld [vmem:[%s3421_s6] sm:$0xf]  ;;  %vm3459_vm9 = vmmov %vm3455_vm4 }
 0x550   : > { %1684 = vmatprep.subr.bf16.mxu0 %v1601_v57  ;;  %v1534_v16 = vsel %vm3459_vm9, %v3142_v18, %v3123_v39 }
 0x551   : > { %v1455_v46 = vpop.permute.xlu1 %1454  ;;  %1685 = vmatpush1.bf16.msra.mxu0 %v1597_v49  ;;  %v1666_v42 = vsel %vm347_vm0, %v1534_v16, 0 }
 0x552   : > { %v1464_v29 = vsel %vm3451_vm10, %v1453_v11, %v1455_v46  ;;  %v1465_v9 = vsel %vm3452_vm11, %v1455_v46, %v3188_v56  ;;  %v1498_v25 = vpop.permute.xlu0 %1497  ;;  %vm3460_vm10 = vmmov %vm3455_vm4  ;;  %vm3461_vm11 = vcmask 588800   ;;  %vm2332_vm4 = vmmov 0  }
 0x553   : > { %v1609_v50 = vsel %vm347_vm0, %v1445_v41, %v1465_v9  ;;  %v1605_v60 = vsel %vm347_vm0, %v1444_v40, %v1464_v29  ;;  %v1535_v20 = vsel %vm3460_vm10, %v3123_v39, %v3151_v8  ;;  %v2331_v39 = vmov 0.0  }
 0x554   : > { %1725 = vmatprep.subr.bf16.mxu1 %v1609_v50 }
 0x555   : > { %v1496_v17 = vpop.permute.xlu1 %1495  ;;  %1726 = vmatpush1.bf16.msra.mxu1 %v1605_v60 }
 0x556   : > { %v1510_v21 = vsel %vm3453_vm6, %v1496_v17, %v1498_v25  ;;  %v1494_v44 = vpop.permute.xlu0 %1493  ;;  %vm3462_vm6 = vmmov %vm3461_vm11 }
 0x557   : > { %v1509_v11 = vsel %vm3454_vm1, %v1494_v44, %v1496_v17  ;;  %v1629_v58 = vsel %vm347_vm0, %v1486_v30, %v1510_v21 }
 0x558   : > { %1686 = vmatprep.subr.bf16.mxu0 %v1629_v58  ;;  %v1625_v12 = vsel %vm347_vm0, %v1485_v34, %v1509_v11  ;;  %v1490_v58 = vsel %vm749_vm3, %v3144_v6, %v3159_v37 }
 0x559   : > { %v1500_v28 = vpop.permute.xlu1 %1499  ;;  %1687 = vmatpush1.bf16.msra.mxu0 %v1625_v12 }
 0x55a   : > { %v1511_v52 = vsel %vm3457_vm7, %v1498_v25, %v1500_v28  ;;  %v3224_v45 = vpop.permute.xlu0 %1501  ;;  %2162 = vmatprep.subr.msk.bf16.mxu0 %vm347_vm0, %v1533_v3  ;;  %v1407_v25 = vsel %vm653_vm13, %v3127_v1, %v3153_v2  ;;  %vm3465_vm13 = vcmask 777216  }
 0x55b   : > { %v1512_v14 = vsel %vm3458_vm8, %v1500_v28, %v3224_v45  ;;  %v1633_v59 = vsel %vm347_vm0, %v1487_v33, %v1511_v52  ;;  %vm3466_vm5 = vmmov %vm3465_vm13 }
 0x55c   : > { %v1637_v43 = vsel %vm347_vm0, %v1488_v54, %v1512_v14  ;;  %vm3468_vm8 = vmmov %vm3457_vm7  ;;  %v2310_v14 = vld [vmem:[%s3416_s1] sm:$0xff] }
 0x55d   : > { %1727 = vmatprep.subr.bf16.mxu1 %v1637_v43  ;;  %v1381_v27 = vpop.permute.xlu1 %1380  ;;  %1689 = vmatpush1.bf16.msra.mxu0 %v1660_v4 }
 0x55e   : > { %1728 = vmatpush1.bf16.msra.mxu1 %v1633_v59  ;;  %v1484_v55 = vpop.permute.xlu0 %1483  ;;  %v1565_v29 = vsel %vm347_vm0, %v3042_v61, %v1381_v27 }
 0x55f   : > { %2164 = vmatprep.subr.msk.bf16.mxu1 %vm347_vm0, %v1535_v20  ;;  %v1491_v11 = vsel %vm749_vm3, %v3159_v37, %v1484_v55  ;;  %vm3469_vm3 = vmmov %vm3459_vm9 }
 0x560   : > { %2163 = vmatmul.mubr.msk.bf16.vlgmr.msra.gmra.mrb[16].mxu0 %vm3461_vm11, %v3238_v5  ;;  %vm3470_vm9 = vmmov %vm3469_vm3 }
 0x561   : > { %v1421_v57 = vpop.permute.xlu1 %1420  ;;  %1794 = vmatprep.mubr.bf16.mxu0 %v2319_v0  ;;  %vm3471_vm10 = vmmov %vm3469_vm3 }
 0x562   : > { %1730 = vmatpush1.bf16.msra.mxu1 %v1666_v42  ;;  %v1379_v49 = vpop.permute.xlu0 %1378  ;;  %v1593_v60 = vsel %vm347_vm0, %v3153_v2, %v1421_v57  ;;  %vm3472_vm11 = vmmov %vm3462_vm6 }
 0x563   : > { %v1386_v18 = vsel %vm629_vm12, %v3157_v63, %v1379_v49  ;;  %v1387_v46 = vsel %vm629_vm12, %v1379_v49, %v1381_v27  ;;  %2193 = vmatprep.subr.bf16.mxu1 %v2331_v39  ;;  %vm3463_vm12 = vcmask 793600  }
 0x564   : > { %v1561_v40 = vsel %vm347_vm0, %v3017_v53, %v1387_v46  ;;  %v1557_v41 = vsel %vm347_vm0, %v2981_v32, %v1386_v18  ;;  %vm3464_vm1 = vmmov %vm3463_vm12 }
 0x565   : > { %1762 = vmatprep.subr.bf16.mxu0 %v1561_v40  ;;  %v1461_v9 = vpop.permute.xlu1 %1460  ;;  %2165 = vmatmul.mubr.msk.bf16.vlgmr.msra.gmra.mrb[16].mxu1 %vm3462_vm6, %v3238_v5 }
 0x566   : > { %1763 = vmatpush1.bf16.msra.mxu0 %v1557_v41  ;;  %2194 = vmatpush3.bf16.msra.mxu1 %v1565_v29  ;;  %v1419_v63 = vpop.permute.xlu0 %1418  ;;  %v1621_v44 = vsel %vm347_vm0, %v3155_v19, %v1461_v9 }
 0x567   : > { %v1426_v53 = vsel %vm3463_vm12, %v3170_v10, %v1419_v63  ;;  %v1427_v32 = vsel %vm3464_vm1, %v1419_v63, %v1421_v57  ;;  %2195 = vmatprep.subr.bf16.mxu1 %v2331_v39  ;;  %2203 = vmatprep.mubr.msk.bf16.mxu1 %vm2332_vm4, %v2331_v39  ;;  %v1447_v10 = vsel %vm701_vm15, %v3135_v35, %v3155_v19  ;;  %vm3467_vm15 = vmmov %vm3457_vm7  ;;  %vm1843_vm12 = vcmp.lt.s32.totalorder %v2310_v14, 27 }
 0x568   : > { %v1589_v61 = vsel %vm347_vm0, %v1407_v25, %v1427_v32  ;;  %v1585_v50 = vsel %vm347_vm0, %v3131_v26, %v1426_v53  ;;  %v1844_v27 = vsel %vm1843_vm12, 1, %v2319_v0 }
 0x569   : > { %1764 = vmatprep.subr.bf16.mxu0 %v1589_v61  ;;  %v1506_v17 = vpop.permute.xlu1 %1505  ;;  %v1848_v55 = vrot.slane %v1844_v27, %v2424_v23  ;;  %v1852_v42 = vrot.slane %v1844_v27, %v2448_v38  ;;  %v1860_v29 = vrot.slane %v1844_v27, %v2464_v51  ;;  %v1864_v51 = vrot.slane %v1844_v27, %v2520_v13 }
 0x56a   : > { %1765 = vmatpush1.bf16.msra.mxu0 %v1585_v50  ;;  %2196 = vmatpush3.bf16.msra.mxu1 %v1593_v60  ;;  %v1459_v1 = vpop.permute.xlu0 %1458 }
 0x56b   : > { %v1466_v30 = vsel %vm3465_vm13, %v3188_v56, %v1459_v1  ;;  %v1467_v21 = vsel %vm3466_vm5, %v1459_v1, %v1461_v9  ;;  %2197 = vmatprep.subr.bf16.mxu1 %v2331_v39  ;;  %vm3323_vm1 = vcmp.eq.s32.totalorder %v1852_v42, 1  ;;  %vm3345_vm13 = vcmp.eq.s32.totalorder %v1860_v29, 1 }
 0x56c   : > { %v1617_v26 = vsel %vm347_vm0, %v1447_v10, %v1467_v21  ;;  %v1613_v2 = vsel %vm347_vm0, %v3140_v22, %v1466_v30  ;;  %v1868_v1 = vrot.slane %v1844_v27, %v2444_v36  ;;  %vm3355_vm5 = vcmp.eq.s32.totalorder %v1864_v51, 1 }
 0x56d   : > { %1766 = vmatprep.subr.bf16.mxu0 %v1617_v26  ;;  %v1508_v34 = vpop.permute.xlu1 %1507  ;;  %v1872_v26 = vrot.slane %v1844_v27, %v2439_v31 }
 0x56e   : > { %v1515_v35 = vsel %vm3467_vm15, %v1506_v17, %v1508_v34  ;;  %1767 = vmatpush1.bf16.msra.mxu0 %v1613_v2  ;;  %2198 = vmatpush3.bf16.msra.mxu1 %v1621_v44  ;;  %v1504_v56 = vpop.permute.xlu0 %1503  ;;  %vm3361_vm15 = vcmp.eq.s32.totalorder %v1868_v1, 1 }
 0x56f   : > { %v1513_v22 = vsel %vm3457_vm7, %v3224_v45, %v1504_v56  ;;  %v1514_v12 = vsel %vm3468_vm8, %v1504_v56, %v1506_v17  ;;  %2199 = vmatprep.subr.bf16.mxu1 %v2331_v39  ;;  %v1649_v19 = vsel %vm347_vm0, %v1491_v11, %v1515_v35  ;;  %vm3370_vm7 = vcmp.eq.s32.totalorder %v1872_v26, 1 }
 0x570   : > { %v1645_v47 = vsel %vm347_vm0, %v1490_v58, %v1514_v12  ;;  %v1641_v3 = vsel %vm347_vm0, %v3149_v62, %v1513_v22  ;;  %vm1892_vm8 = vcmask 564224  }
 0x571   : > { %1768 = vmatprep.subr.bf16.mxu0 %v1645_v47  ;;  %v1529_v28 = vpop.permute.xlu1 %1528 }
 0x572   : > { %1769 = vmatpush1.bf16.msra.mxu0 %v1641_v3  ;;  %2200 = vmatpush3.bf16.msra.mxu1 %v1649_v19  ;;  %v1527_v33 = vpop.permute.xlu0 %1526 }
 0x573   : > { %v1536_v6 = vsel %vm3469_vm3, %v3151_v8, %v1527_v33  ;;  %v1537_v37 = vsel %vm3470_vm9, %v1527_v33, %v1529_v28  ;;  %2201 = vmatprep.subr.bf16.mxu1 %v2331_v39  ;;  %v1856_v39 = vrot.slane %v1844_v27, %v2427_v24 }
 0x574   : > { %v1672_v52 = vsel %vm347_vm0, %v1536_v6, 0  ;;  %2166 = vmatprep.subr.msk.bf16.mxu0 %vm347_vm0, %v1537_v37 }
 0x575   : > { %vm3335_vm4 = vcmp.eq.s32.totalorder %v1856_v39, 1 }
 0x576   : > { %1771 = vmatpush1.bf16.msra.mxu0 %v1672_v52  ;;  %v1531_v45 = vpop.permute.xlu0 %1530 }
 0x577   : > { %v1538_v54 = vsel %vm3471_vm10, %v1529_v28, %v1531_v45 }
 0x578   : > { %v1678_v62 = vsel %vm347_vm0, %v1538_v54, 0  ;;  %vm3319_vm0 = vcmp.eq.s32.totalorder %v1848_v55, 1 }
 0x579   : > { %2167 = vmatmul.mubr.msk.bf16.vlgmr.msra.gmra.mrb[20].mxu0 %vm3472_vm11, %v3238_v5  ;;  %2202 = vmatpush3.bf16.msra.mxu1 %v1678_v62 }
 0x57c   : > { %2204 = vmatmul.mubr.msk.bf16.vlgmr.msra.gmra.mrb[20].mxu1 %vm3462_vm6, %v3238_v5 }
 0x582   : > { %v1654_v20 = vpop.permute.xlu1 %1653 }
 0x633   : > { %v1714_v8 = vpop.f32.mrb[16].mxu0 }
 0x634   : > { %v1716_v59 = vpop.f32.mrb[17].mxu0  ;;  %v3314_v18 = vadd.f32 %v1714_v8, %v1654_v20 }
 0x635   : > { %v1718_v4 = vpop.f32.mrb[18].mxu0  ;;  %v3316_v46 = vadd.f32 %v1716_v59, %v1654_v20 }
 0x636   : > { %v1719_v43 = vpop.f32.mrb[19].mxu0  ;;  %v1880_v38 = vsel %vm3319_vm0, %v3314_v18, 0.0 }
 0x637   : > { %v1881_v41 = vsel %vm3323_vm1, %v3316_v46, 0.0  ;;  %v1897_v9 = vmul.f32 %v1880_v38, %v1880_v38 }
 0x638   : > { %v1755_v16 = vpop.f32.mrb[16].mxu1  ;;  %v1898_v63 = vmul.f32 %v1881_v41, %v1881_v41  ;;  %v1887_v61 = vadd.f32 %v1881_v41, %v1880_v38 }
 0x639   : > { %v1757_v57 = vpop.f32.mrb[17].mxu1  ;;  %v3327_v23 = vadd.f32 %v1755_v16, %v1654_v20 }
 0x63a   : > { %v1759_v49 = vpop.f32.mrb[18].mxu1  ;;  %v3343_v53 = vadd.f32 %v1757_v57, %v1654_v20  ;;  %v1904_v60 = vadd.f32 %v1898_v63, %v1897_v9 }
 0x63b   : > { %v1760_v5 = vpop.f32.mrb[19].mxu1  ;;  %v1882_v25 = vsel %vm3335_vm4, %v3327_v23, 0.0 }
 0x63c   : > { %v1899_v50 = vmul.f32 %v1882_v25, %v1882_v25  ;;  %v1883_v17 = vsel %vm3345_vm13, %v3343_v53, 0.0  ;;  %v1888_v10 = vadd.f32 %v1887_v61, %v1882_v25 }
 0x63d   : > { %v1900_v21 = vmul.f32 %v1883_v17, %v1883_v17 }
 0x63e   : > { %v1905_v30 = vadd.f32 %v1904_v60, %v1899_v50  ;;  %v1889_v13 = vadd.f32 %v1888_v10, %v1883_v17 }
 0x640   : > { %v1906_v58 = vadd.f32 %v1905_v30, %v1900_v21 }
 0x64c   : > { %v1796_v2 = vpop.f32.mrb[20].mxu0 }
 0x64d   : > { %v3359_v34 = vadd.f32 %v1796_v2, %v1654_v20  ;;  %v1798_v11 = vpop.f32.mrb[21].mxu0 }
 0x64e   : > { %v3365_v56 = vadd.f32 %v1798_v11, %v1654_v20  ;;  %v1800_v36 = vpop.f32.mrb[22].mxu0 }
 0x64f   : > { %v1884_v31 = vsel %vm3355_vm5, %v3359_v34, 0.0  ;;  %v1801_v22 = vpop.f32.mrb[23].mxu0  ;;  %v1837_v12 = vpop.f32.mrb[20].mxu1 }
 0x650   : > { %v1890_v47 = vadd.f32 %v1889_v13, %v1884_v31  ;;  %v1901_v3 = vmul.f32 %v1884_v31, %v1884_v31  ;;  %v1885_v28 = vsel %vm3361_vm15, %v3365_v56, 0.0  ;;  %v1838_v33 = vadd.f32 %v1837_v12, %v1654_v20  ;;  %v2205_v6 = vpop.f32.mrb[21].mxu1 }
 0x651   : > { %v1902_v37 = vmul.f32 %v1885_v28, %v1885_v28  ;;  %v1840_v52 = vpop.f32.mrb[22].mxu1 }
 0x652   : > { %v1907_v45 = vadd.f32 %v1906_v58, %v1901_v3  ;;  %v1891_v54 = vadd.f32 %v1890_v47, %v1885_v28  ;;  %v1886_v62 = vsel %vm3370_vm7, %v1838_v33, 0.0  ;;  %v2206_v8 = vpop.f32.mrb[23].mxu1 }
 0x653   : > { %v1893_v14 = vsel %vm1892_vm8, %v1886_v62, 0.0  ;;  %v1903_v59 = vmul.f32 %v1886_v62, %v1886_v62 }
 0x654   : > { %v1908_v4 = vadd.f32 %v1907_v45, %v1902_v37  ;;  %v1894_v43 = vadd.f32 %v1893_v14, %v1891_v54 }
 0x655   : > { %v1909_v27 = vsel %vm1892_vm8, %v1903_v59, 0.0 }
 0x656   : > { %1895 = vadd.xlane.f32.xlu0 %v1894_v43  ;;  %v1910_v16 = vadd.f32 %v1909_v27, %v1908_v4 }
 0x658   : > { %1911 = vadd.xlane.f32.xlu1 %v1910_v16 }
 0x6e3   : > { %v1896_v20 = vpop.xlane.xlu0 %1895 }
 0x6e5   : > { %v1912_v55 = vpop.xlane.xlu1 %1911 }
 0x6e6   : > { %v1913_v42 = vsel %vm1208_vm2, %v1896_v20, %v1912_v55 }
 0x6e7   : > { %v1914_v57 = vsel %vm1210_vm14, %v1913_v42, 0.0  ;;  %vm2065_vm14 = vcmask 560128  }
 0x6e8   : > { %v1915_v49 = vrot.slane %v1914_v57, 4 }
 0x6ea   : > { %v1916_v5 = vadd.f32 %v1915_v49, %v1914_v57 }
 0x6ec   : > { %v1917_v39 = vrot.slane %v1916_v5, 2 }
 0x6ee   : > { %v1918_v38 = vadd.f32 %v1917_v39, %v1916_v5 }
 0x6f0   : > { %v1919_v41 = vrot.slane %v1918_v38, 1 }
 0x6f2   : > { %v1920_v29 = vadd.f32 %v1919_v41, %v1918_v38 }
 0x6f4   : > { %v1921_v9 = vmul.f32 0.00017146776, %v1920_v29 }
 0x6f6   : > { %1931 = vperm.xlu1 %2235, %v1921_v9   ;;  %v1922_v63 = vmul.f32 %v1921_v9, %v1921_v9 }
 0x6f8   : > { %1924 = vrot.lane.b32.xlu0 %v1922_v63, %s2328_s9 }
 0x6fa   : > { %2236 = vset.pattern.permute.xlu1 %v2329_v7 }
 0x6fb   : > { %1956 = vperm.xlu1 %2236, %v3095_v15  }
 0x76a   : > { %v1925_v25 = vpop.permute.xlu0 %1924 }
 0x76b   : > { %v1927_v61 = vsub.f32 %v1921_v9, %v1925_v25 }
 0x76d   : > { %v1928_v50 = vmax.f32 %v1927_v61, 0.0 }
 0x76f   : > { %v1941_v60 = vadd.f32 1e-05, %v1928_v50 }
 0x771   : > { %2280 = vrsqrt.f32 %v1941_v60 }
 0x775   : > { %v1932_v51 = vpop.permute.xlu1 %1931 }
 0x776   : > { %v1934_v1 = vsub.f32 %v3314_v18, %v1932_v51  ;;  %v1935_v10 = vsub.f32 %v3316_v46, %v1932_v51  ;;  %v1936_v7 = vsub.f32 %v3327_v23, %v1932_v51  ;;  %v1937_v30 = vsub.f32 %v3343_v53, %v1932_v51 }
 0x777   : > { %v1938_v21 = vsub.f32 %v3359_v34, %v1932_v51  ;;  %v1939_v26 = vsub.f32 %v3365_v56, %v1932_v51  ;;  %v1940_v2 = vsub.f32 %v1838_v33, %v1932_v51 }
 0x77a   : > { %v1957_v13 = vpop.permute.xlu1 %1956 }
 0x77b   : > { %v2281_v17 = vpop.eup %2280 }
 0x77c   : > { %1945 = vperm.xlu0 %2232, %v2281_v17  }
 0x780   : > { %2237 = vset.pattern.permute.xlu0 %v2330_v48 }
 0x781   : > { %1967 = vperm.xlu0 %2237, %v3095_v15  }
 0x7fb   : > { %v1946_v11 = vpop.permute.xlu0 %1945 }
 0x7fc   : > { %v1948_v36 = vmul.f32 %v1946_v11, %v1934_v1  ;;  %v1949_v48 = vmul.f32 %v1946_v11, %v1935_v10  ;;  %v1950_v58 = vmul.f32 %v1946_v11, %v1936_v7  ;;  %v1951_v15 = vmul.f32 %v1946_v11, %v1937_v30 }
 0x7fd   : > { %v1952_v31 = vmul.f32 %v1946_v11, %v1938_v21  ;;  %v1953_v22 = vmul.f32 %v1946_v11, %v1939_v26  ;;  %v1954_v18 = vmul.f32 %v1946_v11, %v1940_v2 }
 0x7fe   : > { %v1959_v12 = vmul.f32 %v1957_v13, %v1948_v36  ;;  %v1960_v46 = vmul.f32 %v1957_v13, %v1949_v48  ;;  %v1961_v47 = vmul.f32 %v1957_v13, %v1950_v58  ;;  %v1962_v23 = vmul.f32 %v1957_v13, %v1951_v15 }
 0x7ff   : > { %v1963_v3 = vmul.f32 %v1957_v13, %v1952_v31  ;;  %v1964_v53 = vmul.f32 %v1957_v13, %v1953_v22  ;;  %v1965_v28 = vmul.f32 %v1957_v13, %v1954_v18 }
 0x800   : > { %v1968_v34 = vpop.permute.xlu0 %1967 }
 0x801   : > { %v1970_v6 = vadd.f32 %v1968_v34, %v1959_v12  ;;  %v1971_v56 = vadd.f32 %v1968_v34, %v1960_v46  ;;  %v1972_v33 = vadd.f32 %v1968_v34, %v1961_v47  ;;  %v1973_v37 = vadd.f32 %v1968_v34, %v1962_v23 }
 0x802   : > { %v1974_v52 = vadd.f32 %v1968_v34, %v1963_v3  ;;  %v1975_v45 = vadd.f32 %v1968_v34, %v1964_v53  ;;  %v1976_v54 = vadd.f32 %v1968_v34, %v1965_v28 }
 0x803   : > { %v2169_v62 = vmul.f32 -1.442695, %v1970_v6  ;;  %v2170_v8 = vmul.f32 -1.442695, %v1971_v56  ;;  %v2171_v14 = vmul.f32 -1.442695, %v1972_v33 }
 0x804   : > { %v2172_v59 = vmul.f32 -1.442695, %v1973_v37  ;;  %v2173_v4 = vmul.f32 -1.442695, %v1974_v52  ;;  %v2174_v43 = vmul.f32 -1.442695, %v1975_v45 }
 0x805   : > { %2282 = vpow2.f32 %v2169_v62  ;;  %v2175_v27 = vmul.f32 -1.442695, %v1976_v54 }
 0x806   : > { %2284 = vpow2.f32 %v2170_v8 }
 0x807   : > { %2286 = vpow2.f32 %v2171_v14 }
 0x808   : > { %2288 = vpow2.f32 %v2172_v59 }
 0x809   : > { %2290 = vpow2.f32 %v2173_v4 }
 0x80a   : > { %2292 = vpow2.f32 %v2174_v43 }
 0x80b   : > { %2294 = vpow2.f32 %v2175_v27 }
 0x80f   : > { %v2283_v16 = vpop.eup %2282 }
 0x810   : > { %v2285_v20 = vpop.eup %2284  ;;  %v1998_v55 = vadd.f32 1.0, %v2283_v16 }
 0x811   : > { %v2287_v42 = vpop.eup %2286  ;;  %v1999_v57 = vadd.f32 1.0, %v2285_v20 }
 0x812   : > { %v2289_v49 = vpop.eup %2288  ;;  %v2000_v5 = vadd.f32 1.0, %v2287_v42  ;;  %2296 = vrcp.f32 %v1998_v55 }
 0x813   : > { %v2291_v39 = vpop.eup %2290  ;;  %v2001_v38 = vadd.f32 1.0, %v2289_v49  ;;  %2298 = vrcp.f32 %v1999_v57 }
 0x814   : > { %v2293_v41 = vpop.eup %2292  ;;  %v2002_v29 = vadd.f32 1.0, %v2291_v39  ;;  %2300 = vrcp.f32 %v2000_v5 }
 0x815   : > { %v2295_v9 = vpop.eup %2294  ;;  %v2003_v63 = vadd.f32 1.0, %v2293_v41  ;;  %2302 = vrcp.f32 %v2001_v38 }
 0x816   : > { %v2004_v25 = vadd.f32 1.0, %v2295_v9  ;;  %2304 = vrcp.f32 %v2002_v29 }
 0x817   : > { %2306 = vrcp.f32 %v2003_v63 }
 0x818   : > { %2308 = vrcp.f32 %v2004_v25 }
 0x81c   : > { %v2297_v61 = vpop.eup %2296 }
 0x81d   : > { %v2299_v50 = vpop.eup %2298  ;;  %v2019_v60 = vmul.f32 %v2297_v61, %v1970_v6 }
 0x81e   : > { %v2301_v17 = vpop.eup %2300  ;;  %v2020_v51 = vmul.f32 %v2299_v50, %v1971_v56 }
 0x81f   : > { %v2303_v1 = vpop.eup %2302  ;;  %v2021_v10 = vmul.f32 %v2301_v17, %v1972_v33  ;;  %v2026_v7 = vsel %vm3319_vm0, %v2019_v60, 0.0 }
 0x820   : > { %v2305_v30 = vpop.eup %2304  ;;  %v2022_v21 = vmul.f32 %v2303_v1, %v1973_v37  ;;  %v2027_v26 = vsel %vm3323_vm1, %v2020_v51, 0.0 }
 0x821   : > { %v2307_v2 = vpop.eup %2306  ;;  %v2023_v11 = vmul.f32 %v2305_v30, %v1974_v52  ;;  %v2028_v13 = vsel %vm3335_vm4, %v2021_v10, 0.0  ;;  %v2183_v36 = vpack.c.bf16 %v2027_v26, %v2026_v7 }
 0x822   : > { %v2309_v48 = vpop.eup %2308  ;;  %v2024_v58 = vmul.f32 %v2307_v2, %v1975_v45  ;;  %v2029_v40 = vsel %vm3345_vm13, %v2022_v21, 0.0 }
 0x823   : > { %v2025_v15 = vmul.f32 %v2309_v48, %v1976_v54  ;;  %v2030_v31 = vsel %vm3355_vm5, %v2023_v11, 0.0  ;;  %v2184_v22 = vpack.c.bf16 %v2029_v40, %v2028_v13  ;;  %2062 = vst [vmem:[%s305_s19] sm:$0xff] %v2183_v36 }
 0x824   : > { %v2031_v0 = vsel %vm3361_vm15, %v2024_v58, 0.0 }
 0x825   : > { %v2032_v24 = vsel %vm3370_vm7, %v2025_v15, 0.0  ;;  %v2185_v18 = vpack.c.bf16 %v2031_v0, %v2030_v31  ;;  %2063 = vst [vmem:[%s305_s19 + $0x8] sm:$0xff] %v2184_v22 }
 0x826   : > { %v2186_v12 = vpack.c.bf16 %v2032_v24, %v2032_v24 }
 0x827   : > { %2064 = vst [vmem:[%s305_s19 + $0x10] sm:$0xff] %v2185_v18 }
 0x828   : > { %2066 = vst.msk [vmem:[%s305_s19 + $0x18] sm:$0xf] %vm2065_vm14, %v2186_v12 }
 0x829 PF: > { %s18_s27 = sadd.s32 1, %s2317_s27  }
 0x82a   : > { %p15_p4 = scmp.ge.s32.totalorder %s18_s27, 4  }
 0x82c   :  { %17 = sbr.rel (!%p15_p4) target bundleno = 1 (0x1), region = 82 }

// kernel: unet_forward.6
= control target key start
LH: loop header
LB: loop body
LE: loop exit
PB: predicated region body
PF: predicated region fallthrough
CT: control target
= control target key end

     0   :  { %s1760_s21 = smov 0   ;;  %s2160_s0 = inlined_call_operand.vmem [shape: bf16[2,32,196], index: 0, kind: input, shape index: {}]   ;;  %s2161_s1 = inlined_call_operand.vmem [shape: s32[1,196], index: 1, kind: input, shape index: {}]   ;;  %s2162_s2 = inlined_call_operand.vmem [shape: bf16[8,128], index: 2, kind: input, shape index: {}]   ;;  %s2163_s3 = inlined_call_operand.vmem [shape: f32[8,1], index: 3, kind: input, shape index: {}]   ;;  %s2164_s4 = inlined_call_operand.vmem [shape: bf16[16,72], index: 4, kind: input, shape index: {}]   ;;  %s2165_s5 = inlined_call_operand.vmem [shape: f32[16,3], index: 5, kind: input, shape index: {}]   ;;  %s2166_s6 = inlined_call_operand.vmem [shape: bf16[16,144], index: 6, kind: input, shape index: {}]   ;;  %s2167_s7 = inlined_call_operand.vmem [shape: f32[16,3], index: 7, kind: input, shape index: {}]   ;;  %s2168_s8 = inlined_call_operand.vmem [shape: bf16[16,144], index: 8, kind: input, shape index: {}]   ;;  %s2169_s9 = inlined_call_operand.vmem [shape: f32[16,3], index: 9, kind: input, shape index: {}]   ;;  %s2170_s10 = inlined_call_operand.vmem [shape: bf16[8,144], index: 10, kind: input, shape index: {}]   ;;  %s2171_s11 = inlined_call_operand.vmem [shape: f32[8,3], index: 11, kind: input, shape index: {}]   ;;  %s2172_s12 = inlined_call_operand.vmem [shape: bf16[2,8,70], index: 12, kind: output, shape index: {}]  }
   0x1 LB: > { %s1527_s22 = sadd.s32 4294967295, %s1681_s21   ;;  %p1531_p0 = scmp.ge.s32.totalorder %s1681_s21, 1  ;;  %s1681_s21 = sphi %s1760_s21, %s22_s21  }
   0x2   : > { %p362_p1 = scmp.lt.s32.totalorder %s1681_s21, 3 }
   0x4   : > { %p363_p2 = pnand %p1531_p0, %p362_p1 }
   0x5   : > { %p403_p3 = scmp.lt.s32.totalorder (!%p363_p2), %s1527_s22, 1  ;;  %vm436_vm0 = vcmask (!%p363_p2), 556032   ;;  %s1683_s27 = smov (!%p363_p2), 127   ;;  %v1685_v6 = vmov (!%p363_p2), 0   ;;  %v445_v7 = vld [vmem:[%s2163_s3] sm:$0xff] (!%p363_p2)  ;;  %vm456_vm1 = vcmask (!%p363_p2), 1039360   ;;  %v541_v27 = vlaneseq (!%p363_p2) }
   0x6   : > { %366 = sbr.rel (%p363_p2) target bundleno = 3696 (0xe70), region = 68  ;;  %s1684_s28 = smov (!%p363_p2), 114   ;;  %530 = vmatprep.mubr.bf16.mxu0 (!%p363_p2), %v1685_v6  ;;  %1588 = vset.pattern.permute.xlu0 (!%p363_p2), %v1685_v6  ;;  %vm471_vm2 = vcmask (!%p363_p2), 932864   ;;  %vm486_vm3 = vcmask (!%p363_p2), 924672   ;;  %v444_v26 = vld [vmem:[%s2162_s2] sm:$0xf] (!%p363_p2) }
   0x7   : > { %1589 = vset.pattern.permute.xlu1 (!%p363_p2), %v1685_v6  ;;  %945 = vmatprep.subr.bf16.mxu1 (!%p363_p2), %v1685_v6  ;;  %s1686_s29 = smov (!%p363_p2), 113   ;;  %v1806_v28 = vld [vmem:[%s2161_s1] sm:$0x3] (!%p363_p2)  ;;  %v1808_v29 = vshrl.u32 (!%p363_p2), %v541_v27, 7  ;;  %s1687_s18 = smov (!%p363_p2), 126   ;;  %vm555_vm7 = vcmask (!%p363_p2), 441344  }
   0x8   : > { %vm539_vm4 = vcmp.lt.s32.totalorder (!%p363_p2), %v1806_v28, 13  ;;  %s1688_s19 = smov (!%p363_p2), 100   ;;  %s1689_s20 = smov (!%p363_p2), 112   ;;  %v1835_v49 = vld [vmem:[%s2165_s5] sm:$0xff] (!%p363_p2)  ;;  %v1844_v50 = vld [vmem:[%s2165_s5 + $0x8] sm:$0xff] (!%p363_p2)  ;;  %vm611_vm8 = vcmask (!%p363_p2), 1043456  }
   0x9   : > { %v1812_v30 = vsub.s32 (!%p363_p2), 0, %v1808_v29  ;;  %v540_v31 = vsel (!%p363_p2), %vm539_vm4, 1, %v1685_v6  ;;  %v547_v32 = vsub.s32 (!%p363_p2), 1, %v1808_v29  ;;  %s1691_s24 = smov (!%p363_p2), 98   ;;  %vm575_vm9 = vcmask (!%p363_p2), 1031168   ;;  %s1693_s16 = smov (!%p363_p2), 1  }
   0xa   : > { %vm591_vm10 = vcmask (!%p363_p2), 916480   ;;  %vm597_vm11 = vcmask (!%p363_p2), 818176   ;;  %vm603_vm12 = vcmask (!%p363_p2), 809984   ;;  %vm609_vm13 = vcmask (!%p363_p2), 801792  }
   0xb   : > { %v544_v33 = vrot.slane (!%p363_p2), %v540_v31, %v1812_v30  ;;  %v548_v34 = vrot.slane (!%p363_p2), %v540_v31, %v547_v32  ;;  %vm658_vm14 = vcmask (!%p363_p2), 588800   ;;  %vm711_vm15 = vcmp.lt.s32.totalorder (!%p363_p2), %v1806_v28, 11 }
   0xc   : > { %vm727_vm4 = vcmask (!%p363_p2), 211968  }
   0xd   : > { %s2182_s22 = smov (!%p403_p3, %s1527_s22), 1  ;;  %vm549_vm5 = vcmp.eq.s32.totalorder %v544_v33, 1  ;;  %vm550_vm6 = vcmp.eq.s32.totalorder %v548_v34, 1 }
   0xe   : > { %s1567_s23 = sshll.u32 %s2182_s22, 5 }
   0xf   : > { %s407_s26 = scalar_lea.vmem %s2160_s0, %s1567_s23  ;;  %s1690_s23 = smov 99  }
  0x10   : > { %v1609_v0 = vld [vmem:[%s407_s26 + $0x10] ss:$8 sps:$4 sm:$0xff]   ;;  %v1611_v1 = vld [vmem:[%s407_s26] ss:$8 sps:$4 sm:$0xff]   ;;  %v1613_v2 = vld [vmem:[%s407_s26 + $0x14] ss:$8 sps:$4 sm:$0xff]  }
  0x11   : > { %452 = vrot.lane.b32.xlu1 %v1609_v0, %s1683_s27  ;;  %v1614_v3 = vld [vmem:[%s407_s26 + $0x4] ss:$8 sps:$4 sm:$0xff]   ;;  %448 = vrot.lane.b32.xlu0 %v1611_v1, %s1683_s27  ;;  %v442_v4 = vsel %vm436_vm0, %v1613_v2, 0 }
  0x12   : > { %v439_v5 = vsel %vm436_vm0, %v1614_v3, 0  ;;  %1539 = vmatprep.subr.msk.bf16.mxu0 %vm436_vm0, %v1614_v3 }
  0x13   : > { %499 = vmatpush1.bf16.msra.mxu0 %v1611_v1 }
  0x14   : > { %1540 = vmatprep.subr.msk.bf16.mxu0 %vm436_vm0, %v1613_v2 }
  0x15   : > { %454 = vrot.lane.b32.xlu1 %v442_v4, %s1683_s27  ;;  %450 = vrot.lane.b32.xlu0 %v439_v5, %s1683_s27 }
  0x17   : > { %501 = vmatpush1.bf16.msra.mxu0 %v1609_v0 }
  0x19   : > { %465 = vrot.lane.b32.xlu1 %v439_v5, %s1684_s28  ;;  %463 = vrot.lane.b32.xlu0 %v1611_v1, %s1684_s28 }
  0x1d   : > { %469 = vrot.lane.b32.xlu1 %v442_v4, %s1684_s28  ;;  %467 = vrot.lane.b32.xlu0 %v1609_v0, %s1684_s28 }
  0x21   : > { %480 = vrot.lane.b32.xlu1 %v439_v5, %s1686_s29  ;;  %478 = vrot.lane.b32.xlu0 %v1611_v1, %s1686_s29 }
  0x25   : > { %484 = vrot.lane.b32.xlu1 %v442_v4, %s1686_s29  ;;  %482 = vrot.lane.b32.xlu0 %v1609_v0, %s1686_s29 }
  0x29   : > { %495 = vperm.xlu0 %1588, %v445_v7  }
  0x83   : > { %v453_v8 = vpop.permute.xlu1 %452  ;;  %v449_v9 = vpop.permute.xlu0 %448 }
  0x87   : > { %v455_v10 = vpop.permute.xlu1 %454  ;;  %v451_v11 = vpop.permute.xlu0 %450 }
  0x88   : > { %502 = vmatprep.subr.bf16.mxu0 %v451_v11  ;;  %v457_v12 = vsel %vm456_vm1, %v449_v9, %v451_v11  ;;  %v458_v15 = vsel %vm456_vm1, %v453_v8, %v455_v10 }
  0x89   : > { %503 = vmatpush1.bf16.msra.mxu0 %v457_v12 }
  0x8a   : > { %504 = vmatprep.subr.bf16.mxu0 %v455_v10 }
  0x8b   : > { %v466_v13 = vpop.permute.xlu1 %465  ;;  %v464_v14 = vpop.permute.xlu0 %463 }
  0x8c   : > { %v472_v16 = vsel %vm471_vm2, %v464_v14, %v466_v13 }
  0x8d   : > { %505 = vmatpush1.bf16.msra.mxu0 %v458_v15 }
  0x8e   : > { %506 = vmatprep.subr.bf16.mxu0 %v466_v13 }
  0x8f   : > { %v470_v17 = vpop.permute.xlu1 %469  ;;  %v468_v18 = vpop.permute.xlu0 %467 }
  0x90   : > { %v473_v19 = vsel %vm471_vm2, %v468_v18, %v470_v17 }
  0x91   : > { %507 = vmatpush1.bf16.msra.mxu0 %v472_v16 }
  0x92   : > { %508 = vmatprep.subr.bf16.mxu0 %v470_v17 }
  0x93   : > { %v481_v20 = vpop.permute.xlu1 %480  ;;  %v479_v21 = vpop.permute.xlu0 %478 }
  0x94   : > { %v487_v22 = vsel %vm486_vm3, %v479_v21, %v481_v20  ;;  %v1615_v21 = vld [vmem:[%s2164_s4] sm:$0xff]  }
  0x95   : > { %509 = vmatpush1.bf16.msra.mxu0 %v473_v19 }
  0x96   : > { %510 = vmatprep.subr.bf16.mxu0 %v481_v20 }
  0x97   : > { %v485_v23 = vpop.permute.xlu1 %484  ;;  %v483_v24 = vpop.permute.xlu0 %482 }
  0x98   : > { %v488_v25 = vsel %vm486_vm3, %v483_v24, %v485_v23 }
  0x99   : > { %511 = vmatpush1.bf16.msra.mxu0 %v487_v22  ;;  %v712_v22 = vsel %vm711_vm15, 1, %v1685_v6 }
  0x9a   : > { %512 = vmatprep.subr.bf16.mxu0 %v485_v23  ;;  %v1873_v23 = vrot.slane %v712_v22, %v547_v32  ;;  %v716_v24 = vrot.slane %v712_v22, %v1812_v30 }
  0x9c   : > { %vm722_vm0 = vcmp.eq.s32.totalorder %v1873_v23, 1  ;;  %v1618_v23 = vld [vmem:[%s2166_s6 + $0x4] ss:$8 sps:$4 sm:$0xff]  }
  0x9d   : > { %513 = vmatpush1.bf16.msra.mxu0 %v488_v25 }
  0xa0   : > { %531 = vmatmul.mubr.bf16.vlgmr.msra.gmra.mrb[0].mxu0 %v444_v26 }
  0xa1   : > { %700 = vmatprep.mubr.bf16.mxu0 %v1685_v6 }
  0xa8   : > { %v496_v35 = vpop.permute.xlu0 %495 }
 0x173   : > { %v532_v36 = vpop.f32.mrb[0].mxu0 }
 0x174   : > { %v533_v37 = vadd.f32 %v532_v36, %v496_v35  ;;  %v534_v38 = vpop.f32.mrb[1].mxu0 }
 0x175   : > { %v535_v39 = vadd.f32 %v534_v38, %v496_v35  ;;  %v536_v40 = vpop.f32.mrb[2].mxu0 }
 0x176   : > { %v551_v41 = vsel %vm549_vm5, %v533_v37, 0.0  ;;  %v537_v42 = vpop.f32.mrb[3].mxu0  ;;  %vm748_vm5 = vcmask 7168  }
 0x177   : > { %v553_v43 = vpack.c.bf16 %v551_v41, %v551_v41  ;;  %v552_v44 = vsel %vm550_vm6, %v535_v39, 0.0  ;;  %vm751_vm6 = vcmask 15360  }
 0x178   : > { %v554_v46 = vpack.c.bf16 %v552_v44, %v552_v44 }
 0x179   : > { %571 = vrot.lane.b32.xlu0 %v553_v43, %s1687_s18  ;;  %v564_v45 = vrot.slane %v553_v43, 4 }
 0x17a   : > { %v557_v47 = vsel %vm555_vm7, %v554_v46, 0 }
 0x17b   : > { %566 = vrot.lane.b32.xlu1 %v564_v45, %s1683_s27  ;;  %v565_v48 = vrot.slane %v557_v47, 4 }
 0x17d   : > { %582 = vrot.lane.b32.xlu0 %v553_v43, %s1686_s29 }
 0x17f   : > { %573 = vrot.lane.b32.xlu1 %v557_v47, %s1687_s18 }
 0x181   : > { %593 = vrot.lane.b32.xlu0 %v553_v43, %s1688_s19 }
 0x183   : > { %584 = vrot.lane.b32.xlu1 %v557_v47, %s1686_s29 }
 0x185   : > { %577 = vrot.lane.b32.xlu0 %v564_v45, %s1684_s28 }
 0x187   : > { %595 = vrot.lane.b32.xlu1 %v557_v47, %s1688_s19 }
 0x189   : > { %587 = vrot.lane.b32.xlu0 %v564_v45, %s1689_s20 }
 0x18b   : > { %568 = vrot.lane.b32.xlu1 %v565_v48, %s1683_s27 }
 0x18d   : > { %599 = vrot.lane.b32.xlu0 %v564_v45, %s1690_s23 }
 0x18f   : > { %579 = vrot.lane.b32.xlu1 %v565_v48, %s1684_s28 }
 0x191   : > { %605 = vrot.lane.b32.xlu0 %v553_v43, %s1691_s24 }
 0x193   : > { %589 = vrot.lane.b32.xlu1 %v565_v48, %s1689_s20 }
 0x195   : > { %645 = vperm.xlu0 %1588, %v1835_v49  }
 0x197   : > { %601 = vrot.lane.b32.xlu1 %v565_v48, %s1690_s23 }
 0x19b   : > { %607 = vrot.lane.b32.xlu1 %v557_v47, %s1691_s24 }
 0x19f   : > { %650 = vperm.xlu1 %1589, %v1844_v50  }
 0x1eb   : > { %v572_v51 = vpop.permute.xlu0 %571 }
 0x1ed   : > { %v567_v52 = vpop.permute.xlu1 %566 }
 0x1ef   : > { %v583_v53 = vpop.permute.xlu0 %582 }
 0x1f1   : > { %v574_v54 = vpop.permute.xlu1 %573 }
 0x1f2   : > { %v576_v1 = vsel %vm575_vm9, %v572_v51, %v574_v54 }
 0x1f3   : > { %v594_v55 = vpop.permute.xlu0 %593 }
 0x1f5   : > { %v585_v56 = vpop.permute.xlu1 %584 }
 0x1f6   : > { %v586_v7 = vsel %vm486_vm3, %v583_v53, %v585_v56 }
 0x1f7   : > { %v578_v58 = vpop.permute.xlu0 %577 }
 0x1f9   : > { %v596_v57 = vpop.permute.xlu1 %595 }
 0x1fa   : > { %v598_v13 = vsel %vm597_vm11, %v594_v55, %v596_v57 }
 0x1fb   : > { %v588_v63 = vpop.permute.xlu0 %587 }
 0x1fd   : > { %v569_v59 = vpop.permute.xlu1 %568 }
 0x1fe   : > { %v570_v60 = vsel %vm456_vm1, %v567_v52, %v569_v59  ;;  %v617_v61 = vsel %vm611_vm8, %v557_v47, %v569_v59  ;;  %vm1881_vm1 = vcmp.eq.s32.totalorder %v716_v24, 1 }
 0x1ff   : > { %668 = vmatprep.subr.bf16.mxu0 %v617_v61  ;;  %v614_v62 = vsel %vm611_vm8, %v553_v43, %v570_v60  ;;  %v600_v10 = vpop.permute.xlu0 %599  ;;  %vm1550_vm7 = vmpackc.low %vm1881_vm1, %vm1881_vm1 }
 0x200   : > { %669 = vmatpush1.bf16.msra.mxu0 %v614_v62 }
 0x201   : > { %v580_v0 = vpop.permute.xlu1 %579 }
 0x202   : > { %v581_v2 = vsel %vm471_vm2, %v578_v58, %v580_v0  ;;  %v625_v3 = vsel %vm611_vm8, %v574_v54, %v580_v0 }
 0x203   : > { %670 = vmatprep.subr.bf16.mxu0 %v625_v3  ;;  %v621_v4 = vsel %vm611_vm8, %v576_v1, %v581_v2  ;;  %v606_v17 = vpop.permute.xlu0 %605 }
 0x204   : > { %671 = vmatpush1.bf16.msra.mxu0 %v621_v4 }
 0x205   : > { %v590_v5 = vpop.permute.xlu1 %589 }
 0x206   : > { %v592_v8 = vsel %vm591_vm10, %v588_v63, %v590_v5  ;;  %v633_v9 = vsel %vm611_vm8, %v585_v56, %v590_v5 }
 0x207   : > { %672 = vmatprep.subr.bf16.mxu0 %v633_v9  ;;  %v629_v11 = vsel %vm611_vm8, %v586_v7, %v592_v8 }
 0x208   : > { %673 = vmatpush1.bf16.msra.mxu0 %v629_v11 }
 0x209   : > { %v602_v12 = vpop.permute.xlu1 %601 }
 0x20a   : > { %v604_v14 = vsel %vm603_vm12, %v600_v10, %v602_v12  ;;  %v641_v15 = vsel %vm611_vm8, %v596_v57, %v602_v12 }
 0x20b   : > { %674 = vmatprep.subr.bf16.mxu0 %v641_v15  ;;  %v637_v16 = vsel %vm611_vm8, %v598_v13, %v604_v14  ;;  %v1692_v15 = vmov 1  }
 0x20c   : > { %675 = vmatpush1.bf16.msra.mxu0 %v637_v16  ;;  %1591 = vset.pattern.permute.xlu0 %v1692_v15 }
 0x20d   : > { %v608_v18 = vpop.permute.xlu1 %607 }
 0x20e   : > { %v610_v19 = vsel %vm609_vm13, %v606_v17, %v608_v18  ;;  %1542 = vmatprep.subr.msk.bf16.mxu0 %vm611_vm8, %v608_v18 }
 0x20f   : > { %v663_v20 = vsel %vm611_vm8, %v610_v19, 0  ;;  %vm941_vm8 = vcmask 130048  }
 0x210   : > { %677 = vmatpush1.bf16.msra.mxu0 %v663_v20  ;;  %1553 = vmatprep.mubr.msk.bf16.mxu1 %vm941_vm8, %v1618_v23 }
 0x211   : > { %1161 = vmatprep.subr.bf16.mxu0 %v1685_v6 }
 0x213   : > { %1543 = vmatmul.mubr.msk.bf16.vlgmr.msra.gmra.mrb[4].mxu0 %vm658_vm14, %v1615_v21  ;;  %vm1472_vm14 = vcmask 568320  }
 0x214   : > { %v646_v25 = vpop.permute.xlu0 %645 }
 0x21e   : > { %v651_v27 = vpop.permute.xlu1 %650 }
 0x2e6   : > { %v702_v26 = vpop.f32.mrb[4].mxu0 }
 0x2e7   : > { %v1876_v31 = vadd.f32 %v702_v26, %v646_v25  ;;  %v704_v33 = vpop.f32.mrb[5].mxu0 }
 0x2e8   : > { %v1879_v34 = vadd.f32 %v704_v33, %v646_v25  ;;  %v706_v35 = vpop.f32.mrb[6].mxu0 }
 0x2e9   : > { %v1885_v29 = vadd.f32 %v706_v35, %v651_v27  ;;  %v708_v32 = vpop.f32.mrb[7].mxu0  ;;  %v723_v40 = vsel %vm1881_vm1, %v1876_v31, 0.0  ;;  %v1694_v35 = vmov 2  }
 0x2ea   : > { %v724_v37 = vsel %vm722_vm0, %v1879_v34, 0.0  ;;  %v1890_v38 = vadd.f32 %v708_v32, %v651_v27  ;;  %v736_v51 = vmul.f32 %v723_v40, %v723_v40 }
 0x2eb   : > { %v737_v39 = vmul.f32 %v724_v37, %v724_v37  ;;  %v728_v41 = vsel %vm727_vm4, %v724_v37, 0.0  ;;  %v725_v45 = vsel %vm1881_vm1, %v1885_v29, 0.0 }
 0x2ec   : > { %v726_v42 = vsel %vm722_vm0, %v1890_v38, 0.0  ;;  %v729_v43 = vadd.f32 %v728_v41, %v723_v40  ;;  %v738_v54 = vmul.f32 %v725_v45, %v725_v45 }
 0x2ed   : > { %v739_v44 = vmul.f32 %v726_v42, %v726_v42  ;;  %v732_v46 = vsel %vm727_vm4, %v726_v42, 0.0  ;;  %v740_v47 = vsel %vm727_vm4, %v737_v39, 0.0 }
 0x2ee   : > { %730 = vadd.xlane.f32.xlu0 %v729_v43  ;;  %v733_v48 = vadd.f32 %v732_v46, %v725_v45  ;;  %v741_v52 = vadd.f32 %v740_v47, %v736_v51 }
 0x2ef   : > { %v744_v53 = vsel %vm727_vm4, %v739_v44, 0.0 }
 0x2f0   : > { %734 = vadd.xlane.f32.xlu1 %v733_v48  ;;  %v745_v55 = vadd.f32 %v744_v53, %v738_v54 }
 0x2f2   : > { %742 = vadd.xlane.f32.xlu0 %v741_v52 }
 0x2f6   : > { %746 = vadd.xlane.f32.xlu0 %v745_v55 }
 0x37b   : > { %v731_v56 = vpop.xlane.xlu0 %730 }
 0x37d   : > { %v735_v61 = vpop.xlane.xlu1 %734 }
 0x37f   : > { %v743_v57 = vpop.xlane.xlu0 %742 }
 0x380   : > { %v749_v58 = vsel %vm748_vm5, %v731_v56, %v743_v57 }
 0x381   : > { %v752_v59 = vsel %vm751_vm6, %v749_v58, 0.0 }
 0x382   : > { %v753_v60 = vrot.slane %v752_v59, 4 }
 0x383   : > { %v747_v62 = vpop.xlane.xlu0 %746 }
 0x384   : > { %v754_v63 = vadd.f32 %v753_v60, %v752_v59  ;;  %v750_v0 = vsel %vm748_vm5, %v735_v61, %v747_v62 }
 0x385   : > { %v759_v1 = vsel %vm751_vm6, %v750_v0, 0.0 }
 0x386   : > { %v755_v2 = vrot.slane %v754_v63, 2  ;;  %v760_v3 = vrot.slane %v759_v1, 4 }
 0x388   : > { %v756_v4 = vadd.f32 %v755_v2, %v754_v63  ;;  %v761_v5 = vadd.f32 %v760_v3, %v759_v1 }
 0x38a   : > { %v757_v7 = vrot.slane %v756_v4, 1  ;;  %v762_v8 = vrot.slane %v761_v5, 2 }
 0x38c   : > { %v758_v9 = vadd.f32 %v757_v7, %v756_v4  ;;  %v763_v10 = vadd.f32 %v762_v8, %v761_v5 }
 0x38e   : > { %v766_v11 = vmul.f32 0.0010330578, %v758_v9  ;;  %v764_v12 = vrot.slane %v763_v10, 1 }
 0x390   : > { %v765_v13 = vadd.f32 %v764_v12, %v763_v10  ;;  %v768_v14 = vmul.f32 %v766_v11, %v766_v11 }
 0x392   : > { %v767_v16 = vmul.f32 0.0010330578, %v765_v13  ;;  %772 = vrot.lane.b32.xlu1 %v768_v14, %s1693_s16 }
 0x394   : > { %v769_v17 = vmul.f32 %v767_v16, %v767_v16 }
 0x396   : > { %784 = vperm.xlu1 %1589, %v766_v11   ;;  %774 = vrot.lane.b32.xlu0 %v769_v17, %s1693_s16 }
 0x39a   : > { %789 = vperm.xlu1 %1589, %v767_v16   ;;  %819 = vperm.xlu0 %1591, %v1844_v50  }
 0x39e   : > { %1590 = vset.pattern.permute.xlu1 %v1692_v15 }
 0x39f   : > { %815 = vperm.xlu1 %1590, %v1835_v49  }
 0x404   : > { %v773_v18 = vpop.permute.xlu1 %772 }
 0x405   : > { %v778_v19 = vsub.f32 %v766_v11, %v773_v18 }
 0x407   : > { %v780_v20 = vmax.f32 %v778_v19, 0.0 }
 0x408   : > { %v775_v21 = vpop.permute.xlu0 %774 }
 0x409   : > { %v796_v22 = vadd.f32 1e-05, %v780_v20  ;;  %v779_v24 = vsub.f32 %v767_v16, %v775_v21 }
 0x40b   : > { %1624 = vrsqrt.f32 %v796_v22  ;;  %v781_v25 = vmax.f32 %v779_v24, 0.0  ;;  %v1957_v22 = vld [vmem:[%s2167_s7] sm:$0xff]  ;;  %v1965_v24 = vld [vmem:[%s2167_s7 + $0x8] sm:$0xff] }
 0x40d   : > { %v797_v26 = vadd.f32 1e-05, %v781_v25 }
 0x40f   : > { %1626 = vrsqrt.f32 %v797_v26 }
 0x415   : > { %v1625_v27 = vpop.eup %1624  ;;  %v785_v32 = vpop.permute.xlu1 %784 }
 0x416   : > { %802 = vperm.xlu0 %1591, %v1625_v27   ;;  %v792_v42 = vsub.f32 %v1876_v31, %v785_v32  ;;  %v793_v43 = vsub.f32 %v1879_v34, %v785_v32 }
 0x419   : > { %v1627_v33 = vpop.eup %1626  ;;  %v790_v37 = vpop.permute.xlu1 %789 }
 0x41a   : > { %807 = vperm.xlu1 %1590, %v1627_v33   ;;  %1593 = vset.pattern.permute.xlu0 %v1694_v35  ;;  %v820_v39 = vpop.permute.xlu0 %819  ;;  %v794_v44 = vsub.f32 %v1885_v29, %v790_v37 }
 0x41b   : > { %831 = vperm.xlu0 %1593, %v1844_v50   ;;  %v795_v50 = vsub.f32 %v1890_v38, %v790_v37 }
 0x41e   : > { %1592 = vset.pattern.permute.xlu1 %v1694_v35  ;;  %v816_v40 = vpop.permute.xlu1 %815 }
 0x41f   : > { %827 = vperm.xlu1 %1592, %v1835_v49   ;;  %1594 = vset.pattern.permute.xlu0 %v1685_v6 }
 0x423   : > { %1595 = vset.pattern.permute.xlu1 %v1685_v6 }
 0x495   : > { %v803_v41 = vpop.permute.xlu0 %802 }
 0x496   : > { %v810_v45 = vmul.f32 %v803_v41, %v792_v42  ;;  %v811_v46 = vmul.f32 %v803_v41, %v793_v43 }
 0x498   : > { %v822_v54 = vmul.f32 %v816_v40, %v810_v45  ;;  %v823_v55 = vmul.f32 %v816_v40, %v811_v46 }
 0x499   : > { %v808_v49 = vpop.permute.xlu1 %807 }
 0x49a   : > { %v812_v47 = vmul.f32 %v808_v49, %v794_v44  ;;  %v813_v48 = vmul.f32 %v808_v49, %v795_v50  ;;  %v832_v51 = vpop.permute.xlu0 %831 }
 0x49c   : > { %v824_v52 = vmul.f32 %v820_v39, %v812_v47  ;;  %v825_v53 = vmul.f32 %v820_v39, %v813_v48 }
 0x49e   : > { %v836_v56 = vadd.f32 %v832_v51, %v824_v52  ;;  %v837_v57 = vadd.f32 %v832_v51, %v825_v53  ;;  %v828_v58 = vpop.permute.xlu1 %827  ;;  %v1616_v53 = vld [vmem:[%s2166_s6] ss:$8 sps:$4 sm:$0xff]  }
 0x49f   : > { %v834_v31 = vadd.f32 %v828_v58, %v822_v54  ;;  %v835_v59 = vadd.f32 %v828_v58, %v823_v55 }
 0x4a0   : > { %v1546_v34 = vmul.f32 -1.442695, %v836_v56  ;;  %v1547_v60 = vmul.f32 -1.442695, %v837_v57 }
 0x4a1   : > { %v1544_v29 = vmul.f32 -1.442695, %v834_v31  ;;  %v1545_v61 = vmul.f32 -1.442695, %v835_v59 }
 0x4a2   : > { %1628 = vpow2.f32 %v1546_v34 }
 0x4a3   : > { %1630 = vpow2.f32 %v1547_v60 }
 0x4a4   : > { %1632 = vpow2.f32 %v1544_v29 }
 0x4a5   : > { %1634 = vpow2.f32 %v1545_v61 }
 0x4ac   : > { %v1629_v38 = vpop.eup %1628 }
 0x4ad   : > { %v1631_v62 = vpop.eup %1630  ;;  %v852_v63 = vadd.f32 1.0, %v1629_v38 }
 0x4ae   : > { %v1633_v0 = vpop.eup %1632  ;;  %v853_v1 = vadd.f32 1.0, %v1631_v62 }
 0x4af   : > { %v1635_v2 = vpop.eup %1634  ;;  %1636 = vrcp.f32 %v852_v63  ;;  %v850_v3 = vadd.f32 1.0, %v1633_v0 }
 0x4b0   : > { %1638 = vrcp.f32 %v853_v1  ;;  %v851_v4 = vadd.f32 1.0, %v1635_v2 }
 0x4b1   : > { %1640 = vrcp.f32 %v850_v3 }
 0x4b2   : > { %1642 = vrcp.f32 %v851_v4 }
 0x4b9   : > { %v1637_v5 = vpop.eup %1636 }
 0x4ba   : > { %v1639_v7 = vpop.eup %1638  ;;  %v864_v8 = vmul.f32 %v1637_v5, %v836_v56 }
 0x4bb   : > { %v1641_v9 = vpop.eup %1640  ;;  %v865_v13 = vmul.f32 %v1639_v7, %v837_v57 }
 0x4bc   : > { %v1643_v10 = vpop.eup %1642  ;;  %v868_v11 = vsel %vm1881_vm1, %v864_v8, 0.0  ;;  %v862_v12 = vmul.f32 %v1641_v9, %v834_v31  ;;  %v1619_v31 = vld [vmem:[%s2168_s8 + $0x4] ss:$8 sps:$4 sm:$0xff]  }
 0x4bd   : > { %v863_v14 = vmul.f32 %v1643_v10, %v835_v59  ;;  %v869_v19 = vsel %vm722_vm0, %v865_v13, 0.0  ;;  %1558 = vmatprep.mubr.msk.bf16.mxu0 %vm941_vm8, %v1619_v31 }
 0x4be   : > { %v866_v16 = vsel %vm1881_vm1, %v862_v12, 0.0  ;;  %v1551_v17 = vpack.c.bf16 %v864_v8, %v862_v12 }
 0x4bf   : > { %v870_v18 = vpack.c.bf16 %v868_v11, %v866_v16  ;;  %v867_v20 = vsel %vm722_vm0, %v863_v14, 0.0 }
 0x4c0   : > { %1552 = vmatpush1.bf16.msk.msra.mxu1 %vm1550_vm7, %v1551_v17  ;;  %v871_v21 = vpack.c.bf16 %v869_v19, %v867_v20 }
 0x4c1   : > { %886 = vrot.lane.b32.xlu0 %v870_v18, %s1684_s28  ;;  %879 = vrot.lane.b32.xlu1 %v870_v18, %s1683_s27 }
 0x4c2   : > { %947 = vmatprep.subr.bf16.mxu1 %v1685_v6  ;;  %v873_v36 = vsel %vm727_vm4, %v871_v21, 0 }
 0x4c5   : > { %892 = vrot.lane.b32.xlu0 %v870_v18, %s1686_s29  ;;  %882 = vrot.lane.b32.xlu1 %v870_v18, %s1687_s18 }
 0x4c9   : > { %898 = vrot.lane.b32.xlu0 %v870_v18, %s1689_s20  ;;  %888 = vrot.lane.b32.xlu1 %v873_v36, %s1684_s28 }
 0x4cd   : > { %904 = vrot.lane.b32.xlu0 %v870_v18, %s1688_s19  ;;  %894 = vrot.lane.b32.xlu1 %v873_v36, %s1686_s29 }
 0x4d1   : > { %910 = vrot.lane.b32.xlu0 %v870_v18, %s1690_s23  ;;  %900 = vrot.lane.b32.xlu1 %v873_v36, %s1689_s20 }
 0x4d5   : > { %916 = vrot.lane.b32.xlu0 %v870_v18, %s1691_s24  ;;  %906 = vrot.lane.b32.xlu1 %v873_v36, %s1688_s19 }
 0x4d9   : > { %912 = vrot.lane.b32.xlu1 %v873_v36, %s1690_s23  ;;  %924 = vperm.xlu0 %1594, %v1957_v22  }
 0x4dd   : > { %918 = vrot.lane.b32.xlu1 %v873_v36, %s1691_s24 }
 0x4e1   : > { %929 = vperm.xlu1 %1595, %v1965_v24  }
 0x533   : > { %v887_v25 = vpop.permute.xlu0 %886  ;;  %v880_v26 = vpop.permute.xlu1 %879 }
 0x534   : > { %948 = vmatpush1.bf16.msra.mxu1 %v880_v26 }
 0x535   : > { %949 = vmatprep.subr.bf16.mxu1 %v1685_v6 }
 0x537   : > { %v893_v27 = vpop.permute.xlu0 %892  ;;  %v883_v33 = vpop.permute.xlu1 %882 }
 0x538   : > { %950 = vmatpush1.bf16.msra.mxu1 %v883_v33 }
 0x539   : > { %951 = vmatprep.subr.bf16.mxu1 %v1685_v6 }
 0x53b   : > { %v889_v32 = vpop.permute.xlu1 %888  ;;  %v899_v39 = vpop.permute.xlu0 %898 }
 0x53c   : > { %v890_v37 = vsel %vm471_vm2, %v887_v25, %v889_v32  ;;  %vm986_vm2 = vcmp.lt.s32.totalorder %v1806_v28, 9 }
 0x53d   : > { %952 = vmatpush1.bf16.msra.mxu1 %v890_v37  ;;  %v987_v54 = vsel %vm986_vm2, 1, %v1685_v6 }
 0x53e   : > { %953 = vmatprep.subr.bf16.mxu1 %v1685_v6  ;;  %v991_v55 = vrot.slane %v987_v54, %v1812_v30 }
 0x53f   : > { %v895_v40 = vpop.permute.xlu1 %894  ;;  %v905_v42 = vpop.permute.xlu0 %904 }
 0x540   : > { %v896_v41 = vsel %vm486_vm3, %v893_v27, %v895_v40  ;;  %vm1988_vm3 = vcmp.eq.s32.totalorder %v991_v55, 1 }
 0x541   : > { %954 = vmatpush1.bf16.msra.mxu1 %v896_v41 }
 0x542   : > { %955 = vmatprep.subr.bf16.mxu1 %v1685_v6 }
 0x543   : > { %v901_v43 = vpop.permute.xlu1 %900  ;;  %v911_v46 = vpop.permute.xlu0 %910 }
 0x544   : > { %v902_v44 = vsel %vm591_vm10, %v899_v39, %v901_v43 }
 0x545   : > { %956 = vmatpush1.bf16.msra.mxu1 %v902_v44 }
 0x546   : > { %957 = vmatprep.subr.bf16.mxu1 %v1685_v6 }
 0x547   : > { %v907_v50 = vpop.permute.xlu1 %906  ;;  %v917_v48 = vpop.permute.xlu0 %916 }
 0x548   : > { %v908_v45 = vsel %vm597_vm11, %v905_v42, %v907_v50 }
 0x549   : > { %958 = vmatpush1.bf16.msra.mxu1 %v908_v45 }
 0x54a   : > { %959 = vmatprep.subr.bf16.mxu1 %v1685_v6 }
 0x54b   : > { %v913_v49 = vpop.permute.xlu1 %912 }
 0x54c   : > { %v914_v47 = vsel %vm603_vm12, %v911_v46, %v913_v49 }
 0x54d   : > { %960 = vmatpush1.bf16.msra.mxu1 %v914_v47 }
 0x54e   : > { %961 = vmatprep.subr.bf16.mxu1 %v1685_v6 }
 0x54f   : > { %v919_v51 = vpop.permute.xlu1 %918 }
 0x550   : > { %v920_v52 = vsel %vm609_vm13, %v917_v48, %v919_v51 }
 0x551   : > { %962 = vmatpush1.bf16.msra.mxu1 %v920_v52 }
 0x552   : > { %1367 = vmatprep.subr.bf16.mxu1 %v1685_v6 }
 0x554   : > { %978 = vmatmul.mubr.bf16.vlgmr.msra.gmra.mrb[0].mxu1 %v1616_v53 }
 0x558   : > { %v925_v56 = vpop.permute.xlu0 %924 }
 0x560   : > { %v930_v58 = vpop.permute.xlu1 %929 }
 0x627   : > { %v979_v57 = vpop.f32.mrb[0].mxu1 }
 0x628   : > { %v1992_v59 = vadd.f32 %v979_v57, %v925_v56  ;;  %v981_v34 = vpop.f32.mrb[1].mxu1 }
 0x629   : > { %v982_v60 = vpop.f32.mrb[2].mxu1 }
 0x62a   : > { %v1994_v29 = vadd.f32 %v982_v60, %v930_v58  ;;  %v984_v61 = vpop.f32.mrb[3].mxu1  ;;  %v993_v38 = vsel %vm1988_vm3, %v1992_v59, 0.0 }
 0x62b   : > { %v996_v62 = vsel %vm575_vm9, %v993_v38, 0.0  ;;  %v1002_v2 = vmul.f32 %v993_v38, %v993_v38 }
 0x62c   : > { %997 = vadd.xlane.f32.xlu1 %v996_v62  ;;  %v994_v63 = vsel %vm1988_vm3, %v1994_v29, 0.0 }
 0x62d   : > { %v999_v0 = vsel %vm575_vm9, %v994_v63, 0.0  ;;  %v1003_v1 = vmul.f32 %v994_v63, %v994_v63  ;;  %v1004_v4 = vsel %vm575_vm9, %v1002_v2, 0.0 }
 0x62e   : > { %1000 = vadd.xlane.f32.xlu0 %v999_v0 }
 0x62f   : > { %v1007_v3 = vsel %vm575_vm9, %v1003_v1, 0.0 }
 0x630   : > { %1008 = vadd.xlane.f32.xlu1 %v1007_v3 }
 0x632   : > { %1005 = vadd.xlane.f32.xlu0 %v1004_v4 }
 0x6b9   : > { %v998_v5 = vpop.xlane.xlu1 %997 }
 0x6bb   : > { %v1001_v7 = vpop.xlane.xlu0 %1000 }
 0x6bd   : > { %v1009_v8 = vpop.xlane.xlu1 %1008 }
 0x6be   : > { %v1011_v9 = vsel %vm748_vm5, %v1001_v7, %v1009_v8 }
 0x6bf   : > { %v1019_v10 = vsel %vm751_vm6, %v1011_v9, 0.0  ;;  %v1006_v11 = vpop.xlane.xlu0 %1005 }
 0x6c0   : > { %v1020_v12 = vrot.slane %v1019_v10, 4  ;;  %v1010_v13 = vsel %vm748_vm5, %v998_v5, %v1006_v11 }
 0x6c1   : > { %v1012_v14 = vsel %vm751_vm6, %v1010_v13, 0.0  ;;  %v2050_v13 = vld [vmem:[%s2169_s9 + $0x8] sm:$0xff] }
 0x6c2   : > { %v1021_v16 = vadd.f32 %v1020_v12, %v1019_v10  ;;  %v1013_v17 = vrot.slane %v1012_v14, 4  ;;  %v2045_v12 = vld [vmem:[%s2169_s9] sm:$0xff] }
 0x6c4   : > { %v1022_v18 = vrot.slane %v1021_v16, 2  ;;  %v1014_v19 = vadd.f32 %v1013_v17, %v1012_v14 }
 0x6c6   : > { %v1023_v20 = vadd.f32 %v1022_v18, %v1021_v16  ;;  %v1015_v21 = vrot.slane %v1014_v19, 2 }
 0x6c8   : > { %v1024_v36 = vrot.slane %v1023_v20, 1  ;;  %v1016_v23 = vadd.f32 %v1015_v21, %v1014_v19 }
 0x6ca   : > { %v1025_v25 = vadd.f32 %v1024_v36, %v1023_v20  ;;  %v1017_v26 = vrot.slane %v1016_v23, 1 }
 0x6cc   : > { %v1027_v27 = vmul.f32 0.0015432099, %v1025_v25  ;;  %v1018_v33 = vadd.f32 %v1017_v26, %v1016_v23  ;;  %v1621_v23 = vld [vmem:[%s2168_s8] ss:$8 sps:$4 sm:$0xff]  }
 0x6ce   : > { %v1026_v32 = vmul.f32 0.0015432099, %v1018_v33  ;;  %v1029_v37 = vmul.f32 %v1027_v27, %v1027_v27 }
 0x6d0   : > { %1034 = vrot.lane.b32.xlu1 %v1029_v37, %s1693_s16  ;;  %v1028_v39 = vmul.f32 %v1026_v32, %v1026_v32  ;;  %v1326_v37 = vld [vmem:[%s2170_s10] sm:$0xff] }
 0x6d2   : > { %1032 = vrot.lane.b32.xlu0 %v1028_v39, %s1693_s16 }
 0x6d4   : > { %1044 = vperm.xlu1 %1595, %v1026_v32  }
 0x6d6   : > { %1049 = vperm.xlu0 %1594, %v1027_v27  }
 0x6d8   : > { %1596 = vset.pattern.permute.xlu1 %v1692_v15 }
 0x6d9   : > { %1071 = vperm.xlu1 %1596, %v1957_v22  }
 0x6da   : > { %1597 = vset.pattern.permute.xlu0 %v1692_v15 }
 0x6dd   : > { %1075 = vperm.xlu1 %1596, %v1965_v24  }
 0x742   : > { %v1035_v40 = vpop.permute.xlu1 %1034 }
 0x743   : > { %v1039_v41 = vsub.f32 %v1027_v27, %v1035_v40 }
 0x744   : > { %v1033_v42 = vpop.permute.xlu0 %1032 }
 0x745   : > { %v1041_v43 = vmax.f32 %v1039_v41, 0.0  ;;  %v1038_v44 = vsub.f32 %v1026_v32, %v1033_v42 }
 0x747   : > { %v1055_v50 = vadd.f32 1e-05, %v1041_v43  ;;  %v1040_v45 = vmax.f32 %v1038_v44, 0.0 }
 0x749   : > { %1644 = vrsqrt.f32 %v1055_v50  ;;  %v1054_v46 = vadd.f32 1e-05, %v1040_v45 }
 0x74b   : > { %1646 = vrsqrt.f32 %v1054_v46 }
 0x753   : > { %v1645_v49 = vpop.eup %1644  ;;  %v1045_v48 = vpop.permute.xlu1 %1044 }
 0x754   : > { %1065 = vperm.xlu0 %1597, %v1645_v49   ;;  %v1052_v56 = vsub.f32 %v1992_v59, %v1045_v48 }
 0x755   : > { %v1647_v47 = vpop.eup %1646  ;;  %v1050_v52 = vpop.permute.xlu0 %1049 }
 0x756   : > { %1060 = vperm.xlu1 %1596, %v1647_v47   ;;  %v1053_v54 = vsub.f32 %v1994_v29, %v1050_v52 }
 0x758   : > { %1598 = vset.pattern.permute.xlu0 %v1694_v35  ;;  %v1072_v51 = vpop.permute.xlu1 %1071 }
 0x759   : > { %1081 = vperm.xlu0 %1598, %v1957_v22  }
 0x75a   : > { %1599 = vset.pattern.permute.xlu1 %v1694_v35 }
 0x75b   : > { %1085 = vperm.xlu1 %1599, %v1965_v24  }
 0x75c   : > { %v1076_v53 = vpop.permute.xlu1 %1075 }
 0x75d   : > { %1601 = vset.pattern.permute.xlu0 %v1685_v6 }
 0x75f   : > { %1600 = vset.pattern.permute.xlu1 %v1685_v6 }
 0x7d3   : > { %v1066_v55 = vpop.permute.xlu0 %1065 }
 0x7d4   : > { %v1069_v57 = vmul.f32 %v1066_v55, %v1053_v54 }
 0x7d5   : > { %v1061_v58 = vpop.permute.xlu1 %1060 }
 0x7d6   : > { %v1068_v22 = vmul.f32 %v1061_v58, %v1052_v56  ;;  %v1079_v61 = vmul.f32 %v1076_v53, %v1069_v57 }
 0x7d8   : > { %v1082_v34 = vpop.permute.xlu0 %1081  ;;  %v1078_v60 = vmul.f32 %v1072_v51, %v1068_v22 }
 0x7da   : > { %v1088_v24 = vadd.f32 %v1082_v34, %v1078_v60  ;;  %v1086_v38 = vpop.permute.xlu1 %1085 }
 0x7db   : > { %v1089_v62 = vadd.f32 %v1086_v38, %v1079_v61 }
 0x7dc   : > { %v1554_v63 = vmul.f32 -1.442695, %v1088_v24 }
 0x7dd   : > { %v1555_v0 = vmul.f32 -1.442695, %v1089_v62 }
 0x7de   : > { %1648 = vpow2.f32 %v1554_v63 }
 0x7df   : > { %1650 = vpow2.f32 %v1555_v0 }
 0x7e8   : > { %v1649_v1 = vpop.eup %1648 }
 0x7e9   : > { %v1651_v2 = vpop.eup %1650  ;;  %v1096_v3 = vadd.f32 1.0, %v1649_v1 }
 0x7ea   : > { %v1097_v29 = vadd.f32 1.0, %v1651_v2 }
 0x7eb   : > { %1652 = vrcp.f32 %v1096_v3 }
 0x7ec   : > { %1654 = vrcp.f32 %v1097_v29 }
 0x7f5   : > { %v1653_v59 = vpop.eup %1652 }
 0x7f6   : > { %v1655_v4 = vpop.eup %1654  ;;  %v1102_v5 = vmul.f32 %v1653_v59, %v1088_v24 }
 0x7f7   : > { %v1103_v7 = vmul.f32 %v1655_v4, %v1089_v62 }
 0x7f8   : > { %v1104_v8 = vsel %vm1988_vm3, %v1102_v5, 0.0 }
 0x7f9   : > { %v1105_v9 = vsel %vm1988_vm3, %v1103_v7, 0.0 }
 0x7fa   : > { %v1106_v10 = vpack.c.bf16 %v1105_v9, %v1104_v8 }
 0x7fc   : > { %v1108_v11 = vsel %vm575_vm9, %v1106_v10, 0  ;;  %vm1202_vm9 = vcmp.lt.s32.totalorder %v1806_v28, 7 }
 0x7fd   : > { %1118 = vrot.lane.b32.xlu0 %v1108_v11, %s1687_s18  ;;  %1115 = vrot.lane.b32.xlu1 %v1108_v11, %s1683_s27  ;;  %v1203_v25 = vsel %vm1202_vm9, 1, %v1685_v6 }
 0x7fe   : > { %1162 = vmatpush1.bf16.msra.mxu0 %v1108_v11  ;;  %v1207_v26 = vrot.slane %v1203_v25, %v1812_v30 }
 0x7ff   : > { %1163 = vmatprep.subr.bf16.mxu0 %v1685_v6 }
 0x800   : > { %vm2068_vm10 = vcmp.eq.s32.totalorder %v1207_v26, 1 }
 0x801   : > { %1124 = vrot.lane.b32.xlu0 %v1108_v11, %s1686_s29  ;;  %1121 = vrot.lane.b32.xlu1 %v1108_v11, %s1684_s28 }
 0x805   : > { %1130 = vrot.lane.b32.xlu0 %v1108_v11, %s1688_s19  ;;  %1127 = vrot.lane.b32.xlu1 %v1108_v11, %s1689_s20 }
 0x809   : > { %1136 = vrot.lane.b32.xlu0 %v1108_v11, %s1691_s24  ;;  %1133 = vrot.lane.b32.xlu1 %v1108_v11, %s1690_s23 }
 0x80d   : > { %1141 = vperm.xlu1 %1600, %v2045_v12   ;;  %1146 = vperm.xlu0 %1601, %v2050_v13  }
 0x811   : > { %1603 = vset.pattern.permute.xlu0 %v1692_v15 }
 0x86f   : > { %v1116_v14 = vpop.permute.xlu1 %1115  ;;  %v1119_v16 = vpop.permute.xlu0 %1118 }
 0x870   : > { %1164 = vmatpush1.bf16.msra.mxu0 %v1116_v14 }
 0x871   : > { %1165 = vmatprep.subr.bf16.mxu0 %v1685_v6 }
 0x873   : > { %v1122_v17 = vpop.permute.xlu1 %1121  ;;  %v1125_v18 = vpop.permute.xlu0 %1124 }
 0x874   : > { %1166 = vmatpush1.bf16.msra.mxu0 %v1119_v16 }
 0x875   : > { %1167 = vmatprep.subr.bf16.mxu0 %v1685_v6 }
 0x877   : > { %v1128_v19 = vpop.permute.xlu1 %1127  ;;  %v1131_v20 = vpop.permute.xlu0 %1130 }
 0x878   : > { %1168 = vmatpush1.bf16.msra.mxu0 %v1122_v17 }
 0x879   : > { %1169 = vmatprep.subr.bf16.mxu0 %v1685_v6 }
 0x87b   : > { %v1134_v21 = vpop.permute.xlu1 %1133  ;;  %v1137_v36 = vpop.permute.xlu0 %1136 }
 0x87c   : > { %1170 = vmatpush1.bf16.msra.mxu0 %v1125_v18 }
 0x87d   : > { %1171 = vmatprep.subr.bf16.mxu0 %v1685_v6 }
 0x880   : > { %1172 = vmatpush1.bf16.msra.mxu0 %v1128_v19 }
 0x881   : > { %1173 = vmatprep.subr.bf16.mxu0 %v1685_v6 }
 0x884   : > { %1174 = vmatpush1.bf16.msra.mxu0 %v1131_v20 }
 0x885   : > { %1175 = vmatprep.subr.bf16.mxu0 %v1685_v6 }
 0x888   : > { %1176 = vmatpush1.bf16.msra.mxu0 %v1134_v21 }
 0x889   : > { %1177 = vmatprep.subr.bf16.mxu0 %v1685_v6 }
 0x88c   : > { %1178 = vmatpush1.bf16.msra.mxu0 %v1137_v36  ;;  %v1142_v27 = vpop.permute.xlu1 %1141  ;;  %v1147_v32 = vpop.permute.xlu0 %1146 }
 0x88f   : > { %1194 = vmatmul.mubr.bf16.vlgmr.msra.gmra.mrb[8].mxu0 %v1621_v23 }
 0x962   : > { %v1195_v33 = vpop.f32.mrb[8].mxu0 }
 0x963   : > { %v2072_v39 = vadd.f32 %v1195_v33, %v1142_v27  ;;  %v1197_v40 = vpop.f32.mrb[9].mxu0 }
 0x964   : > { %v1198_v41 = vpop.f32.mrb[10].mxu0 }
 0x965   : > { %v2074_v42 = vadd.f32 %v1198_v41, %v1147_v32  ;;  %v1200_v43 = vpop.f32.mrb[11].mxu0  ;;  %v1209_v28 = vsel %vm2068_vm10, %v2072_v39, 0.0 }
 0x966   : > { %v1212_v44 = vsel %vm609_vm13, %v1209_v28, 0.0  ;;  %v1218_v50 = vmul.f32 %v1209_v28, %v1209_v28 }
 0x967   : > { %1213 = vadd.xlane.f32.xlu1 %v1212_v44  ;;  %v1210_v45 = vsel %vm2068_vm10, %v2074_v42, 0.0 }
 0x968   : > { %v1215_v46 = vsel %vm609_vm13, %v1210_v45, 0.0  ;;  %v1219_v49 = vmul.f32 %v1210_v45, %v1210_v45  ;;  %v1220_v47 = vsel %vm609_vm13, %v1218_v50, 0.0 }
 0x969   : > { %1216 = vadd.xlane.f32.xlu0 %v1215_v46 }
 0x96a   : > { %v1223_v48 = vsel %vm609_vm13, %v1219_v49, 0.0 }
 0x96b   : > { %1221 = vadd.xlane.f32.xlu1 %v1220_v47 }
 0x96d   : > { %1224 = vadd.xlane.f32.xlu0 %v1223_v48 }
 0x9f4   : > { %v1214_v51 = vpop.xlane.xlu1 %1213 }
 0x9f6   : > { %v1217_v52 = vpop.xlane.xlu0 %1216 }
 0x9f8   : > { %v1222_v53 = vpop.xlane.xlu1 %1221 }
 0x9f9   : > { %v1226_v54 = vsel %vm748_vm5, %v1214_v51, %v1222_v53 }
 0x9fa   : > { %v1228_v55 = vsel %vm751_vm6, %v1226_v54, 0.0  ;;  %v1225_v56 = vpop.xlane.xlu0 %1224 }
 0x9fb   : > { %v1229_v57 = vrot.slane %v1228_v55, 4  ;;  %v1227_v58 = vsel %vm748_vm5, %v1217_v52, %v1225_v56  ;;  %v2124_v56 = vld [vmem:[%s2171_s11] sm:$0xff] }
 0x9fc   : > { %v1235_v22 = vsel %vm751_vm6, %v1227_v58, 0.0 }
 0x9fd   : > { %v1230_v34 = vadd.f32 %v1229_v57, %v1228_v55  ;;  %v1236_v60 = vrot.slane %v1235_v22, 4  ;;  %v1562_v55 = vcombine.high %v1326_v37, %v1326_v37 }
 0x9ff   : > { %v1231_v61 = vrot.slane %v1230_v34, 2  ;;  %v1237_v24 = vadd.f32 %v1236_v60, %v1235_v22  ;;  %1563 = vmatprep.mubr.msk.bf16.mxu1 %vm941_vm8, %v1562_v55 }
 0xa01   : > { %v1232_v38 = vadd.f32 %v1231_v61, %v1230_v34  ;;  %v1238_v62 = vrot.slane %v1237_v24, 2 }
 0xa03   : > { %v1233_v63 = vrot.slane %v1232_v38, 1  ;;  %v1239_v0 = vadd.f32 %v1238_v62, %v1237_v24  ;;  %v1561_v62 = vcombine.low %v1326_v37, %v1326_v37 }
 0xa05   : > { %v1234_v1 = vadd.f32 %v1233_v63, %v1232_v38  ;;  %v1240_v2 = vrot.slane %v1239_v0, 1  ;;  %v1674_v63 = vld [vmem:[%s2161_s1] sm:$0x3] }
 0xa06   : > { %vm1407_vm11 = vcmp.lt.s32.totalorder %v1674_v63, 5 }
 0xa07   : > { %v1242_v3 = vmul.f32 0.0025510204, %v1234_v1  ;;  %v1241_v29 = vadd.f32 %v1240_v2, %v1239_v0  ;;  %v1408_v0 = vsel %vm1407_vm11, 1, %v1685_v6 }
 0xa08   : > { %v1412_v1 = vrot.slane %v1408_v0, %v1812_v30 }
 0xa09   : > { %v1243_v59 = vmul.f32 0.0025510204, %v1241_v29  ;;  %v1244_v4 = vmul.f32 %v1242_v3, %v1242_v3 }
 0xa0a   : > { %vm2139_vm12 = vcmp.eq.s32.totalorder %v1412_v1, 1 }
 0xa0b   : > { %1248 = vrot.lane.b32.xlu1 %v1244_v4, %s1693_s16  ;;  %v1245_v5 = vmul.f32 %v1243_v59, %v1243_v59 }
 0xa0d   : > { %1250 = vrot.lane.b32.xlu0 %v1245_v5, %s1693_s16 }
 0xa0f   : > { %1260 = vperm.xlu1 %1600, %v1242_v3  }
 0xa11   : > { %1291 = vperm.xlu0 %1603, %v2050_v13  }
 0xa13   : > { %1265 = vperm.xlu1 %1600, %v1243_v59  }
 0xa17   : > { %1602 = vset.pattern.permute.xlu1 %v1692_v15 }
 0xa18   : > { %1287 = vperm.xlu1 %1602, %v2045_v12  }
 0xa7d   : > { %v1249_v7 = vpop.permute.xlu1 %1248 }
 0xa7e   : > { %v1254_v8 = vsub.f32 %v1242_v3, %v1249_v7 }
 0xa7f   : > { %v1251_v9 = vpop.permute.xlu0 %1250 }
 0xa80   : > { %v1256_v10 = vmax.f32 %v1254_v8, 0.0  ;;  %v1255_v11 = vsub.f32 %v1243_v59, %v1251_v9 }
 0xa82   : > { %v1270_v31 = vadd.f32 1e-05, %v1256_v10  ;;  %v1257_v14 = vmax.f32 %v1255_v11, 0.0 }
 0xa84   : > { %1656 = vrsqrt.f32 %v1270_v31  ;;  %v1271_v16 = vadd.f32 1e-05, %v1257_v14 }
 0xa86   : > { %1658 = vrsqrt.f32 %v1271_v16 }
 0xa8e   : > { %v1657_v17 = vpop.eup %1656  ;;  %v1261_v19 = vpop.permute.xlu1 %1260 }
 0xa8f   : > { %1276 = vperm.xlu0 %1603, %v1657_v17   ;;  %v1268_v23 = vsub.f32 %v2072_v39, %v1261_v19 }
 0xa90   : > { %v1659_v18 = vpop.eup %1658  ;;  %v1292_v21 = vpop.permute.xlu0 %1291 }
 0xa91   : > { %1281 = vperm.xlu1 %1602, %v1659_v18  }
 0xa92   : > { %v1266_v20 = vpop.permute.xlu1 %1265 }
 0xa93   : > { %1605 = vset.pattern.permute.xlu0 %v1694_v35  ;;  %v1269_v26 = vsub.f32 %v2074_v42, %v1266_v20 }
 0xa94   : > { %1301 = vperm.xlu0 %1605, %v2050_v13  }
 0xa95   : > { %1604 = vset.pattern.permute.xlu1 %v1694_v35 }
 0xa96   : > { %1297 = vperm.xlu1 %1604, %v2045_v12  }
 0xa97   : > { %v1288_v36 = vpop.permute.xlu1 %1287 }
 0xa98   : > { %1606 = vset.pattern.permute.xlu0 %v1685_v6 }
 0xa9a   : > { %1607 = vset.pattern.permute.xlu1 %v1692_v15 }
 0xb0e   : > { %v1277_v25 = vpop.permute.xlu0 %1276 }
 0xb0f   : > { %v1284_v27 = vmul.f32 %v1277_v25, %v1268_v23 }
 0xb10   : > { %v1282_v33 = vpop.permute.xlu1 %1281 }
 0xb11   : > { %v1285_v13 = vmul.f32 %v1282_v33, %v1269_v26  ;;  %v1294_v41 = vmul.f32 %v1288_v36, %v1284_v27 }
 0xb13   : > { %v1302_v32 = vpop.permute.xlu0 %1301  ;;  %v1295_v40 = vmul.f32 %v1292_v21, %v1285_v13 }
 0xb15   : > { %v1305_v12 = vadd.f32 %v1302_v32, %v1295_v40  ;;  %v1298_v43 = vpop.permute.xlu1 %1297 }
 0xb16   : > { %v1304_v28 = vadd.f32 %v1298_v43, %v1294_v41 }
 0xb17   : > { %v1560_v44 = vmul.f32 -1.442695, %v1305_v12 }
 0xb18   : > { %v1559_v15 = vmul.f32 -1.442695, %v1304_v28 }
 0xb19   : > { %1660 = vpow2.f32 %v1560_v44 }
 0xb1a   : > { %1662 = vpow2.f32 %v1559_v15 }
 0xb23   : > { %v1661_v50 = vpop.eup %1660 }
 0xb24   : > { %v1663_v45 = vpop.eup %1662  ;;  %v1313_v46 = vadd.f32 1.0, %v1661_v50 }
 0xb25   : > { %v1312_v39 = vadd.f32 1.0, %v1663_v45 }
 0xb26   : > { %1664 = vrcp.f32 %v1313_v46 }
 0xb27   : > { %1666 = vrcp.f32 %v1312_v39 }
 0xb30   : > { %v1665_v42 = vpop.eup %1664 }
 0xb31   : > { %v1667_v49 = vpop.eup %1666  ;;  %v1319_v47 = vmul.f32 %v1665_v42, %v1305_v12 }
 0xb32   : > { %v1318_v48 = vmul.f32 %v1667_v49, %v1304_v28 }
 0xb33   : > { %v1321_v51 = vsel %vm2068_vm10, %v1319_v47, 0.0 }
 0xb34   : > { %v1320_v52 = vsel %vm2068_vm10, %v1318_v48, 0.0 }
 0xb35   : > { %v1322_v53 = vpack.c.bf16 %v1321_v51, %v1320_v52 }
 0xb37   : > { %v1324_v54 = vsel %vm609_vm13, %v1322_v53, 0  ;;  %vm1415_vm13 = vcmask 572416  }
 0xb38   : > { %1335 = vrot.lane.b32.xlu0 %v1324_v54, %s1684_s28  ;;  %1329 = vrot.lane.b32.xlu1 %v1324_v54, %s1683_s27 }
 0xb39   : > { %1368 = vmatpush1.bf16.msra.mxu1 %v1324_v54 }
 0xb3a   : > { %1369 = vmatprep.subr.bf16.mxu1 %v1685_v6 }
 0xb3c   : > { %1341 = vrot.lane.b32.xlu0 %v1324_v54, %s1689_s20  ;;  %1332 = vrot.lane.b32.xlu1 %v1324_v54, %s1687_s18 }
 0xb40   : > { %1347 = vrot.lane.b32.xlu0 %v1324_v54, %s1690_s23  ;;  %1338 = vrot.lane.b32.xlu1 %v1324_v54, %s1686_s29 }
 0xb44   : > { %1344 = vrot.lane.b32.xlu1 %v1324_v54, %s1688_s19  ;;  %1355 = vperm.xlu0 %1606, %v2124_v56   ;;  %s1534_s19 = sshll.u32 %s2182_s22, 2 }
 0xb48   : > { %1350 = vrot.lane.b32.xlu1 %v1324_v54, %s1691_s24  ;;  %s411_s24 = scalar_lea.vmem %s2172_s12, %s1534_s19 }
 0xbaa   : > { %v1330_v57 = vpop.permute.xlu1 %1329  ;;  %v1336_v22 = vpop.permute.xlu0 %1335 }
 0xbab   : > { %1370 = vmatpush1.bf16.msra.mxu1 %v1330_v57 }
 0xbac   : > { %1371 = vmatprep.subr.bf16.mxu1 %v1685_v6 }
 0xbae   : > { %v1333_v58 = vpop.permute.xlu1 %1332  ;;  %v1342_v60 = vpop.permute.xlu0 %1341 }
 0xbaf   : > { %1372 = vmatpush1.bf16.msra.mxu1 %v1333_v58 }
 0xbb0   : > { %1373 = vmatprep.subr.bf16.mxu1 %v1685_v6 }
 0xbb2   : > { %v1339_v34 = vpop.permute.xlu1 %1338  ;;  %v1348_v24 = vpop.permute.xlu0 %1347 }
 0xbb3   : > { %1374 = vmatpush1.bf16.msra.mxu1 %v1336_v22 }
 0xbb4   : > { %1375 = vmatprep.subr.bf16.mxu1 %v1685_v6 }
 0xbb6   : > { %v1345_v61 = vpop.permute.xlu1 %1344 }
 0xbb7   : > { %1376 = vmatpush1.bf16.msra.mxu1 %v1339_v34 }
 0xbb8   : > { %1377 = vmatprep.subr.bf16.mxu1 %v1685_v6 }
 0xbba   : > { %v1351_v38 = vpop.permute.xlu1 %1350 }
 0xbbb   : > { %1378 = vmatpush1.bf16.msra.mxu1 %v1342_v60 }
 0xbbc   : > { %1379 = vmatprep.subr.bf16.mxu1 %v1685_v6 }
 0xbbf   : > { %1380 = vmatpush1.bf16.msra.mxu1 %v1345_v61 }
 0xbc0   : > { %1381 = vmatprep.subr.bf16.mxu1 %v1685_v6 }
 0xbc3   : > { %1382 = vmatpush1.bf16.msra.mxu1 %v1348_v24  ;;  %v1356_v2 = vpop.permute.xlu0 %1355 }
 0xbc4   : > { %1383 = vmatprep.subr.bf16.mxu1 %v1685_v6 }
 0xbc7   : > { %1384 = vmatpush1.bf16.msra.mxu1 %v1351_v38 }
 0xbca   : > { %1400 = vmatmul.mubr.bf16.vlgmr.msra.gmra.mrb[4].mxu1 %v1561_v62 }
 0xc9d   : > { %v1401_v3 = vpop.f32.mrb[4].mxu1 }
 0xc9e   : > { %v1402_v59 = vadd.f32 %v1401_v3, %v1356_v2  ;;  %v1403_v4 = vpop.f32.mrb[5].mxu1 }
 0xc9f   : > { %v1404_v5 = vpop.f32.mrb[6].mxu1 }
 0xca0   : > { %v1414_v7 = vsel %vm2139_vm12, %v1402_v59, 0.0  ;;  %v1405_v8 = vpop.f32.mrb[7].mxu1 }
 0xca1   : > { %v1419_v9 = vmul.f32 %v1414_v7, %v1414_v7  ;;  %v1416_v10 = vsel %vm1415_vm13, %v1414_v7, 0.0 }
 0xca2   : > { %1417 = vadd.xlane.f32.xlu1 %v1416_v10 }
 0xca3   : > { %v1420_v6 = vsel %vm1415_vm13, %v1419_v9, 0.0 }
 0xca4   : > { %1421 = vadd.xlane.f32.xlu0 %v1420_v6 }
 0xd2f   : > { %v1418_v30 = vpop.xlane.xlu1 %1417 }
 0xd31   : > { %v1422_v11 = vpop.xlane.xlu0 %1421 }
 0xd32   : > { %v1423_v31 = vsel %vm748_vm5, %v1418_v30, %v1422_v11 }
 0xd33   : > { %v1424_v14 = vsel %vm751_vm6, %v1423_v31, 0.0 }
 0xd34   : > { %v1425_v16 = vrot.slane %v1424_v14, 4 }
 0xd36   : > { %v1426_v17 = vadd.f32 %v1425_v16, %v1424_v14 }
 0xd38   : > { %v1427_v18 = vrot.slane %v1426_v17, 2 }
 0xd3a   : > { %v1428_v19 = vadd.f32 %v1427_v18, %v1426_v17 }
 0xd3c   : > { %v1429_v20 = vrot.slane %v1428_v19, 1 }
 0xd3e   : > { %v1430_v21 = vadd.f32 %v1429_v20, %v1428_v19 }
 0xd40   : > { %v1431_v36 = vmul.f32 0.005, %v1430_v21 }
 0xd42   : > { %1441 = vperm.xlu0 %1606, %v1431_v36   ;;  %v1432_v23 = vmul.f32 %v1431_v36, %v1431_v36 }
 0xd44   : > { %1434 = vrot.lane.b32.xlu1 %v1432_v23, %s1693_s16 }
 0xd46   : > { %1608 = vset.pattern.permute.xlu0 %v1694_v35 }
 0xd47   : > { %1459 = vperm.xlu0 %1608, %v2124_v56  }
 0xdb6   : > { %v1435_v25 = vpop.permute.xlu1 %1434 }
 0xdb7   : > { %v1437_v26 = vsub.f32 %v1431_v36, %v1435_v25 }
 0xdb9   : > { %v1438_v27 = vmax.f32 %v1437_v26, 0.0 }
 0xdbb   : > { %v1445_v33 = vadd.f32 1e-05, %v1438_v27 }
 0xdbd   : > { %1668 = vrsqrt.f32 %v1445_v33 }
 0xdc1   : > { %v1442_v32 = vpop.permute.xlu0 %1441 }
 0xdc2   : > { %v1444_v41 = vsub.f32 %v1402_v59, %v1442_v32 }
 0xdc6   : > { %v1460_v28 = vpop.permute.xlu0 %1459 }
 0xdc7   : > { %v1669_v13 = vpop.eup %1668 }
 0xdc8   : > { %1449 = vperm.xlu1 %1607, %v1669_v13  }
 0xdcc   : > { %1454 = vperm.xlu1 %1607, %v2124_v56  }
 0xe47   : > { %v1450_v40 = vpop.permute.xlu1 %1449 }
 0xe48   : > { %v1452_v12 = vmul.f32 %v1450_v40, %v1444_v41 }
 0xe4b   : > { %v1455_v43 = vpop.permute.xlu1 %1454 }
 0xe4c   : > { %v1457_v44 = vmul.f32 %v1455_v43, %v1452_v12 }
 0xe4e   : > { %v1462_v35 = vadd.f32 %v1460_v28, %v1457_v44 }
 0xe50   : > { %v1564_v15 = vmul.f32 -1.442695, %v1462_v35 }
 0xe52   : > { %1670 = vpow2.f32 %v1564_v15 }
 0xe5c   : > { %v1671_v50 = vpop.eup %1670 }
 0xe5d   : > { %v1466_v45 = vadd.f32 1.0, %v1671_v50 }
 0xe5f   : > { %1672 = vrcp.f32 %v1466_v45 }
 0xe69   : > { %v1673_v46 = vpop.eup %1672 }
 0xe6a   : > { %v1469_v39 = vmul.f32 %v1673_v46, %v1462_v35 }
 0xe6c   : > { %v1470_v42 = vsel %vm2139_vm12, %v1469_v39, 0.0 }
 0xe6d   : > { %v1471_v49 = vpack.c.bf16 %v1470_v42, %v1470_v42 }
 0xe6f   : > { %1473 = vst.msk [vmem:[%s411_s24] sm:$0xf] %vm1472_vm14, %v1471_v49 }
 0xe70 PF: > { %s22_s21 = sadd.s32 1, %s1681_s21  }
 0xe71   : > { %p19_p4 = scmp.ge.s32.totalorder %s22_s21, 4  }
 0xe73   :  { %21 = sbr.rel (!%p19_p4) target bundleno = 1 (0x1), region = 98 }

// kernel: tile.8
= control target key start
LH: loop header
LB: loop body
LE: loop exit
PB: predicated region body
PF: predicated region fallthrough
CT: control target
= control target key end

     0   :  { %s22_s0 = inlined_call_operand.vmem [shape: f32[8], index: 0, kind: input, shape index: {}]   ;;  %s23_s1 = inlined_call_operand.vmem [shape: f32[4,8], index: 1, kind: output, shape index: {}]  }
   0x1   :  { %v4_v0 = vld [vmem:[%s22_s0] ss:$0 sm:$0xff] }
   0x2   :  { %5 = vst [vmem:[%s23_s1] sm:$0xf] %v4_v0 }

// kernel: tile.0
= control target key start
LH: loop header
LB: loop body
LE: loop exit
PB: predicated region body
PF: predicated region fallthrough
CT: control target
= control target key end

     0   :  { %s66_s8 = smov 125   ;;  %vm7_vm0 = vcmask 7168   ;;  %s67_s11 = smov 126   ;;  %s117_s0 = inlined_call_operand.vmem [shape: f32[4,8], index: 0, kind: input, shape index: {}]   ;;  %s118_s1 = inlined_call_operand.vmem [shape: f32[32,1], index: 1, kind: output, shape index: {}]  }
   0x1   :  { %v4_v0 = vld [vmem:[%s117_s0] sm:$0xf]  ;;  %s65_s0 = smov 127   ;;  %s68_s12 = smov 124  }
   0x2   :  { %5 = vst [vmem:[#allocation0] sm:$0xf] %v4_v0  ;;  %s69_s13 = smov 123   ;;  %s70_s14 = smov 122  }
   0x3   :  { %s71_s15 = smov 121  }
   0x9   :  { %v9_v1 = vld [vmem:[#allocation0] sm:$0xf]  }
   0xa   :  { %v21_v2 = vld [vmem:[#allocation0] sm:$0xf]   ;;  %10 = vrot.lane.b32.xlu0 %v9_v1, %s65_s0 }
   0xb   :  { %22 = vrot.lane.b32.xlu1 %v21_v2, %s66_s8  ;;  %v15_v3 = vld [vmem:[#allocation0] sm:$0xf]  }
   0xc   :  { %v27_v4 = vld [vmem:[#allocation0] sm:$0xf]  }
   0xd   :  { %v6_v5 = vld [vmem:[#allocation0] sm:$0xf]  }
   0xe   :  { %8 = vst.msk [vmem:[%s118_s1] ss:$8 sm:$0xf] %vm7_vm0, %v6_v5   ;;  %16 = vrot.lane.b32.xlu0 %v15_v3, %s67_s11  ;;  %v33_v6 = vld [vmem:[#allocation0] sm:$0xf]  }
   0xf   :  { %28 = vrot.lane.b32.xlu1 %v27_v4, %s68_s12  ;;  %v39_v7 = vld [vmem:[#allocation0] sm:$0xf]  }
  0x10   :  { %v45_v8 = vld [vmem:[#allocation0] sm:$0xf]  }
  0x12   :  { %34 = vrot.lane.b32.xlu0 %v33_v6, %s69_s13 }
  0x13   :  { %40 = vrot.lane.b32.xlu1 %v39_v7, %s70_s14 }
  0x16   :  { %46 = vrot.lane.b32.xlu0 %v45_v8, %s71_s15 }
  0x7c   :  { %v11_v9 = vpop.permute.xlu0 %10  }
  0x7d   :  { %v23_v10 = vpop.permute.xlu1 %22   ;;  %51 = vst.msk [vmem:[%s118_s1 + $0x1] ss:$8 sm:$0xf] %vm7_vm0, %v11_v9  }
  0x7e   :  { %53 = vst.msk [vmem:[%s118_s1 + $0x3] ss:$8 sm:$0xf] %vm7_vm0, %v23_v10  }
  0x80   :  { %v17_v11 = vpop.permute.xlu0 %16  }
  0x81   :  { %v29_v12 = vpop.permute.xlu1 %28   ;;  %52 = vst.msk [vmem:[%s118_s1 + $0x2] ss:$8 sm:$0xf] %vm7_vm0, %v17_v11  }
  0x82   :  { %54 = vst.msk [vmem:[%s118_s1 + $0x4] ss:$8 sm:$0xf] %vm7_vm0, %v29_v12  }
  0x84   :  { %v35_v13 = vpop.permute.xlu0 %34  }
  0x85   :  { %v41_v14 = vpop.permute.xlu1 %40   ;;  %55 = vst.msk [vmem:[%s118_s1 + $0x5] ss:$8 sm:$0xf] %vm7_vm0, %v35_v13  }
  0x86   :  { %56 = vst.msk [vmem:[%s118_s1 + $0x6] ss:$8 sm:$0xf] %vm7_vm0, %v41_v14  }
  0x88   :  { %v47_v15 = vpop.permute.xlu0 %46  }
  0x89   :  { %57 = vst.msk [vmem:[%s118_s1 + $0x7] ss:$8 sm:$0xf] %vm7_vm0, %v47_v15  }

// kernel: unet_forward.7
= control target key start
LH: loop header
LB: loop body
LE: loop exit
PB: predicated region body
PF: predicated region fallthrough
CT: control target
= control target key end

     0   :  { %s487_s15 = smov 0   ;;  %s535_s0 = inlined_call_operand.vmem [shape: bf16[2,8,49], index: 0, kind: input, shape index: {}]   ;;  %s536_s1 = inlined_call_operand.vmem [shape: s32[1,49], index: 1, kind: input, shape index: {}]   ;;  %s537_s2 = inlined_call_operand.vmem [shape: bf16[32,32], index: 2, kind: input, shape index: {}]   ;;  %s538_s3 = inlined_call_operand.vmem [shape: f32[32,1], index: 3, kind: input, shape index: {}]   ;;  %s539_s4 = inlined_call_operand.vmem [shape: bf16[2,32,42], index: 4, kind: output, shape index: {}]  }
   0x1 LB: > { %s399_s16 = sadd.s32 4294967295, %s456_s15   ;;  %p403_p0 = scmp.ge.s32.totalorder %s456_s15, 1  ;;  %s456_s15 = sphi %s487_s15, %s14_s15  }
   0x2   : > { %p161_p1 = scmp.lt.s32.totalorder %s456_s15, 3 }
   0x4   : > { %p162_p2 = pnand %p403_p0, %p161_p1 }
   0x5   : > { %p186_p3 = scmp.lt.s32.totalorder (!%p162_p2), %s399_s16, 1  ;;  %v448_v0 = vld [vmem:[%s537_s2] sm:$0xff] (!%p162_p2)   ;;  %vm256_vm0 = vcmask (!%p162_p2), 261120   ;;  %vm198_vm1 = vcmask (!%p162_p2), 400384   ;;  %v458_v3 = vmov (!%p162_p2), 0   ;;  %s459_s23 = smov (!%p162_p2), 127   ;;  %v314_v15 = vlaneseq (!%p162_p2) }
   0x6   : > { %165 = sbr.rel (%p162_p2) target bundleno = 365 (0x16d), region = 36  ;;  %430 = vmatprep.mubr.msk.bf16.mxu0 (!%p162_p2), %vm256_vm0, %v448_v0  ;;  %446 = vset.pattern.permute.xlu1 (!%p162_p2), %v458_v3  ;;  %s460_s24 = smov (!%p162_p2), 120   ;;  %v206_v5 = vld [vmem:[%s538_s3] sm:$0xff] (!%p162_p2)  ;;  %v208_v6 = vld [vmem:[%s538_s3 + $0x10] sm:$0xff] (!%p162_p2)  ;;  %v207_v7 = vld [vmem:[%s538_s3 + $0x8] sm:$0xff] (!%p162_p2)  ;;  %vm218_vm2 = vcmask (!%p162_p2), 1043456  }
   0x7   : > { %447 = vset.pattern.permute.xlu0 (!%p162_p2), %v458_v3  ;;  %s461_s27 = smov (!%p162_p2), 121   ;;  %v209_v8 = vld [vmem:[%s538_s3 + $0x18] sm:$0xff] (!%p162_p2)  ;;  %v449_v14 = vld [vmem:[%s537_s2 + $0x8] sm:$0xff] (!%p162_p2)   ;;  %v197_v16 = vld [vmem:[%s536_s1] sm:$0x1] (!%p162_p2)  ;;  %v315_v17 = vshrl.u32 (!%p162_p2), %v314_v15, 7 }
   0x8   : > { %vm312_vm3 = vcmp.lt.s32.totalorder (!%p162_p2), %v197_v16, 6  ;;  %vm339_vm5 = vcmask (!%p162_p2), 338944  }
   0x9   : > { %v316_v19 = vsub.s32 (!%p162_p2), 0, %v315_v17  ;;  %v313_v20 = vsel (!%p162_p2), %vm312_vm3, 1, %v458_v3 }
   0xb   : > { %v317_v21 = vrot.slane (!%p162_p2), %v313_v20, %v316_v19 }
   0xd   : > { %s541_s16 = smov (!%p186_p3, %s399_s16), 1  ;;  %vm318_vm4 = vcmp.eq.s32.totalorder %v317_v21, 1 }
   0xe   : > { %s404_s19 = sshll.u32 %s541_s16, 2  ;;  %s417_s12 = sshll.u32 %s541_s16, 4 }
   0xf   : > { %s189_s22 = scalar_lea.vmem %s535_s0, %s404_s19  ;;  %s194_s17 = scalar_lea.vmem %s539_s4, %s417_s12 }
  0x10   : > { %v196_v1 = vld [vmem:[%s189_s22] sm:$0xf] }
  0x11   : > { %v201_v2 = vsel %vm198_vm1, %v196_v1, 0 }
  0x12   : > { %v211_v4 = vrot.slane %v201_v2, 4 }
  0x14   : > { %212 = vrot.lane.b32.xlu0 %v211_v4, %s459_s23  ;;  %216 = vrot.lane.b32.xlu1 %v211_v4, %s460_s24 }
  0x18   : > { %214 = vrot.lane.b32.xlu0 %v201_v2, %s461_s27  ;;  %228 = vperm.xlu1 %446, %v206_v5  }
  0x1c   : > { %238 = vperm.xlu1 %446, %v208_v6   ;;  %233 = vperm.xlu0 %447, %v207_v7  }
  0x20   : > { %243 = vperm.xlu1 %446, %v209_v8  }
  0x86   : > { %v213_v9 = vpop.permute.xlu0 %212  ;;  %v217_v11 = vpop.permute.xlu1 %216 }
  0x87   : > { %v220_v10 = vsel %vm218_vm2, %v201_v2, %v213_v9 }
  0x88   : > { %426 = vmatprep.subr.bf16.mxu0 %v220_v10 }
  0x89   : > { %427 = vmatpush3.bf16.msra.mxu0 %v220_v10 }
  0x8a   : > { %v215_v12 = vpop.permute.xlu0 %214 }
  0x8b   : > { %v224_v13 = vsel %vm218_vm2, %v215_v12, %v217_v11 }
  0x8c   : > { %428 = vmatprep.subr.bf16.mxu0 %v224_v13 }
  0x8d   : > { %429 = vmatpush3.bf16.msra.mxu0 %v224_v13 }
  0x90   : > { %431 = vmatmul.mubr.msk.bf16.vlgmr.msra.gmra.mrb[0].mxu0 %vm256_vm0, %v449_v14 }
  0x97   : > { %v229_v18 = vpop.permute.xlu1 %228 }
  0x9b   : > { %v239_v22 = vpop.permute.xlu1 %238  ;;  %v234_v26 = vpop.permute.xlu0 %233 }
  0x9f   : > { %v244_v27 = vpop.permute.xlu1 %243 }
 0x163   : > { %v432_v23 = vpop.f32.mrb[0].mxu0 }
 0x164   : > { %v306_v24 = vadd.f32 %v432_v23, %v239_v22  ;;  %v297_v25 = vpop.f32.mrb[1].mxu0 }
 0x165   : > { %v298_v28 = vadd.f32 %v297_v25, %v229_v18  ;;  %v433_v29 = vpop.f32.mrb[2].mxu0 }
 0x166   : > { %v321_v30 = vsel %vm318_vm4, %v306_v24, 0.0  ;;  %v309_v31 = vadd.f32 %v433_v29, %v244_v27  ;;  %v300_v32 = vpop.f32.mrb[3].mxu0 }
 0x167   : > { %v420_v33 = vpack.c.bf16 %v321_v30, %v321_v30  ;;  %v319_v34 = vsel %vm318_vm4, %v298_v28, 0.0  ;;  %v301_v35 = vadd.f32 %v300_v32, %v234_v26 }
 0x168   : > { %v418_v36 = vpack.c.bf16 %v319_v34, %v319_v34  ;;  %v322_v37 = vsel %vm318_vm4, %v309_v31, 0.0 }
 0x169   : > { %342 = vst.msk [vmem:[%s194_s17 + $0x8] sm:$0xf] %vm339_vm5, %v420_v33  ;;  %v421_v38 = vpack.c.bf16 %v322_v37, %v322_v37  ;;  %v320_v39 = vsel %vm318_vm4, %v301_v35, 0.0 }
 0x16a   : > { %340 = vst.msk [vmem:[%s194_s17] sm:$0xf] %vm339_vm5, %v418_v36  ;;  %v419_v40 = vpack.c.bf16 %v320_v39, %v320_v39 }
 0x16b   : > { %343 = vst.msk [vmem:[%s194_s17 + $0xc] sm:$0xf] %vm339_vm5, %v421_v38 }
 0x16c   : > { %341 = vst.msk [vmem:[%s194_s17 + $0x4] sm:$0xf] %vm339_vm5, %v419_v40 }
 0x16d PF: > { %s14_s15 = sadd.s32 1, %s456_s15  }
 0x16e   : > { %p11_p4 = scmp.ge.s32.totalorder %s14_s15, 4  }
 0x170   :  { %13 = sbr.rel (!%p11_p4) target bundleno = 1 (0x1), region = 66 }

// kernel: unet_forward.8
= control target key start
LH: loop header
LB: loop body
LE: loop exit
PB: predicated region body
PF: predicated region fallthrough
CT: control target
= control target key end

     0   :  { %s766_s21 = smov 0   ;;  %s885_s0 = inlined_call_operand.vmem [shape: bf16[2,8,121], index: 0, kind: input, shape index: {}]   ;;  %s886_s1 = inlined_call_operand.vmem [shape: s32[1,121], index: 1, kind: input, shape index: {}]   ;;  %s887_s2 = inlined_call_operand.vmem [shape: bf16[8,72], index: 2, kind: input, shape index: {}]   ;;  %s888_s3 = inlined_call_operand.vmem [shape: f32[8,3], index: 3, kind: input, shape index: {}]   ;;  %s889_s4 = inlined_call_operand.vmem [shape: bf16[8,72], index: 4, kind: input, shape index: {}]   ;;  %s890_s5 = inlined_call_operand.vmem [shape: f32[8,3], index: 5, kind: input, shape index: {}]   ;;  %s891_s6 = inlined_call_operand.vmem [shape: bf16[2,8,77], index: 6, kind: output, shape index: {}]  }
   0x1 LB: > { %s617_s22 = sadd.s32 4294967295, %s715_s21   ;;  %p621_p0 = scmp.ge.s32.totalorder %s715_s21, 1  ;;  %s715_s21 = sphi %s766_s21, %s16_s21  }
   0x2   : > { %p211_p1 = scmp.lt.s32.totalorder %s715_s21, 3 }
   0x4   : > { %p212_p2 = pnand %p621_p0, %p211_p1 }
   0x5   : > { %p239_p3 = scmp.lt.s32.totalorder (!%p212_p2), %s617_s22, 1  ;;  %v717_v0 = vmov (!%p212_p2), 0.0   ;;  %vm250_vm0 = vcmask (!%p212_p2), 990208   ;;  %s718_s27 = smov (!%p212_p2), 127   ;;  %vm722_vm1 = vmmov (!%p212_p2), 0   ;;  %v725_v4 = vmov (!%p212_p2), 0  }
   0x6   : > { %215 = sbr.rel (%p212_p2) target bundleno = 1648 (0x670), region = 44  ;;  %642 = vmatprep.subr.bf16.mxu0 (!%p212_p2), %v717_v0  ;;  %656 = vmatprep.subr.bf16.mxu1 (!%p212_p2), %v717_v0  ;;  %s719_s28 = smov (!%p212_p2), 117   ;;  %v798_v5 = vld [vmem:[%s888_s3] sm:$0xff] (!%p212_p2)  ;;  %vm274_vm2 = vcmask (!%p212_p2), 1043456   ;;  %vm295_vm3 = vcmask (!%p212_p2), 588800   ;;  %v344_v20 = vlaneseq (!%p212_p2)  ;;  %vm350_vm6 = vcmask (!%p212_p2), 809984  }
   0x7   : > { %s720_s29 = smov (!%p212_p2), 126   ;;  %s721_s30 = smov (!%p212_p2), 116   ;;  %652 = vmatprep.mubr.msk.bf16.mxu0 (!%p212_p2), %vm722_vm1, %v717_v0  ;;  %666 = vmatprep.mubr.msk.bf16.mxu1 (!%p212_p2), %vm722_vm1, %v717_v0  ;;  %v254_v19 = vld [vmem:[%s887_s2] sm:$0xf] (!%p212_p2)  ;;  %vm358_vm7 = vcmask (!%p212_p2), 7168   ;;  %vm360_vm8 = vcmask (!%p212_p2), 15360  }
   0x8   : > { %s723_s7 = smov (!%p212_p2), 115   ;;  %s724_s8 = smov (!%p212_p2), 106   ;;  %692 = vset.pattern.permute.xlu0 (!%p212_p2), %v725_v4  ;;  %v817_v21 = vld [vmem:[%s886_s1] sm:$0x1] (!%p212_p2)  ;;  %v819_v22 = vshrl.u32 (!%p212_p2), %v344_v20, 7  ;;  %v728_v48 = vmov (!%p212_p2), 1  }
   0x9   : > { %s726_s9 = smov (!%p212_p2), 105   ;;  %s727_s10 = smov (!%p212_p2), 104   ;;  %vm342_vm4 = vcmp.lt.s32.totalorder (!%p212_p2), %v817_v21, 9  ;;  %693 = vset.pattern.permute.xlu1 (!%p212_p2), %v728_v48  ;;  %v730_v49 = vmov (!%p212_p2), 2   ;;  %vm497_vm9 = vcmp.lt.s32.totalorder (!%p212_p2), %v817_v21, 7  ;;  %vm505_vm11 = vcmask (!%p212_p2), 629760  }
   0xa   : > { %v346_v23 = vsub.s32 (!%p212_p2), 0, %v819_v22  ;;  %v343_v24 = vsel (!%p212_p2), %vm342_vm4, 1, %v725_v4  ;;  %s729_s17 = smov (!%p212_p2), 1   ;;  %vm562_vm12 = vcmask (!%p212_p2), 625664  }
   0xc   : > { %v347_v25 = vrot.slane (!%p212_p2), %v343_v24, %v346_v23 }
   0xd   : > { %s893_s22 = smov (!%p239_p3, %s617_s22), 1 }
   0xe   : > { %s622_s23 = sshll.u32 %s893_s22, 2  ;;  %vm348_vm5 = vcmp.eq.s32.totalorder %v347_v25, 1 }
   0xf   : > { %s242_s26 = scalar_lea.vmem %s885_s0, %s622_s23 }
  0x10   : > { %v248_v1 = vld [vmem:[%s242_s26] sm:$0xf] }
  0x11   : > { %v253_v2 = vsel %vm250_vm0, %v248_v1, 0 }
  0x12   : > { %v257_v3 = vrot.slane %v253_v2, 4 }
  0x14   : > { %258 = vrot.lane.b32.xlu0 %v257_v3, %s718_s27  ;;  %262 = vrot.lane.b32.xlu1 %v257_v3, %s719_s28 }
  0x18   : > { %260 = vrot.lane.b32.xlu0 %v253_v2, %s720_s29  ;;  %264 = vrot.lane.b32.xlu1 %v253_v2, %s721_s30 }
  0x1c   : > { %266 = vrot.lane.b32.xlu0 %v257_v3, %s723_s7  ;;  %268 = vrot.lane.b32.xlu1 %v253_v2, %s724_s8 }
  0x20   : > { %270 = vrot.lane.b32.xlu0 %v257_v3, %s726_s9  ;;  %272 = vrot.lane.b32.xlu1 %v253_v2, %s727_s10 }
  0x24   : > { %292 = vperm.xlu0 %692, %v798_v5  }
  0x86   : > { %v259_v6 = vpop.permute.xlu0 %258  ;;  %v263_v7 = vpop.permute.xlu1 %262 }
  0x87   : > { %v276_v8 = vsel %vm274_vm2, %v253_v2, %v259_v6 }
  0x88   : > { %643 = vmatpush3.bf16.msra.mxu0 %v276_v8 }
  0x89   : > { %644 = vmatprep.subr.bf16.mxu0 %v717_v0 }
  0x8a   : > { %v261_v9 = vpop.permute.xlu0 %260  ;;  %v265_v10 = vpop.permute.xlu1 %264 }
  0x8b   : > { %v280_v11 = vsel %vm274_vm2, %v261_v9, %v263_v7 }
  0x8c   : > { %645 = vmatpush3.bf16.msra.mxu0 %v280_v11 }
  0x8d   : > { %646 = vmatprep.subr.bf16.mxu0 %v717_v0 }
  0x8e   : > { %v267_v12 = vpop.permute.xlu0 %266  ;;  %v269_v13 = vpop.permute.xlu1 %268 }
  0x8f   : > { %v284_v14 = vsel %vm274_vm2, %v265_v10, %v267_v12  ;;  %v847_v10 = vld [vmem:[%s890_s5] sm:$0xff] }
  0x90   : > { %647 = vmatpush3.bf16.msra.mxu0 %v284_v14 }
  0x91   : > { %648 = vmatprep.subr.bf16.mxu0 %v717_v0 }
  0x92   : > { %v271_v15 = vpop.permute.xlu0 %270  ;;  %v273_v16 = vpop.permute.xlu1 %272 }
  0x93   : > { %v288_v17 = vsel %vm274_vm2, %v269_v13, %v271_v15  ;;  %v300_v18 = vsel %vm274_vm2, %v273_v16, 0 }
  0x94   : > { %649 = vmatpush3.bf16.msra.mxu0 %v288_v17 }
  0x95   : > { %650 = vmatprep.subr.bf16.mxu0 %v717_v0 }
  0x98   : > { %651 = vmatpush3.bf16.msra.mxu0 %v300_v18 }
  0x9b   : > { %653 = vmatmul.mubr.msk.bf16.vlgmr.msra.gmra.mrb[0].mxu0 %vm295_vm3, %v254_v19 }
  0xa3   : > { %v293_v26 = vpop.permute.xlu0 %292 }
 0x16e   : > { %v336_v27 = vpop.f32.mrb[0].mxu0 }
 0x16f   : > { %v337_v28 = vadd.f32 %v336_v27, %v293_v26  ;;  %v654_v29 = vpop.f32.mrb[1].mxu0  ;;  %v411_v27 = vld [vmem:[%s889_s4] sm:$0xf] }
 0x170   : > { %v339_v30 = vpop.f32.mrb[2].mxu0 }
 0x171   : > { %v655_v31 = vpop.f32.mrb[3].mxu0  ;;  %v349_v32 = vsel %vm348_vm5, %v337_v28, 0.0 }
 0x172   : > { %v351_v33 = vsel %vm350_vm6, %v349_v32, 0.0  ;;  %v354_v34 = vmul.f32 %v349_v32, %v349_v32 }
 0x173   : > { %352 = vadd.xlane.f32.xlu1 %v351_v33 }
 0x174   : > { %v355_v35 = vsel %vm350_vm6, %v354_v34, 0.0 }
 0x175   : > { %356 = vadd.xlane.f32.xlu0 %v355_v35 }
 0x200   : > { %v353_v36 = vpop.xlane.xlu1 %352 }
 0x202   : > { %v357_v37 = vpop.xlane.xlu0 %356 }
 0x203   : > { %v359_v38 = vsel %vm358_vm7, %v353_v36, %v357_v37 }
 0x204   : > { %v361_v39 = vsel %vm360_vm8, %v359_v38, 0.0 }
 0x205   : > { %v362_v40 = vrot.slane %v361_v39, 4 }
 0x207   : > { %v363_v41 = vadd.f32 %v362_v40, %v361_v39 }
 0x209   : > { %v364_v42 = vrot.slane %v363_v41, 2 }
 0x20b   : > { %v365_v43 = vadd.f32 %v364_v42, %v363_v41 }
 0x20d   : > { %v366_v44 = vrot.slane %v365_v43, 1 }
 0x20f   : > { %v367_v45 = vadd.f32 %v366_v44, %v365_v43 }
 0x211   : > { %v368_v46 = vmul.f32 0.0015432099, %v367_v45 }
 0x213   : > { %378 = vperm.xlu0 %692, %v368_v46   ;;  %v369_v47 = vmul.f32 %v368_v46, %v368_v46 }
 0x215   : > { %371 = vrot.lane.b32.xlu1 %v369_v47, %s729_s17 }
 0x217   : > { %694 = vset.pattern.permute.xlu0 %v730_v49 }
 0x218   : > { %396 = vperm.xlu0 %694, %v798_v5  }
 0x21c   : > { %695 = vset.pattern.permute.xlu0 %v725_v4 }
 0x287   : > { %v372_v50 = vpop.permute.xlu1 %371 }
 0x288   : > { %v374_v51 = vsub.f32 %v368_v46, %v372_v50 }
 0x28a   : > { %v375_v52 = vmax.f32 %v374_v51, 0.0 }
 0x28c   : > { %v382_v53 = vadd.f32 1e-05, %v375_v52 }
 0x28e   : > { %697 = vrsqrt.f32 %v382_v53 }
 0x292   : > { %v379_v55 = vpop.permute.xlu0 %378 }
 0x293   : > { %v381_v57 = vsub.f32 %v337_v28, %v379_v55  ;;  %v498_v28 = vsel %vm497_vm9, 1, %v725_v4 }
 0x294   : > { %v502_v29 = vrot.slane %v498_v28, %v346_v23 }
 0x296   : > { %vm503_vm10 = vcmp.eq.s32.totalorder %v502_v29, 1 }
 0x297   : > { %v397_v60 = vpop.permute.xlu0 %396 }
 0x298   : > { %v698_v54 = vpop.eup %697 }
 0x299   : > { %386 = vperm.xlu1 %693, %v698_v54  }
 0x29d   : > { %391 = vperm.xlu1 %693, %v798_v5  }
 0x318   : > { %v387_v56 = vpop.permute.xlu1 %386 }
 0x319   : > { %v389_v58 = vmul.f32 %v387_v56, %v381_v57 }
 0x31c   : > { %v392_v59 = vpop.permute.xlu1 %391 }
 0x31d   : > { %v394_v61 = vmul.f32 %v392_v59, %v389_v58 }
 0x31f   : > { %v399_v62 = vadd.f32 %v397_v60, %v394_v61 }
 0x321   : > { %v625_v63 = vmul.f32 -1.442695, %v399_v62 }
 0x323   : > { %699 = vpow2.f32 %v625_v63 }
 0x32d   : > { %v700_v1 = vpop.eup %699 }
 0x32e   : > { %v403_v2 = vadd.f32 1.0, %v700_v1 }
 0x330   : > { %701 = vrcp.f32 %v403_v2 }
 0x33a   : > { %v702_v3 = vpop.eup %701 }
 0x33b   : > { %v406_v6 = vmul.f32 %v702_v3, %v399_v62 }
 0x33d   : > { %v407_v7 = vsel %vm348_vm5, %v406_v6, 0.0 }
 0x33e   : > { %v408_v8 = vpack.c.bf16 %v407_v7, %v407_v7 }
 0x340   : > { %v410_v5 = vsel %vm350_vm6, %v408_v8, 0 }
 0x341   : > { %v414_v9 = vrot.slane %v410_v5, 4 }
 0x343   : > { %419 = vrot.lane.b32.xlu0 %v414_v9, %s719_s28  ;;  %415 = vrot.lane.b32.xlu1 %v414_v9, %s718_s27  ;;  %s246_s27 = scalar_lea.vmem %s891_s6, %s622_s23 }
 0x347   : > { %423 = vrot.lane.b32.xlu0 %v414_v9, %s723_s7  ;;  %417 = vrot.lane.b32.xlu1 %v410_v5, %s720_s29 }
 0x34b   : > { %427 = vrot.lane.b32.xlu0 %v414_v9, %s726_s9  ;;  %421 = vrot.lane.b32.xlu1 %v410_v5, %s721_s30 }
 0x34f   : > { %425 = vrot.lane.b32.xlu1 %v410_v5, %s724_s8  ;;  %448 = vperm.xlu0 %695, %v847_v10  }
 0x353   : > { %429 = vrot.lane.b32.xlu1 %v410_v5, %s727_s10 }
 0x3b5   : > { %v420_v11 = vpop.permute.xlu0 %419  ;;  %v416_v12 = vpop.permute.xlu1 %415 }
 0x3b6   : > { %v432_v13 = vsel %vm274_vm2, %v410_v5, %v416_v12 }
 0x3b7   : > { %657 = vmatpush3.bf16.msra.mxu1 %v432_v13 }
 0x3b8   : > { %658 = vmatprep.subr.bf16.mxu1 %v717_v0 }
 0x3b9   : > { %v418_v14 = vpop.permute.xlu1 %417  ;;  %v424_v16 = vpop.permute.xlu0 %423 }
 0x3ba   : > { %v436_v15 = vsel %vm274_vm2, %v418_v14, %v420_v11 }
 0x3bb   : > { %659 = vmatpush3.bf16.msra.mxu1 %v436_v15 }
 0x3bc   : > { %660 = vmatprep.subr.bf16.mxu1 %v717_v0 }
 0x3bd   : > { %v422_v17 = vpop.permute.xlu1 %421  ;;  %v428_v19 = vpop.permute.xlu0 %427 }
 0x3be   : > { %v440_v18 = vsel %vm274_vm2, %v422_v17, %v424_v16 }
 0x3bf   : > { %661 = vmatpush3.bf16.msra.mxu1 %v440_v18 }
 0x3c0   : > { %662 = vmatprep.subr.bf16.mxu1 %v717_v0 }
 0x3c1   : > { %v426_v20 = vpop.permute.xlu1 %425 }
 0x3c2   : > { %v444_v24 = vsel %vm274_vm2, %v426_v20, %v428_v19 }
 0x3c3   : > { %663 = vmatpush3.bf16.msra.mxu1 %v444_v24 }
 0x3c4   : > { %664 = vmatprep.subr.bf16.mxu1 %v717_v0 }
 0x3c5   : > { %v430_v25 = vpop.permute.xlu1 %429 }
 0x3c6   : > { %v455_v26 = vsel %vm274_vm2, %v430_v25, 0 }
 0x3c7   : > { %665 = vmatpush3.bf16.msra.mxu1 %v455_v26 }
 0x3ca   : > { %667 = vmatmul.mubr.msk.bf16.vlgmr.msra.gmra.mrb[0].mxu1 %vm295_vm3, %v411_v27 }
 0x3ce   : > { %v449_v30 = vpop.permute.xlu0 %448 }
 0x49d   : > { %v491_v31 = vpop.f32.mrb[0].mxu1 }
 0x49e   : > { %v492_v0 = vadd.f32 %v491_v31, %v449_v30  ;;  %v668_v32 = vpop.f32.mrb[1].mxu1 }
 0x49f   : > { %v494_v33 = vpop.f32.mrb[2].mxu1 }
 0x4a0   : > { %v669_v34 = vpop.f32.mrb[3].mxu1  ;;  %v504_v35 = vsel %vm503_vm10, %v492_v0, 0.0 }
 0x4a1   : > { %v506_v36 = vsel %vm505_vm11, %v504_v35, 0.0  ;;  %v509_v37 = vmul.f32 %v504_v35, %v504_v35 }
 0x4a2   : > { %507 = vadd.xlane.f32.xlu1 %v506_v36 }
 0x4a3   : > { %v510_v38 = vsel %vm505_vm11, %v509_v37, 0.0 }
 0x4a4   : > { %511 = vadd.xlane.f32.xlu0 %v510_v38 }
 0x52f   : > { %v508_v21 = vpop.xlane.xlu1 %507 }
 0x531   : > { %v512_v4 = vpop.xlane.xlu0 %511 }
 0x532   : > { %v513_v22 = vsel %vm358_vm7, %v508_v21, %v512_v4 }
 0x533   : > { %v514_v23 = vsel %vm360_vm8, %v513_v22, 0.0 }
 0x534   : > { %v515_v39 = vrot.slane %v514_v23, 4 }
 0x536   : > { %v516_v40 = vadd.f32 %v515_v39, %v514_v23 }
 0x538   : > { %v517_v41 = vrot.slane %v516_v40, 2 }
 0x53a   : > { %v518_v42 = vadd.f32 %v517_v41, %v516_v40 }
 0x53c   : > { %v519_v43 = vrot.slane %v518_v42, 1 }
 0x53e   : > { %v520_v44 = vadd.f32 %v519_v43, %v518_v42 }
 0x540   : > { %v521_v45 = vmul.f32 0.0025510204, %v520_v44 }
 0x542   : > { %531 = vperm.xlu0 %695, %v521_v45   ;;  %v522_v46 = vmul.f32 %v521_v45, %v521_v45 }
 0x544   : > { %524 = vrot.lane.b32.xlu1 %v522_v46, %s729_s17 }
 0x546   : > { %696 = vset.pattern.permute.xlu0 %v730_v49 }
 0x547   : > { %549 = vperm.xlu0 %696, %v847_v10  }
 0x5b6   : > { %v525_v47 = vpop.permute.xlu1 %524 }
 0x5b7   : > { %v527_v48 = vsub.f32 %v521_v45, %v525_v47 }
 0x5b9   : > { %v528_v50 = vmax.f32 %v527_v48, 0.0 }
 0x5bb   : > { %v535_v51 = vadd.f32 1e-05, %v528_v50 }
 0x5bd   : > { %703 = vrsqrt.f32 %v535_v51 }
 0x5c1   : > { %v532_v53 = vpop.permute.xlu0 %531 }
 0x5c2   : > { %v534_v55 = vsub.f32 %v492_v0, %v532_v53 }
 0x5c6   : > { %v550_v58 = vpop.permute.xlu0 %549 }
 0x5c7   : > { %v704_v52 = vpop.eup %703 }
 0x5c8   : > { %539 = vperm.xlu1 %693, %v704_v52  }
 0x5cc   : > { %544 = vperm.xlu1 %693, %v847_v10  }
 0x647   : > { %v540_v54 = vpop.permute.xlu1 %539 }
 0x648   : > { %v542_v56 = vmul.f32 %v540_v54, %v534_v55 }
 0x64b   : > { %v545_v57 = vpop.permute.xlu1 %544 }
 0x64c   : > { %v547_v59 = vmul.f32 %v545_v57, %v542_v56 }
 0x64e   : > { %v552_v49 = vadd.f32 %v550_v58, %v547_v59 }
 0x650   : > { %v627_v60 = vmul.f32 -1.442695, %v552_v49 }
 0x652   : > { %705 = vpow2.f32 %v627_v60 }
 0x65c   : > { %v706_v61 = vpop.eup %705 }
 0x65d   : > { %v556_v62 = vadd.f32 1.0, %v706_v61 }
 0x65f   : > { %707 = vrcp.f32 %v556_v62 }
 0x669   : > { %v708_v63 = vpop.eup %707 }
 0x66a   : > { %v559_v1 = vmul.f32 %v708_v63, %v552_v49 }
 0x66c   : > { %v560_v2 = vsel %vm503_vm10, %v559_v1, 0.0 }
 0x66d   : > { %v561_v3 = vpack.c.bf16 %v560_v2, %v560_v2 }
 0x66f   : > { %563 = vst.msk [vmem:[%s246_s27] sm:$0xf] %vm562_vm12, %v561_v3 }
 0x670 PF: > { %s16_s21 = sadd.s32 1, %s715_s21  }
 0x671   : > { %p13_p4 = scmp.ge.s32.totalorder %s16_s21, 4  }
 0x673   :  { %15 = sbr.rel (!%p13_p4) target bundleno = 1 (0x1), region = 74 }

// kernel: unet_forward.9
= control target key start
LH: loop header
LB: loop body
LE: loop exit
PB: predicated region body
PF: predicated region fallthrough
CT: control target
= control target key end

     0   :  { %s393_s15 = smov 0   ;;  %s421_s0 = inlined_call_operand.vmem [shape: bf16[2,16,49], index: 0, kind: input, shape index: {}]   ;;  %s422_s1 = inlined_call_operand.vmem [shape: s32[1,49], index: 1, kind: input, shape index: {}]   ;;  %s423_s2 = inlined_call_operand.vmem [shape: bf16[8,16], index: 2, kind: input, shape index: {}]   ;;  %s424_s3 = inlined_call_operand.vmem [shape: f32[8,1], index: 3, kind: input, shape index: {}]   ;;  %s425_s4 = inlined_call_operand.vmem [shape: f32[2,8,49], index: 4, kind: output, shape index: {}]  }
   0x1 LB: > { %s323_s16 = sadd.s32 4294967295, %s363_s15   ;;  %p327_p0 = scmp.ge.s32.totalorder %s363_s15, 1  ;;  %s363_s15 = sphi %s393_s15, %s14_s15  }
   0x2   : > { %p162_p1 = scmp.lt.s32.totalorder %s363_s15, 3 }
   0x4   : > { %p163_p2 = pnand %p327_p0, %p162_p1 }
   0x5   : > { %p187_p3 = scmp.lt.s32.totalorder (!%p163_p2), %s323_s16, 1  ;;  %v365_v0 = vmov (!%p163_p2), 0.0   ;;  %vm366_vm0 = vmmov (!%p163_p2), 0   ;;  %v211_v1 = vld [vmem:[%s424_s3] sm:$0xff] (!%p163_p2)  ;;  %v367_v2 = vmov (!%p163_p2), 0   ;;  %vm205_vm1 = vcmask (!%p163_p2), 400384  }
   0x6   : > { %166 = sbr.rel (%p163_p2) target bundleno = 237 (0xed), region = 36  ;;  %338 = vmatprep.subr.bf16.mxu0 (!%p163_p2), %v365_v0  ;;  %340 = vmatprep.mubr.msk.bf16.mxu0 (!%p163_p2), %vm366_vm0, %v365_v0  ;;  %v210_v5 = vld [vmem:[%s423_s2] sm:$0xf] (!%p163_p2)  ;;  %vm217_vm2 = vcmask (!%p163_p2), 130048   ;;  %v263_v6 = vlaneseq (!%p163_p2) }
   0x7   : > { %355 = vset.pattern.permute.xlu0 (!%p163_p2), %v367_v2  ;;  %v199_v7 = vld [vmem:[%s422_s1] sm:$0x1] (!%p163_p2) }
   0x8   : > { %214 = vperm.xlu0 (!%p163_p2), %355, %v211_v1   ;;  %v264_v8 = vshrl.u32 (!%p163_p2), %v263_v6, 7  ;;  %vm261_vm3 = vcmp.lt.s32.totalorder (!%p163_p2), %v199_v7, 7 }
   0x9   : > { %v262_v10 = vsel (!%p163_p2), %vm261_vm3, 1, %v367_v2 }
   0xa   : > { %v265_v9 = vsub.s32 (!%p163_p2), 0, %v264_v8 }
   0xc   : > { %v266_v11 = vrot.slane (!%p163_p2), %v262_v10, %v265_v9 }
   0xd   : > { %s427_s16 = smov (!%p187_p3, %s323_s16), 1 }
   0xe   : > { %s335_s19 = sshll.u32 %s427_s16, 3  ;;  %vm267_vm4 = vcmp.eq.s32.totalorder %v266_v11, 1 }
   0xf   : > { %s191_s22 = scalar_lea.vmem %s421_s0, %s335_s19  ;;  %s195_s29 = scalar_lea.vmem %s425_s4, %s335_s19 }
  0x10   : > { %v356_v3 = vld [vmem:[%s191_s22] sm:$0xff]  }
  0x11   : > { %v208_v4 = vsel %vm205_vm1, %v356_v3, 0 }
  0x12   : > { %339 = vmatpush3.bf16.msra.mxu0 %v208_v4 }
  0x15   : > { %341 = vmatmul.mubr.msk.bf16.vlgmr.msra.gmra.mrb[0].mxu0 %vm217_vm2, %v210_v5 }
  0x87   : > { %v215_v12 = vpop.permute.xlu0 %214 }
  0xe8   : > { %v255_v13 = vpop.f32.mrb[0].mxu0 }
  0xe9   : > { %v256_v14 = vadd.f32 %v255_v13, %v215_v12  ;;  %v342_v15 = vpop.f32.mrb[1].mxu0 }
  0xea   : > { %v258_v16 = vpop.f32.mrb[2].mxu0 }
  0xeb   : > { %v268_v17 = vsel %vm267_vm4, %v256_v14, 0.0  ;;  %v343_v18 = vpop.f32.mrb[3].mxu0 }
  0xec   : > { %269 = vst.msk [vmem:[%s195_s29] sm:$0xff] %vm205_vm1, %v268_v17 }
  0xed PF: > { %s14_s15 = sadd.s32 1, %s363_s15  }
  0xee   : > { %p11_p4 = scmp.ge.s32.totalorder %s14_s15, 4  }
  0xf0   :  { %13 = sbr.rel (!%p11_p4) target bundleno = 1 (0x1), region = 66 }

</bundles_post_ra>
